<compile_context>
chip_gen: v6e
topology: v6e:2x2x1
jax: 0.10.0
libtpu: 0.0.40
codegen_flags: <defaults>
</compile_context>

<pallas_src>
import jax
import jax.numpy as jnp
from jax import lax
from jax.experimental import pallas as pl
from jax.experimental.pallas import tpu as pltpu


# ----------------------------- activation ---------------------------------
def _taaf(x):
    # Numerically stable, single-transcendental form of TAAF (mathematically identical
    # to exp(-x)/(exp(-x)+exp(-x^2)) - 1/2).
    return 0.5 * jnp.tanh(0.5 * (x * x - x))


def _taaf_reference(x):
    # Literal PyTorch TAAF form (for the XLA reference only).
    en = jnp.exp(-x)
    return en / (en + jnp.exp(-(x * x))) - 0.5


def _round_up(x, m):
    return (x + m - 1) // m * m


# ----------------------------- Pallas kernels ------------------------------
def conv_block_kernel(a_ref, w_ref, b_ref, o_ref):
    # a_ref: (4, TM, f*K) bf16 im2col patches (one slab per 2x2 max-pool phase,
    #        `f` output positions folded into the K/lane dims)
    # w_ref: (f*K, 128) bf16 block-diagonal weight (kron(I_f, W))
    # b_ref: (1, 128)  f32 tiled bias
    # o_ref: (TM, 128) bf16 packed output (f positions x Cout channels per row)
    w = w_ref[...]
    b = b_ref[...]

    def phase(p):
        z = jnp.dot(a_ref[p], w, preferred_element_type=jnp.float32) + b
        return _taaf(z)

    m = phase(0)
    for p in (1, 2, 3):          # 2x2 max-pool == elementwise max over the 4 phases
        m = jnp.maximum(m, phase(p))
    o_ref[...] = m.astype(o_ref.dtype)


def mlp_kernel(x_ref, w1_ref, b1_ref, w2_ref, b2_ref, o_ref):
    # x_ref: (TN, 3136) bf16 -> fc1(128) + TAAF -> fc2(10), f32 accumulation.
    h = jnp.dot(x_ref[...], w1_ref[...], preferred_element_type=jnp.float32) + b1_ref[...]
    h = _taaf(h).astype(jnp.bfloat16)
    o_ref[...] = jnp.dot(h, w2_ref[...], preferred_element_type=jnp.float32) + b2_ref[...]


# ----------------------------- wrappers ------------------------------------
_PARALLEL_1D = pltpu.CompilerParams(dimension_semantics=("parallel",))


def conv_block(a4, w_kc, b_c, fold):
    """Fused conv(3x3,pad=1) + TAAF + maxpool(2x2) as an im2col GEMM.

    a4:   (4, M, K) bf16 patch slabs (one per pool phase), M = N*Ho*Wo
    w_kc: (K, C)    bf16 GEMM weight (K ordered (ky,kx,cin))
    b_c:  (1, C)    f32 bias
    fold: positions packed per output row; fold*C must be 128 (lane-dense stores).
    Returns (M, C) bf16.
    """
    P, M, K = a4.shape
    C = w_kc.shape[1]
    assert fold * C == 128

    # Fold `fold` consecutive output positions into the lane dim.
    Mf = _round_up(M, fold)
    if Mf != M:
        a4 = jnp.pad(a4, ((0, 0), (0, Mf - M), (0, 0)))
    Mrows = Mf // fold
    a4 = a4.reshape(P, Mrows, fold * K)
    wbig = jnp.kron(jnp.eye(fold, dtype=w_kc.dtype), w_kc)     # (fold*K, 128) block-diag
    bbig = jnp.tile(b_c, (1, fold))                            # (1, 128)

    # Tile the row dimension for pipelining / megacore sharding.
    TM = min(512, _round_up(Mrows, 8))
    Mp = _round_up(Mrows, TM)
    if Mp != Mrows:
        a4 = jnp.pad(a4, ((0, 0), (0, Mp - Mrows), (0, 0)))

    out = pl.pallas_call(
        conv_block_kernel,
        grid=(Mp // TM,),
        in_specs=[
            pl.BlockSpec((P, TM, fold * K), lambda i: (0, i, 0)),
            pl.BlockSpec(wbig.shape, lambda i: (0, 0)),        # resident
            pl.BlockSpec(bbig.shape, lambda i: (0, 0)),        # resident
        ],
        out_specs=pl.BlockSpec((TM, 128), lambda i: (i, 0)),
        out_shape=jax.ShapeDtypeStruct((Mp, 128), jnp.bfloat16),
        compiler_params=_PARALLEL_1D,
    )(a4, wbig, bbig)

    # Unfold (free row-major reshape) and drop padded rows.
    return out.reshape(Mp * fold, C)[:M]


def mlp_head(x, w1, b1, w2, b2):
    """fc1 + TAAF + fc2, tiled over the batch dimension (weights resident)."""
    N, D = x.shape
    O = w2.shape[1]
    TN = min(256, _round_up(N, 8))
    Np = _round_up(N, TN)
    if Np != N:
        x = jnp.pad(x, ((0, Np - N), (0, 0)))

    out = pl.pallas_call(
        mlp_kernel,
        grid=(Np // TN,),
        in_specs=[
            pl.BlockSpec((TN, D), lambda i: (i, 0)),
            pl.BlockSpec(w1.shape, lambda i: (0, 0)),
            pl.BlockSpec(b1.shape, lambda i: (0, 0)),
            pl.BlockSpec(w2.shape, lambda i: (0, 0)),
            pl.BlockSpec(b2.shape, lambda i: (0, 0)),
        ],
        out_specs=pl.BlockSpec((TN, O), lambda i: (i, 0)),
        out_shape=jax.ShapeDtypeStruct((Np, O), jnp.float32),
        compiler_params=_PARALLEL_1D,
    )(x, w1, b1, w2, b2)
    return out[:N]


# ----------------------------- glue (plain JAX) -----------------------------
def im2col_pool_phases(x_nhwc):
    """Build 3x3(pad=1) patches grouped by 2x2 max-pool phase.

    Returns (4, N*Ho*Wo, 9*C) with K ordered (ky, kx, c)."""
    N, H, W, C = x_nhwc.shape
    Ho, Wo = H // 2, W // 2
    xp = jnp.pad(x_nhwc, ((0, 0), (1, 1), (1, 1), (0, 0)))
    cols = [xp[:, ky:ky + H, kx:kx + W, :] for ky in range(3) for kx in range(3)]
    patches = jnp.stack(cols, axis=3)                     # (N, H, W, 9, C)
    patches = patches.reshape(N, Ho, 2, Wo, 2, 9, C)       # split pool phases
    patches = patches.transpose(2, 4, 0, 1, 3, 5, 6)       # (ph, pw, N, Ho, Wo, 9, C)
    return patches.reshape(4, N * Ho * Wo, 9 * C)


def mnist_forward(x_nchw, params):
    N = x_nchw.shape[0]
    bf16 = jnp.bfloat16
    x = jnp.transpose(x_nchw, (0, 2, 3, 1)).astype(bf16)     # NCHW -> NHWC, bf16 operands
    # conv1(1->32) + TAAF + pool   (fold 4 positions -> 128-lane output)
    a1 = im2col_pool_phases(x)                               # (4, N*14*14, 9)
    y1 = conv_block(a1, params['w1'].astype(bf16), params['b1'], fold=4)
    y1 = y1.reshape(N, 14, 14, 32)
    # conv2(32->64) + TAAF + pool  (fold 2 positions -> 128-lane output)
    a2 = im2col_pool_phases(y1)                              # (4, N*7*7, 288)
    y2 = conv_block(a2, params['w2'].astype(bf16), params['b2'], fold=2)
    feat = y2.reshape(N, 7 * 7 * 64)                         # (h, w, c) flatten, bf16
    # fc1 + TAAF + fc2
    return mlp_head(feat, params['wf1'].astype(bf16), params['bf1'],
                    params['wf2'].astype(bf16), params['bf2'])


# ----------------------------- parameters ----------------------------------
def init_params(key):
    ks = jax.random.split(key, 8)

    def u(k, shape, fan_in):
        bound = 1.0 / float(fan_in) ** 0.5
        return jax.random.uniform(k, shape, jnp.float32, -bound, bound)

    # PyTorch-convention tensors
    cw1 = u(ks[0], (32, 1, 3, 3), 9)         # conv1.weight (Cout, Cin, kH, kW)
    cb1 = u(ks[1], (32,), 9)
    cw2 = u(ks[2], (64, 32, 3, 3), 288)      # conv2.weight
    cb2 = u(ks[3], (64,), 288)
    fw1 = u(ks[4], (128, 64 * 7 * 7), 3136)  # fc1.weight (out, in) with (c,h,w) in-order
    fb1 = u(ks[5], (128,), 3136)
    fw2 = u(ks[6], (10, 128), 128)
    fb2 = u(ks[7], (10,), 128)

    return {
        # conv weights -> (ky, kx, cin) x cout GEMM matrices (matches im2col K order)
        'w1': cw1.transpose(2, 3, 1, 0).reshape(9 * 1, 32),
        'b1': cb1.reshape(1, 32),
        'w2': cw2.transpose(2, 3, 1, 0).reshape(9 * 32, 64),
        'b2': cb2.reshape(1, 64),
        # fc1: PyTorch flattens NCHW as (c,h,w); kernel features are (h,w,c)
        'wf1': fw1.reshape(128, 64, 7, 7).transpose(0, 2, 3, 1).reshape(128, 3136).T,
        'bf1': fb1.reshape(1, 128),
        'wf2': fw2.T,
        'bf2': fb2.reshape(1, 10),
    }


# ----------------------------- XLA reference (sanity check) -----------------
def reference_forward(x_nchw, params):
    N = x_nchw.shape[0]
    x = jnp.transpose(x_nchw, (0, 2, 3, 1))
    dn = ('NHWC', 'HWIO', 'NHWC')

    def block(x, w_mat, b, cin, cout):
        w = w_mat.reshape(3, 3, cin, cout)
        y = lax.conv_general_dilated(x, w, (1, 1), ((1, 1), (1, 1)), dimension_numbers=dn)
        y = _taaf_reference(y + b.reshape(1, 1, 1, cout))
        return lax.reduce_window(y, -jnp.inf, lax.max, (1, 2, 2, 1), (1, 2, 2, 1), 'VALID')

    y1 = block(x, params['w1'], params['b1'], 1, 32)
    y2 = block(y1, params['w2'], params['b2'], 32, 64)
    feat = y2.reshape(N, 7 * 7 * 64)
    h = _taaf_reference(feat @ params['wf1'] + params['bf1'])
    return h @ params['wf2'] + params['bf2']


# ----------------------------- main -----------------------------------------
if __name__ == "__main__":
    key = jax.random.PRNGKey(0)
    kx, kp = jax.random.split(key)
    x = jax.random.normal(kx, (2, 1, 28, 28), jnp.float32)   # NCHW, like PyTorch
    params = init_params(kp)

    out = jax.block_until_ready(jax.jit(mnist_forward)(x, params))
    assert out.shape == (2, 10) and out.dtype == jnp.float32

    ref = jax.block_until_ready(reference_forward(x, params))
    assert jnp.allclose(out, ref, rtol=2e-2, atol=2e-2), (out, ref)

    print("KERNEL_OK")
</pallas_src>

<mosaic_0001>
module attributes {stable_mosaic.version = 11 : i64} {
  func.func @conv_block_kernel(%arg0: i32, %arg1: memref<4x104x36xbf16, #tpu.memory_space<vmem>>, %arg2: memref<36x128xbf16, #tpu.memory_space<vmem>>, %arg3: memref<1x128xf32, #tpu.memory_space<vmem>>, %arg4: memref<104x128xbf16, #tpu.memory_space<vmem>>) attributes {dimension_semantics = [#tpu.dimension_semantics<parallel>], iteration_bounds = array<i64: 1>, scalar_prefetch = 0 : i64, scratch_operands = 0 : i64, tpu.core_type = #tpu.core_type<tc>, window_params = [{transform_indices = @transform_0, window_bounds = array<i64: 4, 104, 36>}, {pipeline_mode = #tpu.pipeline_mode<synchronous>, transform_indices = @transform_1, window_bounds = array<i64: 36, 128>}, {pipeline_mode = #tpu.pipeline_mode<synchronous>, transform_indices = @transform_2, window_bounds = array<i64: 1, 128>}, {transform_indices = @transform_3, window_bounds = array<i64: 104, 128>}]} {
    %c0 = arith.constant 0 : index
    %c0_0 = arith.constant 0 : index
    %0 = vector.load %arg2[%c0, %c0_0] : memref<36x128xbf16, #tpu.memory_space<vmem>>, vector<36x128xbf16>
    %c0_1 = arith.constant 0 : index
    %c0_2 = arith.constant 0 : index
    %1 = vector.load %arg3[%c0_1, %c0_2] : memref<1x128xf32, #tpu.memory_space<vmem>>, vector<1x128xf32>
    %c0_3 = arith.constant 0 : index
    %c0_4 = arith.constant 0 : index
    %c0_5 = arith.constant 0 : index
    %2 = vector.load %arg1[%c0_3, %c0_4, %c0_5] : memref<4x104x36xbf16, #tpu.memory_space<vmem>>, vector<1x104x36xbf16>
    %3 = vector.shape_cast %2 : vector<1x104x36xbf16> to vector<104x36xbf16>
    %cst = arith.constant dense<0.000000e+00> : vector<104x128xf32>
    %4 = tpu.matmul %3, %0, %cst {dimension_numbers = #tpu.dot_dimension_numbers<[1], [0], [0], [1], [0, 0, 1, 1], [], []>} : vector<104x36xbf16>, vector<36x128xbf16>, vector<104x128xf32> -> vector<104x128xf32>
    %5 = vector.broadcast %1 : vector<1x128xf32> to vector<104x128xf32>
    %6 = arith.addf %4, %5 : vector<104x128xf32>
    %7 = arith.mulf %6, %6 : vector<104x128xf32>
    %8 = arith.subf %7, %6 : vector<104x128xf32>
    %cst_6 = arith.constant 5.000000e-01 : f32
    %9 = vector.broadcast %cst_6 : f32 to vector<104x128xf32>
    %10 = arith.mulf %9, %8 : vector<104x128xf32>
    %11 = math.tanh %10 : vector<104x128xf32>
    %cst_7 = arith.constant 5.000000e-01 : f32
    %12 = vector.broadcast %cst_7 : f32 to vector<104x128xf32>
    %13 = arith.mulf %12, %11 : vector<104x128xf32>
    %c1 = arith.constant 1 : index
    %c0_8 = arith.constant 0 : index
    %c0_9 = arith.constant 0 : index
    %14 = vector.load %arg1[%c1, %c0_8, %c0_9] : memref<4x104x36xbf16, #tpu.memory_space<vmem>>, vector<1x104x36xbf16>
    %15 = vector.shape_cast %14 : vector<1x104x36xbf16> to vector<104x36xbf16>
    %cst_10 = arith.constant dense<0.000000e+00> : vector<104x128xf32>
    %16 = tpu.matmul %15, %0, %cst_10 {dimension_numbers = #tpu.dot_dimension_numbers<[1], [0], [0], [1], [0, 0, 1, 1], [], []>} : vector<104x36xbf16>, vector<36x128xbf16>, vector<104x128xf32> -> vector<104x128xf32>
    %17 = vector.broadcast %1 : vector<1x128xf32> to vector<104x128xf32>
    %18 = arith.addf %16, %17 : vector<104x128xf32>
    %19 = arith.mulf %18, %18 : vector<104x128xf32>
    %20 = arith.subf %19, %18 : vector<104x128xf32>
    %cst_11 = arith.constant 5.000000e-01 : f32
    %21 = vector.broadcast %cst_11 : f32 to vector<104x128xf32>
    %22 = arith.mulf %21, %20 : vector<104x128xf32>
    %23 = math.tanh %22 : vector<104x128xf32>
    %cst_12 = arith.constant 5.000000e-01 : f32
    %24 = vector.broadcast %cst_12 : f32 to vector<104x128xf32>
    %25 = arith.mulf %24, %23 : vector<104x128xf32>
    %26 = arith.maximumf %13, %25 : vector<104x128xf32>
    %c2 = arith.constant 2 : index
    %c0_13 = arith.constant 0 : index
    %c0_14 = arith.constant 0 : index
    %27 = vector.load %arg1[%c2, %c0_13, %c0_14] : memref<4x104x36xbf16, #tpu.memory_space<vmem>>, vector<1x104x36xbf16>
    %28 = vector.shape_cast %27 : vector<1x104x36xbf16> to vector<104x36xbf16>
    %cst_15 = arith.constant dense<0.000000e+00> : vector<104x128xf32>
    %29 = tpu.matmul %28, %0, %cst_15 {dimension_numbers = #tpu.dot_dimension_numbers<[1], [0], [0], [1], [0, 0, 1, 1], [], []>} : vector<104x36xbf16>, vector<36x128xbf16>, vector<104x128xf32> -> vector<104x128xf32>
    %30 = vector.broadcast %1 : vector<1x128xf32> to vector<104x128xf32>
    %31 = arith.addf %29, %30 : vector<104x128xf32>
    %32 = arith.mulf %31, %31 : vector<104x128xf32>
    %33 = arith.subf %32, %31 : vector<104x128xf32>
    %cst_16 = arith.constant 5.000000e-01 : f32
    %34 = vector.broadcast %cst_16 : f32 to vector<104x128xf32>
    %35 = arith.mulf %34, %33 : vector<104x128xf32>
    %36 = math.tanh %35 : vector<104x128xf32>
    %cst_17 = arith.constant 5.000000e-01 : f32
    %37 = vector.broadcast %cst_17 : f32 to vector<104x128xf32>
    %38 = arith.mulf %37, %36 : vector<104x128xf32>
    %39 = arith.maximumf %26, %38 : vector<104x128xf32>
    %c3 = arith.constant 3 : index
    %c0_18 = arith.constant 0 : index
    %c0_19 = arith.constant 0 : index
    %40 = vector.load %arg1[%c3, %c0_18, %c0_19] : memref<4x104x36xbf16, #tpu.memory_space<vmem>>, vector<1x104x36xbf16>
    %41 = vector.shape_cast %40 : vector<1x104x36xbf16> to vector<104x36xbf16>
    %cst_20 = arith.constant dense<0.000000e+00> : vector<104x128xf32>
    %42 = tpu.matmul %41, %0, %cst_20 {dimension_numbers = #tpu.dot_dimension_numbers<[1], [0], [0], [1], [0, 0, 1, 1], [], []>} : vector<104x36xbf16>, vector<36x128xbf16>, vector<104x128xf32> -> vector<104x128xf32>
    %43 = vector.broadcast %1 : vector<1x128xf32> to vector<104x128xf32>
    %44 = arith.addf %42, %43 : vector<104x128xf32>
    %45 = arith.mulf %44, %44 : vector<104x128xf32>
    %46 = arith.subf %45, %44 : vector<104x128xf32>
    %cst_21 = arith.constant 5.000000e-01 : f32
    %47 = vector.broadcast %cst_21 : f32 to vector<104x128xf32>
    %48 = arith.mulf %47, %46 : vector<104x128xf32>
    %49 = math.tanh %48 : vector<104x128xf32>
    %cst_22 = arith.constant 5.000000e-01 : f32
    %50 = vector.broadcast %cst_22 : f32 to vector<104x128xf32>
    %51 = arith.mulf %50, %49 : vector<104x128xf32>
    %52 = arith.maximumf %39, %51 : vector<104x128xf32>
    %53 = arith.truncf %52 : vector<104x128xf32> to vector<104x128xbf16>
    %c0_23 = arith.constant 0 : index
    %c0_24 = arith.constant 0 : index
    %54 = vector.load %arg4[%c0_23, %c0_24] : memref<104x128xbf16, #tpu.memory_space<vmem>>, vector<104x128xbf16>
    tpu.vector_store %arg4[%c0_23, %c0_24], %53 {strides = array<i32>} : memref<104x128xbf16, #tpu.memory_space<vmem>>, vector<104x128xbf16>,
    return
  }
  func.func @transform_0(%arg0: i32) -> (i32, i32, i32) {
    %c0_i32 = arith.constant 0 : i32
    %c0_i32_0 = arith.constant 0 : i32
    %c0_i32_1 = arith.constant 0 : i32
    return %c0_i32, %arg0, %c0_i32_0 : i32, i32, i32
  }
  func.func @transform_1(%arg0: i32) -> (i32, i32) {
    %c0_i32 = arith.constant 0 : i32
    %c0_i32_0 = arith.constant 0 : i32
    %c0_i32_1 = arith.constant 0 : i32
    return %c0_i32, %c0_i32_0 : i32, i32
  }
  func.func @transform_2(%arg0: i32) -> (i32, i32) {
    %c0_i32 = arith.constant 0 : i32
    %c0_i32_0 = arith.constant 0 : i32
    %c0_i32_1 = arith.constant 0 : i32
    return %c0_i32, %c0_i32_0 : i32, i32
  }
  func.func @transform_3(%arg0: i32) -> (i32, i32) {
    %c0_i32 = arith.constant 0 : i32
    %c0_i32_0 = arith.constant 0 : i32
    return %arg0, %c0_i32 : i32, i32
  }
}

module attributes {stable_mosaic.version = 11 : i64} {
  func.func @conv_block_kernel(%arg0: i32, %arg1: memref<4x56x576xbf16, #tpu.memory_space<vmem>>, %arg2: memref<576x128xbf16, #tpu.memory_space<vmem>>, %arg3: memref<1x128xf32, #tpu.memory_space<vmem>>, %arg4: memref<56x128xbf16, #tpu.memory_space<vmem>>) attributes {dimension_semantics = [#tpu.dimension_semantics<parallel>], iteration_bounds = array<i64: 1>, scalar_prefetch = 0 : i64, scratch_operands = 0 : i64, tpu.core_type = #tpu.core_type<tc>, window_params = [{transform_indices = @transform_0, window_bounds = array<i64: 4, 56, 576>}, {pipeline_mode = #tpu.pipeline_mode<synchronous>, transform_indices = @transform_1, window_bounds = array<i64: 576, 128>}, {pipeline_mode = #tpu.pipeline_mode<synchronous>, transform_indices = @transform_2, window_bounds = array<i64: 1, 128>}, {transform_indices = @transform_3, window_bounds = array<i64: 56, 128>}]} {
    %c0 = arith.constant 0 : index
    %c0_0 = arith.constant 0 : index
    %0 = vector.load %arg2[%c0, %c0_0] : memref<576x128xbf16, #tpu.memory_space<vmem>>, vector<576x128xbf16>
    %c0_1 = arith.constant 0 : index
    %c0_2 = arith.constant 0 : index
    %1 = vector.load %arg3[%c0_1, %c0_2] : memref<1x128xf32, #tpu.memory_space<vmem>>, vector<1x128xf32>
    %c0_3 = arith.constant 0 : index
    %c0_4 = arith.constant 0 : index
    %c0_5 = arith.constant 0 : index
    %2 = vector.load %arg1[%c0_3, %c0_4, %c0_5] : memref<4x56x576xbf16, #tpu.memory_space<vmem>>, vector<1x56x576xbf16>
    %3 = vector.shape_cast %2 : vector<1x56x576xbf16> to vector<56x576xbf16>
    %cst = arith.constant dense<0.000000e+00> : vector<56x128xf32>
    %4 = tpu.matmul %3, %0, %cst {dimension_numbers = #tpu.dot_dimension_numbers<[1], [0], [0], [1], [0, 0, 1, 1], [], []>} : vector<56x576xbf16>, vector<576x128xbf16>, vector<56x128xf32> -> vector<56x128xf32>
    %5 = vector.broadcast %1 : vector<1x128xf32> to vector<56x128xf32>
    %6 = arith.addf %4, %5 : vector<56x128xf32>
    %7 = arith.mulf %6, %6 : vector<56x128xf32>
    %8 = arith.subf %7, %6 : vector<56x128xf32>
    %cst_6 = arith.constant 5.000000e-01 : f32
    %9 = vector.broadcast %cst_6 : f32 to vector<56x128xf32>
    %10 = arith.mulf %9, %8 : vector<56x128xf32>
    %11 = math.tanh %10 : vector<56x128xf32>
    %cst_7 = arith.constant 5.000000e-01 : f32
    %12 = vector.broadcast %cst_7 : f32 to vector<56x128xf32>
    %13 = arith.mulf %12, %11 : vector<56x128xf32>
    %c1 = arith.constant 1 : index
    %c0_8 = arith.constant 0 : index
    %c0_9 = arith.constant 0 : index
    %14 = vector.load %arg1[%c1, %c0_8, %c0_9] : memref<4x56x576xbf16, #tpu.memory_space<vmem>>, vector<1x56x576xbf16>
    %15 = vector.shape_cast %14 : vector<1x56x576xbf16> to vector<56x576xbf16>
    %cst_10 = arith.constant dense<0.000000e+00> : vector<56x128xf32>
    %16 = tpu.matmul %15, %0, %cst_10 {dimension_numbers = #tpu.dot_dimension_numbers<[1], [0], [0], [1], [0, 0, 1, 1], [], []>} : vector<56x576xbf16>, vector<576x128xbf16>, vector<56x128xf32> -> vector<56x128xf32>
    %17 = vector.broadcast %1 : vector<1x128xf32> to vector<56x128xf32>
    %18 = arith.addf %16, %17 : vector<56x128xf32>
    %19 = arith.mulf %18, %18 : vector<56x128xf32>
    %20 = arith.subf %19, %18 : vector<56x128xf32>
    %cst_11 = arith.constant 5.000000e-01 : f32
    %21 = vector.broadcast %cst_11 : f32 to vector<56x128xf32>
    %22 = arith.mulf %21, %20 : vector<56x128xf32>
    %23 = math.tanh %22 : vector<56x128xf32>
    %cst_12 = arith.constant 5.000000e-01 : f32
    %24 = vector.broadcast %cst_12 : f32 to vector<56x128xf32>
    %25 = arith.mulf %24, %23 : vector<56x128xf32>
    %26 = arith.maximumf %13, %25 : vector<56x128xf32>
    %c2 = arith.constant 2 : index
    %c0_13 = arith.constant 0 : index
    %c0_14 = arith.constant 0 : index
    %27 = vector.load %arg1[%c2, %c0_13, %c0_14] : memref<4x56x576xbf16, #tpu.memory_space<vmem>>, vector<1x56x576xbf16>
    %28 = vector.shape_cast %27 : vector<1x56x576xbf16> to vector<56x576xbf16>
    %cst_15 = arith.constant dense<0.000000e+00> : vector<56x128xf32>
    %29 = tpu.matmul %28, %0, %cst_15 {dimension_numbers = #tpu.dot_dimension_numbers<[1], [0], [0], [1], [0, 0, 1, 1], [], []>} : vector<56x576xbf16>, vector<576x128xbf16>, vector<56x128xf32> -> vector<56x128xf32>
    %30 = vector.broadcast %1 : vector<1x128xf32> to vector<56x128xf32>
    %31 = arith.addf %29, %30 : vector<56x128xf32>
    %32 = arith.mulf %31, %31 : vector<56x128xf32>
    %33 = arith.subf %32, %31 : vector<56x128xf32>
    %cst_16 = arith.constant 5.000000e-01 : f32
    %34 = vector.broadcast %cst_16 : f32 to vector<56x128xf32>
    %35 = arith.mulf %34, %33 : vector<56x128xf32>
    %36 = math.tanh %35 : vector<56x128xf32>
    %cst_17 = arith.constant 5.000000e-01 : f32
    %37 = vector.broadcast %cst_17 : f32 to vector<56x128xf32>
    %38 = arith.mulf %37, %36 : vector<56x128xf32>
    %39 = arith.maximumf %26, %38 : vector<56x128xf32>
    %c3 = arith.constant 3 : index
    %c0_18 = arith.constant 0 : index
    %c0_19 = arith.constant 0 : index
    %40 = vector.load %arg1[%c3, %c0_18, %c0_19] : memref<4x56x576xbf16, #tpu.memory_space<vmem>>, vector<1x56x576xbf16>
    %41 = vector.shape_cast %40 : vector<1x56x576xbf16> to vector<56x576xbf16>
    %cst_20 = arith.constant dense<0.000000e+00> : vector<56x128xf32>
    %42 = tpu.matmul %41, %0, %cst_20 {dimension_numbers = #tpu.dot_dimension_numbers<[1], [0], [0], [1], [0, 0, 1, 1], [], []>} : vector<56x576xbf16>, vector<576x128xbf16>, vector<56x128xf32> -> vector<56x128xf32>
    %43 = vector.broadcast %1 : vector<1x128xf32> to vector<56x128xf32>
    %44 = arith.addf %42, %43 : vector<56x128xf32>
    %45 = arith.mulf %44, %44 : vector<56x128xf32>
    %46 = arith.subf %45, %44 : vector<56x128xf32>
    %cst_21 = arith.constant 5.000000e-01 : f32
    %47 = vector.broadcast %cst_21 : f32 to vector<56x128xf32>
    %48 = arith.mulf %47, %46 : vector<56x128xf32>
    %49 = math.tanh %48 : vector<56x128xf32>
    %cst_22 = arith.constant 5.000000e-01 : f32
    %50 = vector.broadcast %cst_22 : f32 to vector<56x128xf32>
    %51 = arith.mulf %50, %49 : vector<56x128xf32>
    %52 = arith.maximumf %39, %51 : vector<56x128xf32>
    %53 = arith.truncf %52 : vector<56x128xf32> to vector<56x128xbf16>
    %c0_23 = arith.constant 0 : index
    %c0_24 = arith.constant 0 : index
    %54 = vector.load %arg4[%c0_23, %c0_24] : memref<56x128xbf16, #tpu.memory_space<vmem>>, vector<56x128xbf16>
    tpu.vector_store %arg4[%c0_23, %c0_24], %53 {strides = array<i32>} : memref<56x128xbf16, #tpu.memory_space<vmem>>, vector<56x128xbf16>,
    return
  }
  func.func @transform_0(%arg0: i32) -> (i32, i32, i32) {
    %c0_i32 = arith.constant 0 : i32
    %c0_i32_0 = arith.constant 0 : i32
    %c0_i32_1 = arith.constant 0 : i32
    return %c0_i32, %arg0, %c0_i32_0 : i32, i32, i32
  }
  func.func @transform_1(%arg0: i32) -> (i32, i32) {
    %c0_i32 = arith.constant 0 : i32
    %c0_i32_0 = arith.constant 0 : i32
    %c0_i32_1 = arith.constant 0 : i32
    return %c0_i32, %c0_i32_0 : i32, i32
  }
  func.func @transform_2(%arg0: i32) -> (i32, i32) {
    %c0_i32 = arith.constant 0 : i32
    %c0_i32_0 = arith.constant 0 : i32
    %c0_i32_1 = arith.constant 0 : i32
    return %c0_i32, %c0_i32_0 : i32, i32
  }
  func.func @transform_3(%arg0: i32) -> (i32, i32) {
    %c0_i32 = arith.constant 0 : i32
    %c0_i32_0 = arith.constant 0 : i32
    return %arg0, %c0_i32 : i32, i32
  }
}

module attributes {stable_mosaic.version = 11 : i64} {
  func.func @mlp_kernel(%arg0: i32, %arg1: memref<8x3136xbf16, #tpu.memory_space<vmem>>, %arg2: memref<3136x128xbf16, #tpu.memory_space<vmem>>, %arg3: memref<1x128xf32, #tpu.memory_space<vmem>>, %arg4: memref<128x10xbf16, #tpu.memory_space<vmem>>, %arg5: memref<1x10xf32, #tpu.memory_space<vmem>>, %arg6: memref<8x10xf32, #tpu.memory_space<vmem>>) attributes {dimension_semantics = [#tpu.dimension_semantics<parallel>], iteration_bounds = array<i64: 1>, scalar_prefetch = 0 : i64, scratch_operands = 0 : i64, tpu.core_type = #tpu.core_type<tc>, window_params = [{transform_indices = @transform_0, window_bounds = array<i64: 8, 3136>}, {pipeline_mode = #tpu.pipeline_mode<synchronous>, transform_indices = @transform_1, window_bounds = array<i64: 3136, 128>}, {pipeline_mode = #tpu.pipeline_mode<synchronous>, transform_indices = @transform_2, window_bounds = array<i64: 1, 128>}, {pipeline_mode = #tpu.pipeline_mode<synchronous>, transform_indices = @transform_3, window_bounds = array<i64: 128, 10>}, {pipeline_mode = #tpu.pipeline_mode<synchronous>, transform_indices = @transform_4, window_bounds = array<i64: 1, 10>}, {transform_indices = @transform_5, window_bounds = array<i64: 8, 10>}]} {
    %c0 = arith.constant 0 : index
    %c0_0 = arith.constant 0 : index
    %0 = vector.load %arg1[%c0, %c0_0] : memref<8x3136xbf16, #tpu.memory_space<vmem>>, vector<8x3136xbf16>
    %c0_1 = arith.constant 0 : index
    %c0_2 = arith.constant 0 : index
    %1 = vector.load %arg2[%c0_1, %c0_2] : memref<3136x128xbf16, #tpu.memory_space<vmem>>, vector<3136x128xbf16>
    %cst = arith.constant dense<0.000000e+00> : vector<8x128xf32>
    %2 = tpu.matmul %0, %1, %cst {dimension_numbers = #tpu.dot_dimension_numbers<[1], [0], [0], [1], [0, 0, 1, 1], [], []>} : vector<8x3136xbf16>, vector<3136x128xbf16>, vector<8x128xf32> -> vector<8x128xf32>
    %c0_3 = arith.constant 0 : index
    %c0_4 = arith.constant 0 : index
    %3 = vector.load %arg3[%c0_3, %c0_4] : memref<1x128xf32, #tpu.memory_space<vmem>>, vector<1x128xf32>
    %4 = vector.broadcast %3 : vector<1x128xf32> to vector<8x128xf32>
    %5 = arith.addf %2, %4 : vector<8x128xf32>
    %6 = arith.mulf %5, %5 : vector<8x128xf32>
    %7 = arith.subf %6, %5 : vector<8x128xf32>
    %cst_5 = arith.constant 5.000000e-01 : f32
    %8 = vector.broadcast %cst_5 : f32 to vector<8x128xf32>
    %9 = arith.mulf %8, %7 : vector<8x128xf32>
    %10 = math.tanh %9 : vector<8x128xf32>
    %cst_6 = arith.constant 5.000000e-01 : f32
    %11 = vector.broadcast %cst_6 : f32 to vector<8x128xf32>
    %12 = arith.mulf %11, %10 : vector<8x128xf32>
    %13 = arith.truncf %12 : vector<8x128xf32> to vector<8x128xbf16>
    %c0_7 = arith.constant 0 : index
    %c0_8 = arith.constant 0 : index
    %14 = vector.load %arg4[%c0_7, %c0_8] : memref<128x10xbf16, #tpu.memory_space<vmem>>, vector<128x10xbf16>
    %cst_9 = arith.constant dense<0.000000e+00> : vector<8x10xf32>
    %15 = tpu.matmul %13, %14, %cst_9 {dimension_numbers = #tpu.dot_dimension_numbers<[1], [0], [0], [1], [0, 0, 1, 1], [], []>} : vector<8x128xbf16>, vector<128x10xbf16>, vector<8x10xf32> -> vector<8x10xf32>
    %c0_10 = arith.constant 0 : index
    %c0_11 = arith.constant 0 : index
    %16 = vector.load %arg5[%c0_10, %c0_11] : memref<1x10xf32, #tpu.memory_space<vmem>>, vector<1x10xf32>
    %17 = vector.broadcast %16 : vector<1x10xf32> to vector<8x10xf32>
    %18 = arith.addf %15, %17 : vector<8x10xf32>
    %c0_12 = arith.constant 0 : index
    %c0_13 = arith.constant 0 : index
    %19 = vector.load %arg6[%c0_12, %c0_13] : memref<8x10xf32, #tpu.memory_space<vmem>>, vector<8x10xf32>
    tpu.vector_store %arg6[%c0_12, %c0_13], %18 {strides = array<i32>} : memref<8x10xf32, #tpu.memory_space<vmem>>, vector<8x10xf32>,
    return
  }
  func.func @transform_0(%arg0: i32) -> (i32, i32) {
    %c0_i32 = arith.constant 0 : i32
    %c0_i32_0 = arith.constant 0 : i32
    return %arg0, %c0_i32 : i32, i32
  }
  func.func @transform_1(%arg0: i32) -> (i32, i32) {
    %c0_i32 = arith.constant 0 : i32
    %c0_i32_0 = arith.constant 0 : i32
    %c0_i32_1 = arith.constant 0 : i32
    return %c0_i32, %c0_i32_0 : i32, i32
  }
  func.func @transform_2(%arg0: i32) -> (i32, i32) {
    %c0_i32 = arith.constant 0 : i32
    %c0_i32_0 = arith.constant 0 : i32
    %c0_i32_1 = arith.constant 0 : i32
    return %c0_i32, %c0_i32_0 : i32, i32
  }
  func.func @transform_3(%arg0: i32) -> (i32, i32) {
    %c0_i32 = arith.constant 0 : i32
    %c0_i32_0 = arith.constant 0 : i32
    %c0_i32_1 = arith.constant 0 : i32
    return %c0_i32, %c0_i32_0 : i32, i32
  }
  func.func @transform_4(%arg0: i32) -> (i32, i32) {
    %c0_i32 = arith.constant 0 : i32
    %c0_i32_0 = arith.constant 0 : i32
    %c0_i32_1 = arith.constant 0 : i32
    return %c0_i32, %c0_i32_0 : i32, i32
  }
  func.func @transform_5(%arg0: i32) -> (i32, i32) {
    %c0_i32 = arith.constant 0 : i32
    %c0_i32_0 = arith.constant 0 : i32
    return %arg0, %c0_i32 : i32, i32
  }
}

</mosaic_0001>

<bundles_post_ra>
// kernel: mnist_forward.3
= control target key start
LH: loop header
LB: loop body
LE: loop exit
PB: predicated region body
PF: predicated region fallthrough
CT: control target
= control target key end

     0   :  { %vm110_vm0 = vcmask 1041408   ;;  %v1512_v0 = vmov 0.0   ;;  %vm1513_vm1 = vmmov 0   ;;  %vm88_vm2 = vcmask 293888   ;;  %s1943_s1 = inlined_call_operand.vmem [shape: bf16[36,128], index: 1, kind: input, shape index: {}]   ;;  %s1944_s0 = inlined_call_operand.vmem [shape: bf16[4,104,36], index: 0, kind: input, shape index: {}]   ;;  %s1945_s2 = inlined_call_operand.vmem [shape: f32[1,128], index: 2, kind: input, shape index: {}]   ;;  %s1946_s3 = inlined_call_operand.vmem [shape: bf16[104,128], index: 3, kind: output, shape index: {}]  }
   0x1   :  { %1239 = vmatprep.subr.bf16.mxu0 %v1512_v0  ;;  %1273 = vmatprep.subr.bf16.mxu1 %v1512_v0  ;;  %v1377_v1 = vld [vmem:[%s1943_s1 + $0x10] ss:$0 sps:$4 sm:$0x33]   ;;  %v1378_v3 = vld [vmem:[%s1943_s1 + $0x8] sm:$0xff]   ;;  %v1379_v4 = vld [vmem:[%s1943_s1] sm:$0xff]  }
   0x2   :  { %1245 = vmatprep.mubr.msk.bf16.mxu0 %vm1513_vm1, %v1512_v0  ;;  %1279 = vmatprep.mubr.msk.bf16.mxu1 %vm1513_vm1, %v1512_v0  ;;  %v112_v2 = vsel %vm110_vm0, %v1377_v1, 0  ;;  %v1380_v5 = vld [vmem:[%s1944_s0] sm:$0xff]   ;;  %v1381_v6 = vld [vmem:[%s1944_s0 + $0x34] sm:$0xff]   ;;  %v1382_v7 = vld [vmem:[%s1944_s0 + $0x8] sm:$0xff]  }
   0x3   :  { %1240 = vmatpush3.bf16.msra.mxu0 %v112_v2  ;;  %1274 = vmatpush3.bf16.msra.mxu1 %v112_v2  ;;  %v1383_v8 = vld [vmem:[%s1944_s0 + $0x3c] sm:$0xff]   ;;  %v1384_v9 = vld [vmem:[%s1944_s0 + $0x10] sm:$0xff]   ;;  %v1385_v10 = vld [vmem:[%s1944_s0 + $0x44] sm:$0xff]  }
   0x4   :  { %1241 = vmatprep.subr.bf16.mxu0 %v1512_v0  ;;  %1275 = vmatprep.subr.bf16.mxu1 %v1512_v0  ;;  %v1386_v11 = vld [vmem:[%s1944_s0 + $0x18] sm:$0xff]   ;;  %v1387_v12 = vld [vmem:[%s1944_s0 + $0x4c] sm:$0xff]   ;;  %v1388_v13 = vld [vmem:[%s1944_s0 + $0x20] sm:$0xff]  }
   0x5   :  { %v1389_v14 = vld [vmem:[%s1944_s0 + $0x54] sm:$0xff]   ;;  %v1390_v15 = vld [vmem:[%s1944_s0 + $0x28] sm:$0xff]   ;;  %v1391_v16 = vld [vmem:[%s1944_s0 + $0x5c] sm:$0xff]  }
   0x6   :  { %v1392_v17 = vld [vmem:[%s1944_s0 + $0x30] ss:$0 sps:$4 sm:$0xff]   ;;  %v1393_v18 = vld [vmem:[%s1944_s0 + $0x64] ss:$0 sps:$4 sm:$0xff]   ;;  %v1394_v19 = vld [vmem:[%s1944_s0 + $0x68] sm:$0xff]  }
   0x7   :  { %1242 = vmatpush3.bf16.msra.mxu0 %v1378_v3  ;;  %1276 = vmatpush3.bf16.msra.mxu1 %v1378_v3  ;;  %v1395_v20 = vld [vmem:[%s1944_s0 + $0x9c] sm:$0xff]   ;;  %v1396_v21 = vld [vmem:[%s1944_s0 + $0x70] sm:$0xff]   ;;  %v1397_v22 = vld [vmem:[%s1944_s0 + $0xa4] sm:$0xff]  }
   0x8   :  { %1243 = vmatprep.subr.bf16.mxu0 %v1512_v0  ;;  %1277 = vmatprep.subr.bf16.mxu1 %v1512_v0  ;;  %v1398_v23 = vld [vmem:[%s1944_s0 + $0x78] sm:$0xff]   ;;  %v1399_v24 = vld [vmem:[%s1944_s0 + $0xac] sm:$0xff]   ;;  %v1400_v25 = vld [vmem:[%s1944_s0 + $0x80] sm:$0xff]  }
   0x9   :  { %v1401_v26 = vld [vmem:[%s1944_s0 + $0xb4] sm:$0xff]   ;;  %v1402_v27 = vld [vmem:[%s1944_s0 + $0x88] sm:$0xff]   ;;  %v1403_v28 = vld [vmem:[%s1944_s0 + $0xbc] sm:$0xff]  }
   0xa   :  { %v1404_v29 = vld [vmem:[%s1944_s0 + $0x90] sm:$0xff]   ;;  %v1405_v30 = vld [vmem:[%s1944_s0 + $0xc4] sm:$0xff]   ;;  %v1406_v31 = vld [vmem:[%s1944_s0 + $0x98] ss:$0 sps:$4 sm:$0xff]  }
   0xb   :  { %1244 = vmatpush3.bf16.msra.mxu0 %v1379_v4  ;;  %1278 = vmatpush3.bf16.msra.mxu1 %v1379_v4  ;;  %v1407_v32 = vld [vmem:[%s1944_s0 + $0xcc] ss:$0 sps:$4 sm:$0xff]   ;;  %v1726_v47 = vld [vmem:[%s1945_s2] ss:$0 sm:$0xff] }
   0xc   :  { %1307 = vmatprep.subr.bf16.mxu0 %v1512_v0  ;;  %1341 = vmatprep.subr.bf16.mxu1 %v1512_v0 }
   0xe   :  { %1246 = vmatmul.mubr.msk.bf16.vlgmr.msra.gmra.mxu0 %vm88_vm2, %v1380_v5  ;;  %1280 = vmatmul.mubr.msk.bf16.vlgmr.msra.gmra.mxu1 %vm88_vm2, %v1381_v6 }
   0xf   :  { %1308 = vmatpush3.bf16.msra.mxu0 %v112_v2  ;;  %1342 = vmatpush3.bf16.msra.mxu1 %v112_v2 }
  0x10   :  { %1249 = vmatprep.mubr.msk.bf16.mxu0 %vm1513_vm1, %v1512_v0  ;;  %1283 = vmatprep.mubr.msk.bf16.mxu1 %vm1513_vm1, %v1512_v0 }
  0x11   :  { %1309 = vmatprep.subr.bf16.mxu0 %v1512_v0  ;;  %1343 = vmatprep.subr.bf16.mxu1 %v1512_v0 }
  0x13   :  { %1310 = vmatpush3.bf16.msra.mxu0 %v1378_v3  ;;  %1344 = vmatpush3.bf16.msra.mxu1 %v1378_v3 }
  0x14   :  { %1311 = vmatprep.subr.bf16.mxu0 %v1512_v0  ;;  %1345 = vmatprep.subr.bf16.mxu1 %v1512_v0 }
  0x16   :  { %1250 = vmatmul.mubr.msk.bf16.gmra.mxu0 %vm88_vm2, %v1382_v7  ;;  %1284 = vmatmul.mubr.msk.bf16.gmra.mxu1 %vm88_vm2, %v1383_v8 }
  0x17   :  { %1253 = vmatprep.mubr.msk.bf16.mxu0 %vm1513_vm1, %v1512_v0  ;;  %1287 = vmatprep.mubr.msk.bf16.mxu1 %vm1513_vm1, %v1512_v0 }
  0x18   :  { %1312 = vmatpush3.bf16.msra.mxu0 %v1379_v4  ;;  %1346 = vmatpush3.bf16.msra.mxu1 %v1379_v4 }
  0x1e   :  { %1254 = vmatmul.mubr.msk.bf16.gmra.mxu0 %vm88_vm2, %v1384_v9  ;;  %1288 = vmatmul.mubr.msk.bf16.gmra.mxu1 %vm88_vm2, %v1385_v10 }
  0x1f   :  { %1257 = vmatprep.mubr.msk.bf16.mxu0 %vm1513_vm1, %v1512_v0  ;;  %1291 = vmatprep.mubr.msk.bf16.mxu1 %vm1513_vm1, %v1512_v0 }
  0x26   :  { %1258 = vmatmul.mubr.msk.bf16.gmra.mxu0 %vm88_vm2, %v1386_v11  ;;  %1292 = vmatmul.mubr.msk.bf16.gmra.mxu1 %vm88_vm2, %v1387_v12 }
  0x27   :  { %1261 = vmatprep.mubr.msk.bf16.mxu0 %vm1513_vm1, %v1512_v0  ;;  %1295 = vmatprep.mubr.msk.bf16.mxu1 %vm1513_vm1, %v1512_v0 }
  0x2e   :  { %1262 = vmatmul.mubr.msk.bf16.gmra.mxu0 %vm88_vm2, %v1388_v13  ;;  %1296 = vmatmul.mubr.msk.bf16.gmra.mxu1 %vm88_vm2, %v1389_v14 }
  0x2f   :  { %1265 = vmatprep.mubr.msk.bf16.mxu0 %vm1513_vm1, %v1512_v0  ;;  %1299 = vmatprep.mubr.msk.bf16.mxu1 %vm1513_vm1, %v1512_v0 }
  0x36   :  { %1266 = vmatmul.mubr.msk.bf16.gmra.mxu0 %vm88_vm2, %v1390_v15  ;;  %1300 = vmatmul.mubr.msk.bf16.gmra.mxu1 %vm88_vm2, %v1391_v16 }
  0x37   :  { %1269 = vmatprep.mubr.msk.bf16.mxu0 %vm1513_vm1, %v1512_v0  ;;  %1303 = vmatprep.mubr.msk.bf16.mxu1 %vm1513_vm1, %v1512_v0 }
  0x3e   :  { %1270 = vmatmul.mubr.msk.bf16.gmra.mxu0 %vm88_vm2, %v1392_v17  ;;  %1304 = vmatmul.mubr.msk.bf16.gmra.mxu1 %vm88_vm2, %v1393_v18 }
  0x3f   :  { %1313 = vmatprep.mubr.msk.bf16.mxu0 %vm1513_vm1, %v1512_v0  ;;  %1347 = vmatprep.mubr.msk.bf16.mxu1 %vm1513_vm1, %v1512_v0 }
  0x46   :  { %1314 = vmatmul.mubr.msk.bf16.vlgmr.msra.gmra.mxu0 %vm88_vm2, %v1394_v19  ;;  %1348 = vmatmul.mubr.msk.bf16.vlgmr.msra.gmra.mxu1 %vm88_vm2, %v1395_v20 }
  0x47   :  { %1317 = vmatprep.mubr.msk.bf16.mxu0 %vm1513_vm1, %v1512_v0  ;;  %1351 = vmatprep.mubr.msk.bf16.mxu1 %vm1513_vm1, %v1512_v0 }
  0x4e   :  { %1318 = vmatmul.mubr.msk.bf16.gmra.mxu0 %vm88_vm2, %v1396_v21  ;;  %1352 = vmatmul.mubr.msk.bf16.gmra.mxu1 %vm88_vm2, %v1397_v22 }
  0x4f   :  { %1321 = vmatprep.mubr.msk.bf16.mxu0 %vm1513_vm1, %v1512_v0  ;;  %1355 = vmatprep.mubr.msk.bf16.mxu1 %vm1513_vm1, %v1512_v0 }
  0x56   :  { %1322 = vmatmul.mubr.msk.bf16.gmra.mxu0 %vm88_vm2, %v1398_v23  ;;  %1356 = vmatmul.mubr.msk.bf16.gmra.mxu1 %vm88_vm2, %v1399_v24 }
  0x57   :  { %1325 = vmatprep.mubr.msk.bf16.mxu0 %vm1513_vm1, %v1512_v0  ;;  %1359 = vmatprep.mubr.msk.bf16.mxu1 %vm1513_vm1, %v1512_v0 }
  0x5e   :  { %1326 = vmatmul.mubr.msk.bf16.gmra.mxu0 %vm88_vm2, %v1400_v25  ;;  %1360 = vmatmul.mubr.msk.bf16.gmra.mxu1 %vm88_vm2, %v1401_v26 }
  0x5f   :  { %1329 = vmatprep.mubr.msk.bf16.mxu0 %vm1513_vm1, %v1512_v0  ;;  %1363 = vmatprep.mubr.msk.bf16.mxu1 %vm1513_vm1, %v1512_v0 }
  0x66   :  { %1330 = vmatmul.mubr.msk.bf16.gmra.mxu0 %vm88_vm2, %v1402_v27  ;;  %1364 = vmatmul.mubr.msk.bf16.gmra.mxu1 %vm88_vm2, %v1403_v28 }
  0x67   :  { %1333 = vmatprep.mubr.msk.bf16.mxu0 %vm1513_vm1, %v1512_v0  ;;  %1367 = vmatprep.mubr.msk.bf16.mxu1 %vm1513_vm1, %v1512_v0 }
  0x6e   :  { %1334 = vmatmul.mubr.msk.bf16.gmra.mxu0 %vm88_vm2, %v1404_v29  ;;  %1368 = vmatmul.mubr.msk.bf16.gmra.mxu1 %vm88_vm2, %v1405_v30 }
  0x6f   :  { %1337 = vmatprep.mubr.msk.bf16.mxu0 %vm1513_vm1, %v1512_v0  ;;  %1371 = vmatprep.mubr.msk.bf16.mxu1 %vm1513_vm1, %v1512_v0 }
  0x76   :  { %1338 = vmatmul.mubr.msk.bf16.gmra.mxu0 %vm88_vm2, %v1406_v31  ;;  %1372 = vmatmul.mubr.msk.bf16.gmra.mxu1 %vm88_vm2, %v1407_v32 }
  0xce   :  { %v148_v33 = vpop.f32.mrf.mxu0  ;;  %v369_v34 = vpop.f32.mrf.mxu1 }
  0xcf   :  { %v149_v50 = vadd.f32 %v1726_v47, %v148_v33  ;;  %v370_v53 = vadd.f32 %v1726_v47, %v369_v34 }
  0xd0   :  { %v1247_v35 = vpop.f32.mrf.mxu0  ;;  %v1281_v36 = vpop.f32.mrf.mxu1 }
  0xd1   :  { %v202_v58 = vmul.f32 %v149_v50, %v149_v50  ;;  %v423_v62 = vmul.f32 %v370_v53, %v370_v53 }
  0xd2   :  { %v151_v37 = vpop.f32.mrf.mxu0  ;;  %v372_v38 = vpop.f32.mrf.mxu1 }
  0xd3   :  { %v152_v54 = vadd.f32 %v1726_v47, %v151_v37  ;;  %v373_v57 = vadd.f32 %v1726_v47, %v372_v38  ;;  %v215_v5 = vsub.f32 %v202_v58, %v149_v50  ;;  %v436_v10 = vsub.f32 %v423_v62, %v370_v53 }
  0xd4   :  { %v1248_v39 = vpop.f32.mrf.mxu0  ;;  %v1282_v40 = vpop.f32.mrf.mxu1 }
  0xd5   :  { %v203_v0 = vmul.f32 %v152_v54, %v152_v54  ;;  %v424_v3 = vmul.f32 %v373_v57, %v373_v57  ;;  %v228_v19 = vmul.f32 0.5, %v215_v5  ;;  %v449_v24 = vmul.f32 0.5, %v436_v10 }
  0xd6   :  { %v156_v41 = vpop.f32.mrf.mxu0  ;;  %v377_v42 = vpop.f32.mrf.mxu1 }
  0xd7   :  { %v157_v59 = vadd.f32 %v1726_v47, %v156_v41  ;;  %v378_v63 = vadd.f32 %v1726_v47, %v377_v42  ;;  %v216_v13 = vsub.f32 %v203_v0, %v152_v54  ;;  %v437_v17 = vsub.f32 %v424_v3, %v373_v57 }
  0xd8   :  { %v1251_v43 = vpop.f32.mrf.mxu0  ;;  %v1285_v44 = vpop.f32.mrf.mxu1  ;;  %1408 = vtanh.f32 %v228_v19 }
  0xd9   :  { %v204_v6 = vmul.f32 %v157_v59, %v157_v59  ;;  %v425_v11 = vmul.f32 %v378_v63, %v378_v63  ;;  %v229_v27 = vmul.f32 0.5, %v216_v13  ;;  %v450_v32 = vmul.f32 0.5, %v437_v17 }
  0xda   :  { %v159_v45 = vpop.f32.mrf.mxu0  ;;  %v380_v46 = vpop.f32.mrf.mxu1  ;;  %1410 = vtanh.f32 %v449_v24 }
  0xdb   :  { %v160_v4 = vadd.f32 %v1726_v47, %v159_v45  ;;  %v381_v7 = vadd.f32 %v1726_v47, %v380_v46  ;;  %v217_v20 = vsub.f32 %v204_v6, %v157_v59  ;;  %v438_v25 = vsub.f32 %v425_v11, %v378_v63 }
  0xdc   :  { %v1252_v48 = vpop.f32.mrf.mxu0  ;;  %v1286_v49 = vpop.f32.mrf.mxu1  ;;  %1412 = vtanh.f32 %v229_v27 }
  0xdd   :  { %v205_v18 = vmul.f32 %v160_v4, %v160_v4  ;;  %v426_v21 = vmul.f32 %v381_v7, %v381_v7  ;;  %v230_v35 = vmul.f32 0.5, %v217_v20  ;;  %v451_v39 = vmul.f32 0.5, %v438_v25 }
  0xde   :  { %v164_v51 = vpop.f32.mrf.mxu0  ;;  %v385_v52 = vpop.f32.mrf.mxu1  ;;  %1414 = vtanh.f32 %v450_v32 }
  0xdf   :  { %v165_v12 = vadd.f32 %v1726_v47, %v164_v51  ;;  %v386_v14 = vadd.f32 %v1726_v47, %v385_v52  ;;  %v218_v33 = vsub.f32 %v205_v18, %v160_v4  ;;  %v439_v36 = vsub.f32 %v426_v21, %v381_v7 }
  0xe0   :  { %v1255_v55 = vpop.f32.mrf.mxu0  ;;  %v1289_v56 = vpop.f32.mrf.mxu1  ;;  %1416 = vtanh.f32 %v230_v35 }
  0xe1   :  { %v206_v26 = vmul.f32 %v165_v12, %v165_v12  ;;  %v427_v28 = vmul.f32 %v386_v14, %v386_v14  ;;  %v231_v45 = vmul.f32 0.5, %v218_v33  ;;  %v452_v48 = vmul.f32 0.5, %v439_v36 }
  0xe2   :  { %v167_v60 = vpop.f32.mrf.mxu0  ;;  %v388_v61 = vpop.f32.mrf.mxu1  ;;  %1418 = vtanh.f32 %v451_v39 }
  0xe3   :  { %v168_v29 = vadd.f32 %v1726_v47, %v167_v60  ;;  %v389_v34 = vadd.f32 %v1726_v47, %v388_v61  ;;  %v219_v40 = vsub.f32 %v206_v26, %v165_v12  ;;  %v440_v41 = vsub.f32 %v427_v28, %v386_v14 }
  0xe4   :  { %v1256_v1 = vpop.f32.mrf.mxu0  ;;  %v1290_v2 = vpop.f32.mrf.mxu1  ;;  %1420 = vtanh.f32 %v231_v45 }
  0xe5   :  { %v207_v42 = vmul.f32 %v168_v29, %v168_v29  ;;  %v428_v46 = vmul.f32 %v389_v34, %v389_v34  ;;  %v232_v51 = vmul.f32 0.5, %v219_v40  ;;  %v453_v52 = vmul.f32 0.5, %v440_v41 }
  0xe6   :  { %v172_v8 = vpop.f32.mrf.mxu0  ;;  %v393_v9 = vpop.f32.mrf.mxu1  ;;  %1422 = vtanh.f32 %v452_v48 }
  0xe7   :  { %v220_v53 = vsub.f32 %v207_v42, %v168_v29  ;;  %v173_v54 = vadd.f32 %v1726_v47, %v172_v8  ;;  %v441_v57 = vsub.f32 %v428_v46, %v389_v34  ;;  %v394_v58 = vadd.f32 %v1726_v47, %v393_v9  ;;  %v1409_v8 = vpop.eup %1408 }
  0xe8   :  { %v1259_v15 = vpop.f32.mrf.mxu0  ;;  %v1293_v16 = vpop.f32.mrf.mxu1  ;;  %1424 = vtanh.f32 %v232_v51 }
  0xe9   :  { %1426 = vtanh.f32 %v453_v52  ;;  %v233_v62 = vmul.f32 0.5, %v220_v53  ;;  %v208_v63 = vmul.f32 %v173_v54, %v173_v54  ;;  %v454_v2 = vmul.f32 0.5, %v441_v57  ;;  %v1411_v10 = vpop.eup %1410 }
  0xea   :  { %v175_v22 = vpop.f32.mrf.mxu0  ;;  %v396_v23 = vpop.f32.mrf.mxu1  ;;  %v429_v3 = vmul.f32 %v394_v58, %v394_v58  ;;  %v1760_v24 = vmul.f32 0.5, %v1411_v10 }
  0xeb   :  { %v176_v61 = vadd.f32 %v1726_v47, %v175_v22  ;;  %v397_v4 = vadd.f32 %v1726_v47, %v396_v23  ;;  %1428 = vtanh.f32 %v233_v62  ;;  %v221_v11 = vsub.f32 %v208_v63, %v173_v54  ;;  %v1413_v15 = vpop.eup %1412 }
  0xec   :  { %v1260_v30 = vpop.f32.mrf.mxu0  ;;  %v1294_v31 = vpop.f32.mrf.mxu1  ;;  %1430 = vtanh.f32 %v454_v2  ;;  %v442_v16 = vsub.f32 %v429_v3, %v394_v58  ;;  %v1758_v23 = vmul.f32 0.5, %v1409_v8  ;;  %v1762_v27 = vmul.f32 0.5, %v1413_v15 }
  0xed   :  { %v209_v9 = vmul.f32 %v176_v61, %v176_v61  ;;  %v430_v17 = vmul.f32 %v397_v4, %v397_v4  ;;  %v1415_v18 = vpop.eup %1414  ;;  %v234_v28 = vmul.f32 0.5, %v221_v11 }
  0xee   :  { %v180_v37 = vpop.f32.mrf.mxu0  ;;  %v401_v38 = vpop.f32.mrf.mxu1  ;;  %v1765_v33 = vmul.f32 0.5, %v1415_v18  ;;  %v455_v34 = vmul.f32 0.5, %v442_v16  ;;  %v488_v46 = vmax.f32 %v1758_v23, %v1760_v24 }
  0xef   :  { %v181_v5 = vadd.f32 %v1726_v47, %v180_v37  ;;  %v402_v12 = vadd.f32 %v1726_v47, %v401_v38  ;;  %v1417_v22 = vpop.eup %1416  ;;  %v222_v25 = vsub.f32 %v209_v9, %v176_v61  ;;  %v443_v35 = vsub.f32 %v430_v17, %v397_v4 }
  0xf0   :  { %v1263_v43 = vpop.f32.mrf.mxu0  ;;  %v1297_v44 = vpop.f32.mrf.mxu1  ;;  %v1768_v42 = vmul.f32 0.5, %v1417_v22  ;;  %1432 = vtanh.f32 %v234_v28  ;;  %v489_v53 = vmax.f32 %v1762_v27, %v1765_v33 }
  0xf1   :  { %v210_v19 = vmul.f32 %v181_v5, %v181_v5  ;;  %v1419_v26 = vpop.eup %1418  ;;  %v431_v29 = vmul.f32 %v402_v12, %v402_v12  ;;  %v235_v44 = vmul.f32 0.5, %v222_v25  ;;  %1434 = vtanh.f32 %v455_v34 }
  0xf2   :  { %v183_v49 = vpop.f32.mrf.mxu0  ;;  %v404_v50 = vpop.f32.mrf.mxu1  ;;  %v1770_v43 = vmul.f32 0.5, %v1419_v26  ;;  %v456_v54 = vmul.f32 0.5, %v443_v35 }
  0xf3   :  { %v184_v30 = vadd.f32 %v1726_v47, %v183_v49  ;;  %v405_v36 = vadd.f32 %v1726_v47, %v404_v50  ;;  %v1421_v37 = vpop.eup %1420  ;;  %v223_v38 = vsub.f32 %v210_v19, %v181_v5  ;;  %v444_v48 = vsub.f32 %v431_v29, %v402_v12 }
  0xf4   :  { %v1264_v55 = vpop.f32.mrf.mxu0  ;;  %v1298_v56 = vpop.f32.mrf.mxu1  ;;  %1436 = vtanh.f32 %v235_v44 }
  0xf5   :  { %v1423_v41 = vpop.eup %1422  ;;  %v211_v49 = vmul.f32 %v184_v30, %v184_v30  ;;  %v432_v55 = vmul.f32 %v405_v36, %v405_v36  ;;  %v1776_v56 = vmul.f32 0.5, %v1421_v37  ;;  %v236_v58 = vmul.f32 0.5, %v223_v38 }
  0xf6   :  { %v1742_v59 = vpop.f32.mrf.mxu0  ;;  %v1744_v60 = vpop.f32.mrf.mxu1  ;;  %v1778_v57 = vmul.f32 0.5, %v1423_v41  ;;  %v457_v5 = vmul.f32 0.5, %v444_v48  ;;  %1438 = vtanh.f32 %v456_v54 }
  0xf7   :  { %v1425_v45 = vpop.eup %1424  ;;  %v189_v61 = vadd.f32 %v1726_v47, %v1742_v59  ;;  %v224_v8 = vsub.f32 %v211_v49, %v184_v30  ;;  %v445_v59 = vsub.f32 %v432_v55, %v405_v36  ;;  %1440 = vtanh.f32 %v236_v58 }
  0xf8   :  { %v1267_v0 = vpop.f32.mrf.mxu0  ;;  %v1301_v1 = vpop.f32.mrf.mxu1  ;;  %v1786_v3 = vmul.f32 0.5, %v1425_v45  ;;  %v491_v15 = vmax.f32 %v1776_v56, %v1778_v57  ;;  %v1794_v17 = vadd.f32 %v1726_v47, %v1744_v60  ;;  %1442 = vtanh.f32 %v457_v5 }
  0xf9   :  { %v1427_v50 = vpop.eup %1426  ;;  %v490_v0 = vmax.f32 %v1768_v42, %v1770_v43  ;;  %v212_v16 = vmul.f32 %v189_v61, %v189_v61  ;;  %v458_v60 = vmul.f32 0.5, %v445_v59 }
  0xfa   :  { %v1749_v6 = vpop.f32.mrf.mxu0  ;;  %v1751_v7 = vpop.f32.mrf.mxu1  ;;  %v1788_v4 = vmul.f32 0.5, %v1427_v50 }
  0xfb   :  { %v1429_v11 = vpop.eup %1428  ;;  %v225_v38 = vsub.f32 %v212_v16, %v189_v61  ;;  %v1814_v50 = vadd.f32 %v1726_v47, %v1751_v7 }
  0xfc   :  { %v1268_v13 = vpop.f32.mrf.mxu0  ;;  %v1302_v14 = vpop.f32.mrf.mxu1  ;;  %v492_v29 = vmax.f32 %v1786_v3, %v1788_v4  ;;  %v1800_v30 = vmul.f32 0.5, %v1429_v11 }
  0xfd   :  { %v1431_v14 = vpop.eup %1430  ;;  %v434_v16 = vmul.f32 %v1814_v50, %v1814_v50 }
  0xfe   :  { %v1754_v20 = vpop.f32.mrf.mxu0  ;;  %v1756_v21 = vpop.f32.mrf.mxu1  ;;  %v1802_v35 = vmul.f32 0.5, %v1431_v14 }
  0xff   :  { %v1433_v61 = vpop.eup %1432 }
 0x100   :  { %v1271_v31 = vpop.f32.mrf.mxu0  ;;  %v1305_v32 = vpop.f32.mrf.mxu1 }
 0x101   :  { %v237_v31 = vmul.f32 0.5, %v224_v8  ;;  %v1435_v5 = vpop.eup %1434  ;;  %v238_v8 = vmul.f32 0.5, %v225_v38 }
 0x102   :  { %v199_v39 = vpop.f32.mrf.mxu0  ;;  %v420_v40 = vpop.f32.mrf.mxu1 }
 0x103   :  { %v433_v39 = vmul.f32 %v1794_v17, %v1794_v17 }
 0x104   :  { %v1272_v51 = vpop.f32.mrf.mxu0  ;;  %v1306_v52 = vpop.f32.mrf.mxu1 }
 0x105   :  { %v1810_v52 = vadd.f32 %v1726_v47, %v1749_v6 }
 0x106   :  { %v603_v62 = vpop.f32.mrf.mxu0  ;;  %v837_v63 = vpop.f32.mrf.mxu1 }
 0x107   :  { %v604_v1 = vadd.f32 %v1726_v47, %v603_v62  ;;  %v838_v2 = vadd.f32 %v1726_v47, %v837_v63  ;;  %v493_v62 = vmax.f32 %v1800_v30, %v1802_v35  ;;  %v213_v14 = vmul.f32 %v1810_v52, %v1810_v52 }
 0x108   :  { %v1315_v9 = vpop.f32.mrf.mxu0  ;;  %v1349_v10 = vpop.f32.mrf.mxu1 }
 0x109   :  { %v657_v12 = vmul.f32 %v604_v1, %v604_v1  ;;  %v891_v13 = vmul.f32 %v838_v2, %v838_v2  ;;  %v446_v9 = vsub.f32 %v433_v39, %v1794_v17 }
 0x10a   :  { %v606_v18 = vpop.f32.mrf.mxu0  ;;  %v840_v19 = vpop.f32.mrf.mxu1 }
 0x10b   :  { %v670_v22 = vsub.f32 %v657_v12, %v604_v1  ;;  %v904_v25 = vsub.f32 %v891_v13, %v838_v2  ;;  %v607_v26 = vadd.f32 %v1726_v47, %v606_v18  ;;  %v841_v28 = vadd.f32 %v1726_v47, %v840_v19  ;;  %v1437_v13 = vpop.eup %1436 }
 0x10c   :  { %v1316_v32 = vpop.f32.mrf.mxu0  ;;  %v1350_v34 = vpop.f32.mrf.mxu1 }
 0x10d   :  { %v683_v36 = vmul.f32 0.5, %v670_v22  ;;  %v658_v37 = vmul.f32 %v607_v26, %v607_v26  ;;  %v917_v40 = vmul.f32 0.5, %v904_v25  ;;  %v892_v41 = vmul.f32 %v841_v28, %v841_v28 }
 0x10e   :  { %v611_v44 = vpop.f32.mrf.mxu0  ;;  %v845_v45 = vpop.f32.mrf.mxu1  ;;  %v1827_v32 = vmul.f32 0.5, %v1435_v5  ;;  %v459_v34 = vmul.f32 0.5, %v446_v9 }
 0x10f   :  { %1444 = vtanh.f32 %v683_v36  ;;  %v671_v48 = vsub.f32 %v658_v37, %v607_v26  ;;  %v612_v49 = vadd.f32 %v1726_v47, %v611_v44  ;;  %v846_v51 = vadd.f32 %v1726_v47, %v845_v45 }
 0x110   :  { %1446 = vtanh.f32 %v237_v31  ;;  %v905_v54 = vsub.f32 %v892_v41, %v841_v28  ;;  %v1319_v55 = vpop.f32.mrf.mxu0  ;;  %v1353_v58 = vpop.f32.mrf.mxu1  ;;  %v1825_v31 = vmul.f32 0.5, %v1433_v61  ;;  %v226_v44 = vsub.f32 %v213_v14, %v1810_v52 }
 0x111   :  { %v684_v63 = vmul.f32 0.5, %v671_v48  ;;  %v659_v1 = vmul.f32 %v612_v49, %v612_v49  ;;  %v893_v2 = vmul.f32 %v846_v51, %v846_v51  ;;  %1448 = vtanh.f32 %v917_v40  ;;  %v1439_v28 = vpop.eup %1438 }
 0x112   :  { %v918_v6 = vmul.f32 0.5, %v905_v54  ;;  %v614_v10 = vpop.f32.mrf.mxu0  ;;  %v848_v11 = vpop.f32.mrf.mxu1  ;;  %v447_v45 = vsub.f32 %v434_v16, %v1814_v50 }
 0x113   :  { %1450 = vtanh.f32 %v684_v63  ;;  %v672_v7 = vsub.f32 %v659_v1, %v612_v49  ;;  %v906_v59 = vsub.f32 %v893_v2, %v846_v51  ;;  %v615_v12 = vadd.f32 %v1726_v47, %v614_v10  ;;  %v1829_v39 = vpop.eup %1440 }
 0x114   :  { %1452 = vtanh.f32 %v918_v6  ;;  %v849_v18 = vadd.f32 %v1726_v47, %v848_v11  ;;  %v1320_v17 = vpop.f32.mrf.mxu0  ;;  %v1354_v19 = vpop.f32.mrf.mxu1  ;;  %v494_v63 = vmax.f32 %v1825_v31, %v1827_v32  ;;  %v1841_v1 = vadd.f32 %v1726_v47, %v1754_v20 }
 0x115   :  { %1454 = vtanh.f32 %v458_v60  ;;  %v685_v22 = vmul.f32 0.5, %v672_v7  ;;  %v919_v25 = vmul.f32 0.5, %v906_v59  ;;  %v660_v26 = vmul.f32 %v615_v12, %v615_v12  ;;  %v1835_v54 = vpop.eup %1442 }
 0x116   :  { %v894_v36 = vmul.f32 %v849_v18, %v849_v18  ;;  %v619_v37 = vpop.f32.mrf.mxu0  ;;  %v853_v38 = vpop.f32.mrf.mxu1  ;;  %v1844_v10 = vmul.f32 0.5, %v1437_v13  ;;  %v1848_v11 = vadd.f32 %v1726_v47, %v1756_v21  ;;  %v239_v19 = vmul.f32 0.5, %v226_v44 }
 0x117   :  { %1456 = vtanh.f32 %v685_v22  ;;  %v673_v40 = vsub.f32 %v660_v26, %v615_v12  ;;  %v620_v41 = vadd.f32 %v1726_v47, %v619_v37  ;;  %v854_v60 = vadd.f32 %v1726_v47, %v853_v38 }
 0x118   :  { %1458 = vtanh.f32 %v238_v8  ;;  %v907_v48 = vsub.f32 %v894_v36, %v849_v18  ;;  %v1323_v49 = vpop.f32.mrf.mxu0  ;;  %v1357_v51 = vpop.f32.mrf.mxu1  ;;  %v1853_v22 = vmul.f32 0.5, %v447_v45  ;;  %v1857_v13 = vmul.f32 %v1841_v1, %v1841_v1 }
 0x119   :  { %1460 = vtanh.f32 %v919_v25  ;;  %v686_v55 = vmul.f32 0.5, %v673_v40  ;;  %v661_v58 = vmul.f32 %v620_v41, %v620_v41  ;;  %v895_v61 = vmul.f32 %v854_v60, %v854_v60 }
 0x11a   :  { %1462 = vtanh.f32 %v459_v34  ;;  %v920_v52 = vmul.f32 0.5, %v907_v48  ;;  %v622_v2 = vpop.f32.mrf.mxu0  ;;  %v856_v50 = vpop.f32.mrf.mxu1  ;;  %v1859_v36 = vmul.f32 0.5, %v1439_v28  ;;  %v227_v33 = vsub.f32 %v1857_v13, %v1841_v1 }
 0x11b   :  { %1464 = vtanh.f32 %v686_v55  ;;  %v674_v5 = vsub.f32 %v661_v58, %v620_v41  ;;  %v908_v8 = vsub.f32 %v895_v61, %v854_v60  ;;  %v623_v9 = vadd.f32 %v1726_v47, %v622_v2 }
 0x11c   :  { %v1445_v6 = vpop.eup %1444  ;;  %1466 = vtanh.f32 %v920_v52  ;;  %v857_v7 = vadd.f32 %v1726_v47, %v856_v50  ;;  %v1324_v20 = vpop.f32.mrf.mxu0  ;;  %v1864_v41 = vmul.f32 %v1848_v11, %v1848_v11  ;;  %v240_v56 = vmul.f32 0.5, %v227_v33 }
 0x11d   :  { %v1358_v59 = vpop.f32.mrf.mxu1  ;;  %v1851_v12 = vpop.eup %1446  ;;  %v709_v14 = vmul.f32 0.5, %v1445_v6  ;;  %v687_v16 = vmul.f32 0.5, %v674_v5  ;;  %v921_v18 = vmul.f32 0.5, %v908_v8  ;;  %v662_v17 = vmul.f32 %v623_v9, %v623_v9 }
 0x11e   :  { %v896_v21 = vmul.f32 %v857_v7, %v857_v7  ;;  %v627_v25 = vpop.f32.mrf.mxu0  ;;  %v1449_v34 = vpop.eup %1448  ;;  %v495_v30 = vmax.f32 %v1844_v10, %v1859_v36  ;;  %v262_v35 = vmul.f32 0.5, %v1829_v39  ;;  %v263_v32 = vmul.f32 0.5, %v1851_v12 }
 0x11f   :  { %v861_v26 = vpop.f32.mrf.mxu1  ;;  %1468 = vtanh.f32 %v687_v16  ;;  %v675_v37 = vsub.f32 %v662_v17, %v623_v9  ;;  %v628_v38 = vadd.f32 %v1726_v47, %v627_v25  ;;  %v722_v60 = vmax.f32 %v488_v46, %v709_v14 }
 0x120   :  { %v1451_v40 = vpop.eup %1450  ;;  %v909_v44 = vsub.f32 %v896_v21, %v857_v7  ;;  %v862_v45 = vadd.f32 %v1726_v47, %v861_v26  ;;  %v1327_v48 = vpop.f32.mrf.mxu0  ;;  %1470 = vtanh.f32 %v921_v18  ;;  %v943_v52 = vmul.f32 0.5, %v1449_v34 }
 0x121   :  { %v1361_v49 = vpop.f32.mrf.mxu1  ;;  %v1453_v28 = vpop.eup %1452  ;;  %v710_v51 = vmul.f32 0.5, %v1451_v40  ;;  %v688_v55 = vmul.f32 0.5, %v675_v37  ;;  %v663_v58 = vmul.f32 %v628_v38, %v628_v38 }
 0x122   :  { %v1870_v61 = vpop.eup %1454  ;;  %v944_v2 = vmul.f32 0.5, %v1453_v28  ;;  %v922_v50 = vmul.f32 0.5, %v909_v44  ;;  %v897_v5 = vmul.f32 %v862_v45, %v862_v45  ;;  %v630_v8 = vpop.f32.mrf.mxu0  ;;  %v956_v7 = vmax.f32 %v722_v60, %v943_v52 }
 0x123   :  { %v864_v9 = vpop.f32.mrf.mxu1  ;;  %v723_v23 = vmax.f32 %v489_v53, %v710_v51  ;;  %1472 = vtanh.f32 %v688_v55  ;;  %v676_v24 = vsub.f32 %v663_v58, %v628_v38  ;;  %v631_v46 = vadd.f32 %v1726_v47, %v630_v8 }
 0x124   :  { %v1457_v6 = vpop.eup %1456  ;;  %1474 = vtanh.f32 %v922_v50  ;;  %v910_v20 = vsub.f32 %v897_v5, %v862_v45  ;;  %v865_v59 = vadd.f32 %v1726_v47, %v864_v9  ;;  %v1328_v14 = vpop.f32.mrf.mxu0  ;;  %v448_v60 = vsub.f32 %v1864_v41, %v1848_v11 }
 0x125   :  { %v1362_v16 = vpop.f32.mrf.mxu1  ;;  %v1877_v18 = vpop.eup %1458  ;;  %v957_v17 = vmax.f32 %v723_v23, %v944_v2  ;;  %v711_v21 = vmul.f32 0.5, %v1457_v6  ;;  %v689_v25 = vmul.f32 0.5, %v676_v24  ;;  %v664_v26 = vmul.f32 %v631_v46, %v631_v46 }
 0x126   :  { %v1461_v27 = vpop.eup %1460  ;;  %1476 = vtanh.f32 %v239_v19  ;;  %v923_v53 = vmul.f32 0.5, %v910_v20  ;;  %v898_v34 = vmul.f32 %v865_v59, %v865_v59  ;;  %v635_v37 = vpop.f32.mrf.mxu0 }
 0x127   :  { %v869_v38 = vpop.f32.mrf.mxu1  ;;  %v1881_v40 = vpop.eup %1462  ;;  %v1167_v44 = vpack.c.bf16 %v957_v17, %v956_v7  ;;  %1478 = vtanh.f32 %v689_v25  ;;  %v677_v45 = vsub.f32 %v664_v26, %v631_v46  ;;  %v724_v19 = vmax.f32 %v490_v0, %v711_v21 }
 0x128   :  { %v1465_v48 = vpop.eup %1464  ;;  %v911_v49 = vsub.f32 %v898_v34, %v865_v59  ;;  %v636_v1 = vadd.f32 %v1726_v47, %v635_v37  ;;  %v870_v13 = vadd.f32 %v1726_v47, %v869_v38  ;;  %v1331_v28 = vpop.f32.mrf.mxu0  ;;  %v945_v11 = vmul.f32 0.5, %v1461_v27 }
 0x129   :  { %v1365_v51 = vpop.f32.mrf.mxu1  ;;  %v1467_v55 = vpop.eup %1466  ;;  %1168 = vst [vmem:[%s1946_s3] sm:$0xff] %v1167_v44   ;;  %v712_v41 = vmul.f32 0.5, %v1465_v48  ;;  %1480 = vtanh.f32 %v923_v53  ;;  %v690_v58 = vmul.f32 0.5, %v677_v45  ;;  %v461_v27 = vmul.f32 0.5, %v448_v60 }
 0x12a   :  { %v946_v52 = vmul.f32 0.5, %v1467_v55  ;;  %v924_v2 = vmul.f32 0.5, %v911_v49  ;;  %v665_v42 = vmul.f32 %v636_v1, %v636_v1  ;;  %v899_v43 = vmul.f32 %v870_v13, %v870_v13  ;;  %v638_v0 = vpop.f32.mrf.mxu0 }
 0x12b   :  { %v872_v50 = vpop.f32.mrf.mxu1  ;;  %v725_v5 = vmax.f32 %v491_v15, %v712_v41  ;;  %1482 = vtanh.f32 %v690_v58  ;;  %v639_v8 = vadd.f32 %v1726_v47, %v638_v0  ;;  %v958_v24 = vmax.f32 %v724_v19, %v945_v11 }
 0x12c   :  { %v873_v9 = vadd.f32 %v1726_v47, %v872_v50  ;;  %v1469_v23 = vpop.eup %1468  ;;  %1484 = vtanh.f32 %v924_v2  ;;  %v678_v46 = vsub.f32 %v665_v42, %v636_v1  ;;  %v912_v6 = vsub.f32 %v899_v43, %v870_v13  ;;  %v1332_v7 = vpop.f32.mrf.mxu0 }
 0x12d   :  { %v1366_v20 = vpop.f32.mrf.mxu1  ;;  %v959_v59 = vmax.f32 %v725_v5, %v946_v52  ;;  %v713_v14 = vmul.f32 0.5, %v1469_v23  ;;  %v666_v16 = vmul.f32 %v639_v8, %v639_v8  ;;  %v1471_v21 = vpop.eup %1470  ;;  %1486 = vtanh.f32 %v1853_v22 }
 0x12e   :  { %v900_v17 = vmul.f32 %v873_v9, %v873_v9  ;;  %v691_v57 = vmul.f32 0.5, %v678_v46  ;;  %v925_v15 = vmul.f32 0.5, %v912_v6  ;;  %v643_v25 = vpop.f32.mrf.mxu0  ;;  %v947_v60 = vmul.f32 0.5, %v1471_v21 }
 0x12f   :  { %v877_v26 = vpop.f32.mrf.mxu1  ;;  %v1172_v53 = vpack.c.bf16 %v959_v59, %v958_v24  ;;  %v679_v34 = vsub.f32 %v666_v16, %v639_v8  ;;  %v726_v44 = vmax.f32 %v492_v29, %v713_v14  ;;  %v644_v45 = vadd.f32 %v1726_v47, %v643_v25 }
 0x130   :  { %v913_v37 = vsub.f32 %v900_v17, %v873_v9  ;;  %v1473_v38 = vpop.eup %1472  ;;  %1488 = vtanh.f32 %v691_v57  ;;  %v878_v48 = vadd.f32 %v1726_v47, %v877_v26  ;;  %v1335_v22 = vpop.f32.mrf.mxu0  ;;  %v483_v17 = vmul.f32 0.5, %v1835_v54 }
 0x131   :  { %v1369_v33 = vpop.f32.mrf.mxu1  ;;  %v1475_v19 = vpop.eup %1474  ;;  %1194 = vst [vmem:[%s1946_s3 + $0x8] sm:$0xff] %v1172_v53   ;;  %v714_v49 = vmul.f32 0.5, %v1473_v38  ;;  %1490 = vtanh.f32 %v925_v15  ;;  %v692_v1 = vmul.f32 0.5, %v679_v34  ;;  %v667_v3 = vmul.f32 %v644_v45, %v644_v45 }
 0x132   :  { %v948_v13 = vmul.f32 0.5, %v1475_v19  ;;  %v926_v28 = vmul.f32 0.5, %v913_v37  ;;  %v901_v4 = vmul.f32 %v878_v48, %v878_v48  ;;  %v646_v29 = vpop.f32.mrf.mxu0  ;;  %v960_v2 = vmax.f32 %v726_v44, %v947_v60 }
 0x133   :  { %v880_v51 = vpop.f32.mrf.mxu1  ;;  %v1907_v55 = vpop.eup %1476  ;;  %v727_v11 = vmax.f32 %v493_v62, %v714_v49  ;;  %1492 = vtanh.f32 %v692_v1  ;;  %v647_v41 = vadd.f32 %v1726_v47, %v646_v29  ;;  %v680_v42 = vsub.f32 %v667_v3, %v644_v45 }
 0x134   :  { %v881_v58 = vadd.f32 %v1726_v47, %v880_v51  ;;  %v1479_v52 = vpop.eup %1478  ;;  %1494 = vtanh.f32 %v926_v28  ;;  %v914_v43 = vsub.f32 %v901_v4, %v878_v48  ;;  %v1336_v0 = vpop.f32.mrf.mxu0  ;;  %v496_v3 = vmax.f32 %v262_v35, %v483_v17 }
 0x135   :  { %v1370_v50 = vpop.f32.mrf.mxu1  ;;  %v961_v5 = vmax.f32 %v727_v11, %v948_v13  ;;  %v715_v8 = vmul.f32 0.5, %v1479_v52  ;;  %v668_v9 = vmul.f32 %v647_v41, %v647_v41  ;;  %v693_v62 = vmul.f32 0.5, %v680_v42 }
 0x136   :  { %v902_v23 = vmul.f32 %v881_v58, %v881_v58  ;;  %v1481_v24 = vpop.eup %1480  ;;  %v927_v46 = vmul.f32 0.5, %v914_v43  ;;  %v651_v6 = vpop.f32.mrf.mxu0  ;;  %1496 = vtanh.f32 %v240_v56  ;;  %v265_v50 = vmul.f32 0.5, %v1907_v55 }
 0x137   :  { %v885_v7 = vpop.f32.mrf.mxu1  ;;  %v1177_v20 = vpack.c.bf16 %v961_v5, %v960_v2  ;;  %v681_v59 = vsub.f32 %v668_v9, %v647_v41  ;;  %1498 = vtanh.f32 %v693_v62  ;;  %v652_v21 = vadd.f32 %v1726_v47, %v651_v6 }
 0x138   :  { %v915_v14 = vsub.f32 %v902_v23, %v881_v58  ;;  %v1483_v16 = vpop.eup %1482  ;;  %v886_v57 = vadd.f32 %v1726_v47, %v885_v7  ;;  %v1339_v15 = vpop.f32.mrf.mxu0  ;;  %1500 = vtanh.f32 %v461_v27  ;;  %v728_v39 = vmax.f32 %v494_v63, %v715_v8 }
 0x139   :  { %v1373_v10 = vpop.f32.mrf.mxu1  ;;  %v1485_v36 = vpop.eup %1484  ;;  %1195 = vst [vmem:[%s1946_s3 + $0x10] sm:$0xff] %v1177_v20   ;;  %v716_v56 = vmul.f32 0.5, %v1483_v16  ;;  %v694_v25 = vmul.f32 0.5, %v681_v59  ;;  %1502 = vtanh.f32 %v927_v46  ;;  %v669_v26 = vmul.f32 %v652_v21, %v652_v21 }
 0x13a   :  { %v928_v54 = vmul.f32 0.5, %v915_v14  ;;  %v903_v53 = vmul.f32 %v886_v57, %v886_v57  ;;  %v654_v34 = vpop.f32.mrf.mxu0  ;;  %v1487_v37 = vpop.eup %1486  ;;  %v949_v38 = vmul.f32 0.5, %v1481_v24  ;;  %v950_v27 = vmul.f32 0.5, %v1485_v36 }
 0x13b   :  { %v888_v47 = vpop.f32.mrf.mxu1  ;;  %v729_v44 = vmax.f32 %v495_v30, %v716_v56  ;;  %1504 = vtanh.f32 %v694_v25  ;;  %v682_v45 = vsub.f32 %v669_v26, %v652_v21  ;;  %v484_v63 = vmul.f32 0.5, %v1870_v61 }
 0x13c   :  { %1506 = vtanh.f32 %v928_v54  ;;  %v916_v48 = vsub.f32 %v903_v53, %v886_v57  ;;  %v1340_v22 = vpop.f32.mrf.mxu0  ;;  %v962_v19 = vmax.f32 %v728_v39, %v949_v38  ;;  %v264_v61 = vmul.f32 0.5, %v1877_v18 }
 0x13d   :  { %v1374_v33 = vpop.f32.mrf.mxu1  ;;  %v1489_v31 = vpop.eup %1488  ;;  %v963_v60 = vmax.f32 %v729_v44, %v950_v27  ;;  %v695_v13 = vmul.f32 0.5, %v682_v45  ;;  %v497_v11 = vmax.f32 %v263_v32, %v484_v63  ;;  %v485_v58 = vmul.f32 0.5, %v1881_v40 }
 0x13e   :  { %v1491_v49 = vpop.eup %1490  ;;  %v717_v1 = vmul.f32 0.5, %v1489_v31  ;;  %v929_v28 = vmul.f32 0.5, %v916_v48  ;;  %v486_v5 = vmul.f32 0.5, %v1487_v37 }
 0x13f   :  { %v1182_v4 = vpack.c.bf16 %v963_v60, %v962_v19  ;;  %1508 = vtanh.f32 %v695_v13  ;;  %v951_v52 = vmul.f32 0.5, %v1491_v49  ;;  %v498_v35 = vmax.f32 %v264_v61, %v485_v58 }
 0x140   :  { %v1493_v29 = vpop.eup %1492  ;;  %v730_v41 = vmax.f32 %v496_v3, %v717_v1  ;;  %1510 = vtanh.f32 %v929_v28  ;;  %v499_v18 = vmax.f32 %v265_v50, %v486_v5 }
 0x141   :  { %v1495_v51 = vpop.eup %1494  ;;  %1196 = vst [vmem:[%s1946_s3 + $0x18] sm:$0xff] %v1182_v4   ;;  %v718_v12 = vmul.f32 0.5, %v1493_v29 }
 0x142   :  { %v952_v42 = vmul.f32 0.5, %v1495_v51  ;;  %v964_v8 = vmax.f32 %v730_v41, %v951_v52 }
 0x143   :  { %v731_v2 = vmax.f32 %v497_v11, %v718_v12  ;;  %v1497_v43 = vpop.eup %1496 }
 0x144   :  { %v1499_v0 = vpop.eup %1498  ;;  %v266_v20 = vmul.f32 0.5, %v1497_v43 }
 0x145   :  { %v965_v9 = vmax.f32 %v731_v2, %v952_v42  ;;  %v1501_v23 = vpop.eup %1500  ;;  %v719_v24 = vmul.f32 0.5, %v1499_v0 }
 0x146   :  { %v1503_v30 = vpop.eup %1502  ;;  %v487_v59 = vmul.f32 0.5, %v1501_v23 }
 0x147   :  { %v1187_v62 = vpack.c.bf16 %v965_v9, %v964_v8  ;;  %v732_v40 = vmax.f32 %v498_v35, %v719_v24  ;;  %v953_v55 = vmul.f32 0.5, %v1503_v30 }
 0x148   :  { %v1505_v46 = vpop.eup %1504  ;;  %v500_v10 = vmax.f32 %v266_v20, %v487_v59 }
 0x149   :  { %v1507_v6 = vpop.eup %1506  ;;  %1197 = vst [vmem:[%s1946_s3 + $0x20] sm:$0xff] %v1187_v62   ;;  %v720_v7 = vmul.f32 0.5, %v1505_v46  ;;  %v966_v21 = vmax.f32 %v732_v40, %v953_v55 }
 0x14a   :  { %v954_v16 = vmul.f32 0.5, %v1507_v6 }
 0x14b   :  { %v733_v14 = vmax.f32 %v499_v18, %v720_v7 }
 0x14c   :  { %v1509_v17 = vpop.eup %1508 }
 0x14d   :  { %v967_v57 = vmax.f32 %v733_v14, %v954_v16  ;;  %v1511_v15 = vpop.eup %1510  ;;  %v721_v36 = vmul.f32 0.5, %v1509_v17 }
 0x14e   :  { %v955_v25 = vmul.f32 0.5, %v1511_v15 }
 0x14f   :  { %v1192_v39 = vpack.c.bf16 %v967_v57, %v966_v21  ;;  %v734_v56 = vmax.f32 %v500_v10, %v721_v36 }
 0x151   :  { %1198 = vst [vmem:[%s1946_s3 + $0x28] sm:$0xff] %v1192_v39   ;;  %v968_v54 = vmax.f32 %v734_v56, %v955_v25 }
 0x153   :  { %v1163_v26 = vpack.c.bf16 %v968_v54, %v968_v54 }
 0x155   :  { %1034 = vst [vmem:[%s1946_s3 + $0x30] sm:$0xf] %v1163_v26 }

// kernel: mnist_forward.5
= control target key start
LH: loop header
LB: loop body
LE: loop exit
PB: predicated region body
PF: predicated region fallthrough
CT: control target
= control target key end

     0   :  { %vm3119_vm0 = vmmov 0   ;;  %vm1696_vm1 = vcmask 523264   ;;  %vm2337_vm2 = vcmask 80896   ;;  %s3824_s1 = inlined_call_operand.vmem [shape: bf16[3136,128], index: 1, kind: input, shape index: {}]   ;;  %s3825_s0 = inlined_call_operand.vmem [shape: bf16[8,3136], index: 0, kind: input, shape index: {}]   ;;  %s3826_s2 = inlined_call_operand.vmem [shape: f32[1,128], index: 2, kind: input, shape index: {}]   ;;  %s3827_s3 = inlined_call_operand.vmem [shape: bf16[128,10], index: 3, kind: input, shape index: {}]   ;;  %s3828_s4 = inlined_call_operand.vmem [shape: f32[1,10], index: 4, kind: input, shape index: {}]   ;;  %s3829_s5 = inlined_call_operand.vmem [shape: f32[8,10], index: 5, kind: output, shape index: {}]  }
   0x1   :  { %v2887_v0 = vld [vmem:[%s3824_s1 + $0x78] sm:$0xff]   ;;  %v2891_v4 = vld [vmem:[%s3824_s1 + $0x70] sm:$0xff]   ;;  %v2895_v8 = vld [vmem:[%s3824_s1 + $0x68] sm:$0xff]  }
   0x2   :  { %v2888_v1 = vld [vmem:[%s3824_s1 + $0x38] sm:$0xff]   ;;  %2575 = vmatprep.subr.bf16.mxu0 %v2887_v0  ;;  %v2892_v5 = vld [vmem:[%s3824_s1 + $0x30] sm:$0xff]   ;;  %v2896_v9 = vld [vmem:[%s3824_s1 + $0x28] sm:$0xff]  }
   0x3   :  { %v2889_v2 = vld [vmem:[%s3824_s1 + $0xf8] sm:$0xff]   ;;  %2576 = vmatpush3.bf16.msra.mxu0 %v2888_v1  ;;  %v2893_v6 = vld [vmem:[%s3824_s1 + $0xf0] sm:$0xff]   ;;  %v2897_v10 = vld [vmem:[%s3824_s1 + $0xe8] sm:$0xff]  }
   0x4   :  { %v2890_v3 = vld [vmem:[%s3824_s1 + $0xb8] sm:$0xff]   ;;  %2597 = vmatprep.subr.bf16.mxu1 %v2889_v2  ;;  %2577 = vmatprep.subr.bf16.mxu0 %v2891_v4  ;;  %v2894_v7 = vld [vmem:[%s3824_s1 + $0xb0] sm:$0xff]   ;;  %v2898_v11 = vld [vmem:[%s3824_s1 + $0xa8] sm:$0xff]  }
   0x5   :  { %2598 = vmatpush3.bf16.msra.mxu1 %v2890_v3  ;;  %v2899_v12 = vld [vmem:[%s3824_s1 + $0x60] sm:$0xff]   ;;  %v2903_v16 = vld [vmem:[%s3824_s1 + $0x58] sm:$0xff]   ;;  %v2907_v20 = vld [vmem:[%s3824_s1 + $0x50] sm:$0xff]  }
   0x6   :  { %2599 = vmatprep.subr.bf16.mxu1 %v2893_v6  ;;  %v2900_v13 = vld [vmem:[%s3824_s1 + $0x20] sm:$0xff]   ;;  %v2904_v17 = vld [vmem:[%s3824_s1 + $0x18] sm:$0xff]   ;;  %v2908_v21 = vld [vmem:[%s3824_s1 + $0x10] sm:$0xff]  }
   0x7   :  { %2578 = vmatpush3.bf16.msra.mxu0 %v2892_v5  ;;  %v2901_v14 = vld [vmem:[%s3824_s1 + $0xe0] sm:$0xff]   ;;  %v2905_v18 = vld [vmem:[%s3824_s1 + $0xd8] sm:$0xff]   ;;  %v2909_v22 = vld [vmem:[%s3824_s1 + $0xd0] sm:$0xff]  }
   0x8   :  { %2579 = vmatprep.subr.bf16.mxu0 %v2895_v8  ;;  %v2902_v15 = vld [vmem:[%s3824_s1 + $0xa0] sm:$0xff]   ;;  %v2906_v19 = vld [vmem:[%s3824_s1 + $0x98] sm:$0xff]   ;;  %v2910_v23 = vld [vmem:[%s3824_s1 + $0x90] sm:$0xff]  }
   0x9   :  { %2600 = vmatpush3.bf16.msra.mxu1 %v2894_v7  ;;  %v2911_v24 = vld [vmem:[%s3824_s1 + $0x48] sm:$0xff]   ;;  %v2915_v28 = vld [vmem:[%s3824_s1 + $0x40] sm:$0xff]   ;;  %v2921_v35 = vld [vmem:[%s3824_s1 + $0x178] sm:$0xff]  }
   0xa   :  { %2601 = vmatprep.subr.bf16.mxu1 %v2897_v10  ;;  %v2912_v25 = vld [vmem:[%s3824_s1 + $0x8] sm:$0xff]   ;;  %v2916_v29 = vld [vmem:[%s3824_s1] sm:$0xff]   ;;  %v2924_v39 = vld [vmem:[%s3824_s1 + $0x138] sm:$0xff]  }
   0xb   :  { %2580 = vmatpush3.bf16.msra.mxu0 %v2896_v9  ;;  %v2913_v26 = vld [vmem:[%s3824_s1 + $0xc8] sm:$0xff]   ;;  %v2917_v30 = vld [vmem:[%s3824_s1 + $0xc0] sm:$0xff]   ;;  %v2925_v40 = vld [vmem:[%s3824_s1 + $0x1f8] sm:$0xff]  }
   0xc   :  { %2581 = vmatprep.subr.bf16.mxu0 %v2899_v12  ;;  %v2914_v27 = vld [vmem:[%s3824_s1 + $0x88] sm:$0xff]   ;;  %v21_v31 = vld [vmem:[%s3825_s0] sm:$0xff]  ;;  %v2926_v41 = vld [vmem:[%s3824_s1 + $0x1b8] sm:$0xff]  }
   0xd   :  { %2602 = vmatpush3.bf16.msra.mxu1 %v2898_v11  ;;  %v2344_v32 = vcombine.low %v21_v31, %v21_v31  ;;  %v2345_v33 = vcombine.high %v21_v31, %v21_v31  ;;  %v2920_v34 = vld [vmem:[%s3824_s1 + $0x80] sm:$0xff]   ;;  %v22_v36 = vld [vmem:[%s3825_s0 + $0x8] sm:$0xff]  ;;  %v2927_v42 = vld [vmem:[%s3824_s1 + $0x170] sm:$0xff]  }
   0xe   :  { %2603 = vmatprep.subr.bf16.mxu1 %v2901_v14  ;;  %v2346_v37 = vcombine.low %v22_v36, %v22_v36  ;;  %v2347_v38 = vcombine.high %v22_v36, %v22_v36  ;;  %v2928_v43 = vld [vmem:[%s3824_s1 + $0x130] sm:$0xff]   ;;  %v2931_v46 = vld [vmem:[%s3824_s1 + $0x168] sm:$0xff]   ;;  %v2935_v50 = vld [vmem:[%s3824_s1 + $0x160] sm:$0xff]  }
   0xf   :  { %2582 = vmatpush3.bf16.msra.mxu0 %v2900_v13  ;;  %1732 = vmatprep.mubr.bf16.mxu0 %v2345_v33  ;;  %v2929_v44 = vld [vmem:[%s3824_s1 + $0x1f0] sm:$0xff]   ;;  %v2932_v47 = vld [vmem:[%s3824_s1 + $0x128] sm:$0xff]   ;;  %v2936_v51 = vld [vmem:[%s3824_s1 + $0x120] sm:$0xff]  }
  0x10   :  { %2583 = vmatprep.subr.bf16.mxu0 %v2903_v16  ;;  %1772 = vmatprep.mubr.bf16.mxu1 %v2347_v38  ;;  %v2930_v45 = vld [vmem:[%s3824_s1 + $0x1b0] sm:$0xff]   ;;  %v2933_v48 = vld [vmem:[%s3824_s1 + $0x1e8] sm:$0xff]   ;;  %v2937_v52 = vld [vmem:[%s3824_s1 + $0x1e0] sm:$0xff]  }
  0x11   :  { %2604 = vmatpush3.bf16.msra.mxu1 %v2902_v15  ;;  %v2934_v49 = vld [vmem:[%s3824_s1 + $0x1a8] sm:$0xff]   ;;  %v2938_v53 = vld [vmem:[%s3824_s1 + $0x1a0] sm:$0xff]   ;;  %v2939_v54 = vld [vmem:[%s3824_s1 + $0x158] sm:$0xff]  }
  0x12   :  { %2605 = vmatprep.subr.bf16.mxu1 %v2905_v18  ;;  %v2940_v55 = vld [vmem:[%s3824_s1 + $0x118] sm:$0xff]   ;;  %v2943_v58 = vld [vmem:[%s3824_s1 + $0x150] sm:$0xff]   ;;  %v2947_v62 = vld [vmem:[%s3824_s1 + $0x148] sm:$0xff]  }
  0x13   :  { %2584 = vmatpush3.bf16.msra.mxu0 %v2904_v17  ;;  %v2941_v56 = vld [vmem:[%s3824_s1 + $0x1d8] sm:$0xff]   ;;  %v2944_v59 = vld [vmem:[%s3824_s1 + $0x110] sm:$0xff]   ;;  %v2948_v63 = vld [vmem:[%s3824_s1 + $0x108] sm:$0xff]  }
  0x14   :  { %2585 = vmatprep.subr.bf16.mxu0 %v2907_v20  ;;  %v2942_v57 = vld [vmem:[%s3824_s1 + $0x198] sm:$0xff]   ;;  %v2945_v60 = vld [vmem:[%s3824_s1 + $0x1d0] sm:$0xff]   ;;  %v2949_v0 = vld [vmem:[%s3824_s1 + $0x1c8] sm:$0xff]  }
  0x15   :  { %2606 = vmatpush3.bf16.msra.mxu1 %v2906_v19  ;;  %v2946_v61 = vld [vmem:[%s3824_s1 + $0x190] sm:$0xff]   ;;  %v2950_v1 = vld [vmem:[%s3824_s1 + $0x188] sm:$0xff]   ;;  %v2951_v2 = vld [vmem:[%s3824_s1 + $0x140] sm:$0xff]  }
  0x16   :  { %2607 = vmatprep.subr.bf16.mxu1 %v2909_v22  ;;  %v2952_v3 = vld [vmem:[%s3824_s1 + $0x100] sm:$0xff]   ;;  %v23_v5 = vld [vmem:[%s3825_s0 + $0x10] sm:$0xff]  ;;  %v2957_v9 = vld [vmem:[%s3824_s1 + $0x278] sm:$0xff]  }
  0x17   :  { %2586 = vmatpush3.bf16.msra.mxu0 %v2908_v21  ;;  %v2953_v4 = vld [vmem:[%s3824_s1 + $0x1c0] sm:$0xff]   ;;  %v2348_v6 = vcombine.low %v23_v5, %v23_v5  ;;  %v2349_v7 = vcombine.high %v23_v5, %v23_v5  ;;  %v24_v10 = vld [vmem:[%s3825_s0 + $0x18] sm:$0xff]  ;;  %v2963_v16 = vld [vmem:[%s3824_s1 + $0x270] sm:$0xff]  }
  0x18   :  { %2587 = vmatprep.subr.bf16.mxu0 %v2911_v24  ;;  %v2956_v8 = vld [vmem:[%s3824_s1 + $0x180] sm:$0xff]   ;;  %v2350_v11 = vcombine.low %v24_v10, %v24_v10  ;;  %v2351_v12 = vcombine.high %v24_v10, %v24_v10  ;;  %v2960_v13 = vld [vmem:[%s3824_s1 + $0x238] sm:$0xff]   ;;  %v2964_v17 = vld [vmem:[%s3824_s1 + $0x230] sm:$0xff]  }
  0x19   :  { %2608 = vmatpush3.bf16.msra.mxu1 %v2910_v23  ;;  %v2961_v14 = vld [vmem:[%s3824_s1 + $0x2f8] sm:$0xff]   ;;  %v2965_v18 = vld [vmem:[%s3824_s1 + $0x2f0] sm:$0xff]   ;;  %v2967_v20 = vld [vmem:[%s3824_s1 + $0x268] sm:$0xff]  }
  0x1a   :  { %2609 = vmatprep.subr.bf16.mxu1 %v2913_v26  ;;  %v2962_v15 = vld [vmem:[%s3824_s1 + $0x2b8] sm:$0xff]   ;;  %v2966_v19 = vld [vmem:[%s3824_s1 + $0x2b0] sm:$0xff]   ;;  %v2968_v21 = vld [vmem:[%s3824_s1 + $0x228] sm:$0xff]  }
  0x1b   :  { %2588 = vmatpush3.bf16.msra.mxu0 %v2912_v25  ;;  %v2969_v22 = vld [vmem:[%s3824_s1 + $0x2e8] sm:$0xff]   ;;  %v2971_v24 = vld [vmem:[%s3824_s1 + $0x260] sm:$0xff]   ;;  %v2978_v31 = vld [vmem:[%s3824_s1 + $0x298] sm:$0xff]  }
  0x1c   :  { %2589 = vmatprep.subr.bf16.mxu0 %v2915_v28  ;;  %v2970_v23 = vld [vmem:[%s3824_s1 + $0x2a8] sm:$0xff]   ;;  %v2972_v25 = vld [vmem:[%s3824_s1 + $0x220] sm:$0xff]   ;;  %v2975_v28 = vld [vmem:[%s3824_s1 + $0x258] sm:$0xff]  }
  0x1d   :  { %2610 = vmatpush3.bf16.msra.mxu1 %v2914_v27  ;;  %v2973_v26 = vld [vmem:[%s3824_s1 + $0x2e0] sm:$0xff]   ;;  %v2980_v33 = vld [vmem:[%s3824_s1 + $0x210] sm:$0xff]   ;;  %v2983_v36 = vld [vmem:[%s3824_s1 + $0x248] sm:$0xff]  }
  0x1e   :  { %2611 = vmatprep.subr.bf16.mxu1 %v2917_v30  ;;  %v2974_v27 = vld [vmem:[%s3824_s1 + $0x2a0] sm:$0xff]   ;;  %v2977_v30 = vld [vmem:[%s3824_s1 + $0x2d8] sm:$0xff]   ;;  %v2985_v38 = vld [vmem:[%s3824_s1 + $0x2c8] sm:$0xff]  }
  0x1f   :  { %2590 = vmatpush3.bf16.msra.mxu0 %v2916_v29  ;;  %v2976_v29 = vld [vmem:[%s3824_s1 + $0x218] sm:$0xff]   ;;  %v3019_v10 = vld [vmem:[%s3824_s1 + $0x348] sm:$0xff]  }
  0x20   :  { %2619 = vmatprep.subr.bf16.mxu0 %v2921_v35  ;;  %v2982_v35 = vld [vmem:[%s3824_s1 + $0x290] sm:$0xff]   ;;  %v3014_v5 = vld [vmem:[%s3824_s1 + $0x398] sm:$0xff]  }
  0x21   :  { %2612 = vmatpush3.bf16.msra.mxu1 %v2920_v34  ;;  %v2981_v34 = vld [vmem:[%s3824_s1 + $0x2d0] sm:$0xff]  }
  0x22   :  { %1733 = vmatmul.mubr.bf16.vlgmr.msra.gmra.mxu0 %v2344_v32  ;;  %2641 = vmatprep.subr.bf16.mxu1 %v2925_v40  ;;  %v2979_v32 = vld [vmem:[%s3824_s1 + $0x250] sm:$0xff]   ;;  %v2987_v40 = vld [vmem:[%s3824_s1 + $0x240] sm:$0xff]  }
  0x23   :  { %2620 = vmatpush3.bf16.msra.mxu0 %v2924_v39  ;;  %1812 = vmatprep.mubr.bf16.mxu0 %v2349_v7  ;;  %v2986_v39 = vld [vmem:[%s3824_s1 + $0x288] sm:$0xff]   ;;  %v3016_v7 = vld [vmem:[%s3824_s1 + $0x310] sm:$0xff]  }
  0x24   :  { %1773 = vmatmul.mubr.bf16.vlgmr.msra.gmra.mxu1 %v2346_v37  ;;  %2621 = vmatprep.subr.bf16.mxu0 %v2927_v42  ;;  %v2984_v37 = vld [vmem:[%s3824_s1 + $0x208] sm:$0xff]   ;;  %v2989_v42 = vld [vmem:[%s3824_s1 + $0x2c0] sm:$0xff]  }
  0x25   :  { %2642 = vmatpush3.bf16.msra.mxu1 %v2926_v41  ;;  %1852 = vmatprep.mubr.bf16.mxu1 %v2351_v12  ;;  %v2988_v41 = vld [vmem:[%s3824_s1 + $0x200] sm:$0xff]   ;;  %v3021_v12 = vld [vmem:[%s3824_s1 + $0x3c8] sm:$0xff]  }
  0x26   :  { %2643 = vmatprep.subr.bf16.mxu1 %v2929_v44 }
  0x27   :  { %2622 = vmatpush3.bf16.msra.mxu0 %v2928_v43  ;;  %v25_v43 = vld [vmem:[%s3825_s0 + $0x20] sm:$0xff] }
  0x28   :  { %2623 = vmatprep.subr.bf16.mxu0 %v2931_v46  ;;  %v2352_v44 = vcombine.low %v25_v43, %v25_v43  ;;  %v2992_v46 = vld [vmem:[%s3824_s1 + $0x280] sm:$0xff]  }
  0x29   :  { %2644 = vmatpush3.bf16.msra.mxu1 %v2930_v45  ;;  %v2353_v45 = vcombine.high %v25_v43, %v25_v43  ;;  %v3050_v43 = vld [vmem:[%s3824_s1 + $0x498] sm:$0xff]  }
  0x2a   :  { %2645 = vmatprep.subr.bf16.mxu1 %v2933_v48  ;;  %v26_v48 = vld [vmem:[%s3825_s0 + $0x28] sm:$0xff] }
  0x2b   :  { %2624 = vmatpush3.bf16.msra.mxu0 %v2932_v47  ;;  %v2993_v47 = vld [vmem:[%s3824_s1 + $0x378] sm:$0xff]  }
  0x2c   :  { %2625 = vmatprep.subr.bf16.mxu0 %v2935_v50  ;;  %v2355_v50 = vcombine.high %v26_v48, %v26_v48 }
  0x2d   :  { %2646 = vmatpush3.bf16.msra.mxu1 %v2934_v49  ;;  %v2354_v49 = vcombine.low %v26_v48, %v26_v48  ;;  %v3055_v48 = vld [vmem:[%s3824_s1 + $0x448] sm:$0xff]  }
  0x2e   :  { %2647 = vmatprep.subr.bf16.mxu1 %v2937_v52  ;;  %v2997_v52 = vld [vmem:[%s3824_s1 + $0x3f8] sm:$0xff]  }
  0x2f   :  { %2626 = vmatpush3.bf16.msra.mxu0 %v2936_v51  ;;  %v2996_v51 = vld [vmem:[%s3824_s1 + $0x338] sm:$0xff]  }
  0x30   :  { %2627 = vmatprep.subr.bf16.mxu0 %v2939_v54  ;;  %v2999_v54 = vld [vmem:[%s3824_s1 + $0x370] sm:$0xff]  }
  0x31   :  { %2648 = vmatpush3.bf16.msra.mxu1 %v2938_v53  ;;  %v2998_v53 = vld [vmem:[%s3824_s1 + $0x3b8] sm:$0xff]  }
  0x32   :  { %2649 = vmatprep.subr.bf16.mxu1 %v2941_v56  ;;  %v3001_v56 = vld [vmem:[%s3824_s1 + $0x3f0] sm:$0xff]  }
  0x33   :  { %2628 = vmatpush3.bf16.msra.mxu0 %v2940_v55  ;;  %v3000_v55 = vld [vmem:[%s3824_s1 + $0x330] sm:$0xff]  }
  0x34   :  { %2629 = vmatprep.subr.bf16.mxu0 %v2943_v58  ;;  %v3003_v58 = vld [vmem:[%s3824_s1 + $0x368] sm:$0xff]  }
  0x35   :  { %2650 = vmatpush3.bf16.msra.mxu1 %v2942_v57  ;;  %v3002_v57 = vld [vmem:[%s3824_s1 + $0x3b0] sm:$0xff]  }
  0x36   :  { %2651 = vmatprep.subr.bf16.mxu1 %v2945_v60  ;;  %v3005_v60 = vld [vmem:[%s3824_s1 + $0x3e8] sm:$0xff]  }
  0x37   :  { %2630 = vmatpush3.bf16.msra.mxu0 %v2944_v59  ;;  %v3004_v59 = vld [vmem:[%s3824_s1 + $0x328] sm:$0xff]  }
  0x38   :  { %2631 = vmatprep.subr.bf16.mxu0 %v2947_v62  ;;  %v3007_v62 = vld [vmem:[%s3824_s1 + $0x360] sm:$0xff]  }
  0x39   :  { %2652 = vmatpush3.bf16.msra.mxu1 %v2946_v61  ;;  %v3006_v61 = vld [vmem:[%s3824_s1 + $0x3a8] sm:$0xff]  }
  0x3a   :  { %2653 = vmatprep.subr.bf16.mxu1 %v2949_v0  ;;  %v3009_v0 = vld [vmem:[%s3824_s1 + $0x3e0] sm:$0xff]  }
  0x3b   :  { %2632 = vmatpush3.bf16.msra.mxu0 %v2948_v63  ;;  %v3008_v63 = vld [vmem:[%s3824_s1 + $0x320] sm:$0xff]  }
  0x3c   :  { %2633 = vmatprep.subr.bf16.mxu0 %v2951_v2  ;;  %v3011_v2 = vld [vmem:[%s3824_s1 + $0x358] sm:$0xff]  }
  0x3d   :  { %2654 = vmatpush3.bf16.msra.mxu1 %v2950_v1  ;;  %v3010_v1 = vld [vmem:[%s3824_s1 + $0x3a0] sm:$0xff]  }
  0x3e   :  { %2655 = vmatprep.subr.bf16.mxu1 %v2953_v4  ;;  %v3013_v4 = vld [vmem:[%s3824_s1 + $0x3d8] sm:$0xff]  }
  0x3f   :  { %2634 = vmatpush3.bf16.msra.mxu0 %v2952_v3  ;;  %v3012_v3 = vld [vmem:[%s3824_s1 + $0x318] sm:$0xff]  }
  0x40   :  { %2663 = vmatprep.subr.bf16.mxu0 %v2957_v9  ;;  %v3018_v9 = vld [vmem:[%s3824_s1 + $0x390] sm:$0xff]  }
  0x41   :  { %2656 = vmatpush3.bf16.msra.mxu1 %v2956_v8  ;;  %v3017_v8 = vld [vmem:[%s3824_s1 + $0x3d0] sm:$0xff]  }
  0x42   :  { %1813 = vmatmul.mubr.bf16.vlgmr.msra.gmra.mxu0 %v2348_v6  ;;  %2685 = vmatprep.subr.bf16.mxu1 %v2961_v14  ;;  %v3015_v6 = vld [vmem:[%s3824_s1 + $0x350] sm:$0xff]   ;;  %v3023_v14 = vld [vmem:[%s3824_s1 + $0x340] sm:$0xff]  }
  0x43   :  { %2664 = vmatpush3.bf16.msra.mxu0 %v2960_v13  ;;  %1892 = vmatprep.mubr.bf16.mxu0 %v2353_v45  ;;  %v3022_v13 = vld [vmem:[%s3824_s1 + $0x388] sm:$0xff]   ;;  %v3052_v45 = vld [vmem:[%s3824_s1 + $0x410] sm:$0xff]  }
  0x44   :  { %1853 = vmatmul.mubr.bf16.vlgmr.msra.gmra.mxu1 %v2350_v11  ;;  %2665 = vmatprep.subr.bf16.mxu0 %v2963_v16  ;;  %v3020_v11 = vld [vmem:[%s3824_s1 + $0x308] sm:$0xff]   ;;  %v3025_v16 = vld [vmem:[%s3824_s1 + $0x3c0] sm:$0xff]  }
  0x45   :  { %2686 = vmatpush3.bf16.msra.mxu1 %v2962_v15  ;;  %1932 = vmatprep.mubr.bf16.mxu1 %v2355_v50  ;;  %v3024_v15 = vld [vmem:[%s3824_s1 + $0x300] sm:$0xff]   ;;  %v3057_v50 = vld [vmem:[%s3824_s1 + $0x4c8] sm:$0xff]  }
  0x46   :  { %2687 = vmatprep.subr.bf16.mxu1 %v2965_v18 }
  0x47   :  { %2666 = vmatpush3.bf16.msra.mxu0 %v2964_v17  ;;  %v27_v17 = vld [vmem:[%s3825_s0 + $0x30] sm:$0xff] }
  0x48   :  { %2667 = vmatprep.subr.bf16.mxu0 %v2967_v20  ;;  %v2356_v18 = vcombine.low %v27_v17, %v27_v17  ;;  %v3028_v20 = vld [vmem:[%s3824_s1 + $0x380] sm:$0xff]  }
  0x49   :  { %2688 = vmatpush3.bf16.msra.mxu1 %v2966_v19  ;;  %v2357_v19 = vcombine.high %v27_v17, %v27_v17  ;;  %v3086_v17 = vld [vmem:[%s3824_s1 + $0x598] sm:$0xff]  }
  0x4a   :  { %2689 = vmatprep.subr.bf16.mxu1 %v2969_v22  ;;  %v28_v22 = vld [vmem:[%s3825_s0 + $0x38] sm:$0xff] }
  0x4b   :  { %2668 = vmatpush3.bf16.msra.mxu0 %v2968_v21  ;;  %v3029_v21 = vld [vmem:[%s3824_s1 + $0x478] sm:$0xff]  }
  0x4c   :  { %2669 = vmatprep.subr.bf16.mxu0 %v2971_v24  ;;  %v2359_v24 = vcombine.high %v28_v22, %v28_v22 }
  0x4d   :  { %2690 = vmatpush3.bf16.msra.mxu1 %v2970_v23  ;;  %v2358_v23 = vcombine.low %v28_v22, %v28_v22  ;;  %v3091_v22 = vld [vmem:[%s3824_s1 + $0x548] sm:$0xff]  }
  0x4e   :  { %2691 = vmatprep.subr.bf16.mxu1 %v2973_v26  ;;  %v3033_v26 = vld [vmem:[%s3824_s1 + $0x4f8] sm:$0xff]  }
  0x4f   :  { %2670 = vmatpush3.bf16.msra.mxu0 %v2972_v25  ;;  %v3032_v25 = vld [vmem:[%s3824_s1 + $0x438] sm:$0xff]  }
  0x50   :  { %2671 = vmatprep.subr.bf16.mxu0 %v2975_v28  ;;  %v3035_v28 = vld [vmem:[%s3824_s1 + $0x470] sm:$0xff]  }
  0x51   :  { %2692 = vmatpush3.bf16.msra.mxu1 %v2974_v27  ;;  %v3034_v27 = vld [vmem:[%s3824_s1 + $0x4b8] sm:$0xff]  }
  0x52   :  { %2693 = vmatprep.subr.bf16.mxu1 %v2977_v30  ;;  %v3037_v30 = vld [vmem:[%s3824_s1 + $0x4f0] sm:$0xff]  }
  0x53   :  { %2672 = vmatpush3.bf16.msra.mxu0 %v2976_v29  ;;  %v3036_v29 = vld [vmem:[%s3824_s1 + $0x430] sm:$0xff]  }
  0x54   :  { %2673 = vmatprep.subr.bf16.mxu0 %v2979_v32  ;;  %v3039_v32 = vld [vmem:[%s3824_s1 + $0x468] sm:$0xff]  }
  0x55   :  { %2694 = vmatpush3.bf16.msra.mxu1 %v2978_v31  ;;  %v3038_v31 = vld [vmem:[%s3824_s1 + $0x4b0] sm:$0xff]  }
  0x56   :  { %2695 = vmatprep.subr.bf16.mxu1 %v2981_v34  ;;  %v3041_v34 = vld [vmem:[%s3824_s1 + $0x4e8] sm:$0xff]  }
  0x57   :  { %2674 = vmatpush3.bf16.msra.mxu0 %v2980_v33  ;;  %v3040_v33 = vld [vmem:[%s3824_s1 + $0x428] sm:$0xff]  }
  0x58   :  { %2675 = vmatprep.subr.bf16.mxu0 %v2983_v36  ;;  %v3043_v36 = vld [vmem:[%s3824_s1 + $0x460] sm:$0xff]  }
  0x59   :  { %2696 = vmatpush3.bf16.msra.mxu1 %v2982_v35  ;;  %v3042_v35 = vld [vmem:[%s3824_s1 + $0x4a8] sm:$0xff]  }
  0x5a   :  { %2697 = vmatprep.subr.bf16.mxu1 %v2985_v38  ;;  %v3045_v38 = vld [vmem:[%s3824_s1 + $0x4e0] sm:$0xff]  }
  0x5b   :  { %2676 = vmatpush3.bf16.msra.mxu0 %v2984_v37  ;;  %v3044_v37 = vld [vmem:[%s3824_s1 + $0x420] sm:$0xff]  }
  0x5c   :  { %2677 = vmatprep.subr.bf16.mxu0 %v2987_v40  ;;  %v3047_v40 = vld [vmem:[%s3824_s1 + $0x458] sm:$0xff]  }
  0x5d   :  { %2698 = vmatpush3.bf16.msra.mxu1 %v2986_v39  ;;  %v3046_v39 = vld [vmem:[%s3824_s1 + $0x4a0] sm:$0xff]  }
  0x5e   :  { %2699 = vmatprep.subr.bf16.mxu1 %v2989_v42  ;;  %v3049_v42 = vld [vmem:[%s3824_s1 + $0x4d8] sm:$0xff]  }
  0x5f   :  { %2678 = vmatpush3.bf16.msra.mxu0 %v2988_v41  ;;  %v3048_v41 = vld [vmem:[%s3824_s1 + $0x418] sm:$0xff]  }
  0x60   :  { %2707 = vmatprep.subr.bf16.mxu0 %v2993_v47  ;;  %v3054_v47 = vld [vmem:[%s3824_s1 + $0x490] sm:$0xff]  }
  0x61   :  { %2700 = vmatpush3.bf16.msra.mxu1 %v2992_v46  ;;  %v3053_v46 = vld [vmem:[%s3824_s1 + $0x4d0] sm:$0xff]  }
  0x62   :  { %1893 = vmatmul.mubr.bf16.vlgmr.msra.gmra.mxu0 %v2352_v44  ;;  %2729 = vmatprep.subr.bf16.mxu1 %v2997_v52  ;;  %v3051_v44 = vld [vmem:[%s3824_s1 + $0x450] sm:$0xff]   ;;  %v3059_v52 = vld [vmem:[%s3824_s1 + $0x440] sm:$0xff]  }
  0x63   :  { %2708 = vmatpush3.bf16.msra.mxu0 %v2996_v51  ;;  %1972 = vmatprep.mubr.bf16.mxu0 %v2357_v19  ;;  %v3058_v51 = vld [vmem:[%s3824_s1 + $0x488] sm:$0xff]   ;;  %v3088_v19 = vld [vmem:[%s3824_s1 + $0x510] sm:$0xff]  }
  0x64   :  { %1933 = vmatmul.mubr.bf16.vlgmr.msra.gmra.mxu1 %v2354_v49  ;;  %2709 = vmatprep.subr.bf16.mxu0 %v2999_v54  ;;  %v3056_v49 = vld [vmem:[%s3824_s1 + $0x408] sm:$0xff]   ;;  %v3061_v54 = vld [vmem:[%s3824_s1 + $0x4c0] sm:$0xff]  }
  0x65   :  { %2730 = vmatpush3.bf16.msra.mxu1 %v2998_v53  ;;  %2012 = vmatprep.mubr.bf16.mxu1 %v2359_v24  ;;  %v3060_v53 = vld [vmem:[%s3824_s1 + $0x400] sm:$0xff]   ;;  %v3093_v24 = vld [vmem:[%s3824_s1 + $0x5c8] sm:$0xff]  }
  0x66   :  { %2731 = vmatprep.subr.bf16.mxu1 %v3001_v56 }
  0x67   :  { %2710 = vmatpush3.bf16.msra.mxu0 %v3000_v55  ;;  %v29_v55 = vld [vmem:[%s3825_s0 + $0x40] sm:$0xff] }
  0x68   :  { %2711 = vmatprep.subr.bf16.mxu0 %v3003_v58  ;;  %v2360_v56 = vcombine.low %v29_v55, %v29_v55  ;;  %v3064_v58 = vld [vmem:[%s3824_s1 + $0x480] sm:$0xff]  }
  0x69   :  { %2732 = vmatpush3.bf16.msra.mxu1 %v3002_v57  ;;  %v2361_v57 = vcombine.high %v29_v55, %v29_v55 }
  0x6a   :  { %2733 = vmatprep.subr.bf16.mxu1 %v3005_v60  ;;  %v30_v60 = vld [vmem:[%s3825_s0 + $0x48] sm:$0xff] }
  0x6b   :  { %2712 = vmatpush3.bf16.msra.mxu0 %v3004_v59  ;;  %v3065_v59 = vld [vmem:[%s3824_s1 + $0x578] sm:$0xff]  }
  0x6c   :  { %2713 = vmatprep.subr.bf16.mxu0 %v3007_v62  ;;  %v2363_v62 = vcombine.high %v30_v60, %v30_v60 }
  0x6d   :  { %2734 = vmatpush3.bf16.msra.mxu1 %v3006_v61  ;;  %v2362_v61 = vcombine.low %v30_v60, %v30_v60 }
  0x6e   :  { %2735 = vmatprep.subr.bf16.mxu1 %v3009_v0  ;;  %v3069_v0 = vld [vmem:[%s3824_s1 + $0x5f8] sm:$0xff]  }
  0x6f   :  { %2714 = vmatpush3.bf16.msra.mxu0 %v3008_v63  ;;  %v3068_v63 = vld [vmem:[%s3824_s1 + $0x538] sm:$0xff]  }
  0x70   :  { %2715 = vmatprep.subr.bf16.mxu0 %v3011_v2  ;;  %v3071_v2 = vld [vmem:[%s3824_s1 + $0x570] sm:$0xff]  }
  0x71   :  { %2736 = vmatpush3.bf16.msra.mxu1 %v3010_v1  ;;  %v3070_v1 = vld [vmem:[%s3824_s1 + $0x5b8] sm:$0xff]  }
  0x72   :  { %2737 = vmatprep.subr.bf16.mxu1 %v3013_v4  ;;  %v3073_v4 = vld [vmem:[%s3824_s1 + $0x5f0] sm:$0xff]  }
  0x73   :  { %2716 = vmatpush3.bf16.msra.mxu0 %v3012_v3  ;;  %v3072_v3 = vld [vmem:[%s3824_s1 + $0x530] sm:$0xff]  }
  0x74   :  { %2717 = vmatprep.subr.bf16.mxu0 %v3015_v6  ;;  %v3075_v6 = vld [vmem:[%s3824_s1 + $0x568] sm:$0xff]  }
  0x75   :  { %2738 = vmatpush3.bf16.msra.mxu1 %v3014_v5  ;;  %v3074_v5 = vld [vmem:[%s3824_s1 + $0x5b0] sm:$0xff]  }
  0x76   :  { %2739 = vmatprep.subr.bf16.mxu1 %v3017_v8  ;;  %v3077_v8 = vld [vmem:[%s3824_s1 + $0x5e8] sm:$0xff]  }
  0x77   :  { %2718 = vmatpush3.bf16.msra.mxu0 %v3016_v7  ;;  %v3076_v7 = vld [vmem:[%s3824_s1 + $0x528] sm:$0xff]  }
  0x78   :  { %2719 = vmatprep.subr.bf16.mxu0 %v3019_v10  ;;  %v3079_v10 = vld [vmem:[%s3824_s1 + $0x560] sm:$0xff]  }
  0x79   :  { %2740 = vmatpush3.bf16.msra.mxu1 %v3018_v9  ;;  %v3078_v9 = vld [vmem:[%s3824_s1 + $0x5a8] sm:$0xff]  }
  0x7a   :  { %2741 = vmatprep.subr.bf16.mxu1 %v3021_v12  ;;  %v3081_v12 = vld [vmem:[%s3824_s1 + $0x5e0] sm:$0xff]  }
  0x7b   :  { %2720 = vmatpush3.bf16.msra.mxu0 %v3020_v11  ;;  %v3080_v11 = vld [vmem:[%s3824_s1 + $0x520] sm:$0xff]  }
  0x7c   :  { %2721 = vmatprep.subr.bf16.mxu0 %v3023_v14  ;;  %v3083_v14 = vld [vmem:[%s3824_s1 + $0x558] sm:$0xff]  }
  0x7d   :  { %2742 = vmatpush3.bf16.msra.mxu1 %v3022_v13  ;;  %v3082_v13 = vld [vmem:[%s3824_s1 + $0x5a0] sm:$0xff]  }
  0x7e   :  { %2743 = vmatprep.subr.bf16.mxu1 %v3025_v16  ;;  %v3085_v16 = vld [vmem:[%s3824_s1 + $0x5d8] sm:$0xff]  }
  0x7f   :  { %2722 = vmatpush3.bf16.msra.mxu0 %v3024_v15  ;;  %v3084_v15 = vld [vmem:[%s3824_s1 + $0x518] sm:$0xff]  }
  0x80   :  { %2751 = vmatprep.subr.bf16.mxu0 %v3029_v21  ;;  %v3090_v21 = vld [vmem:[%s3824_s1 + $0x590] sm:$0xff]  }
  0x81   :  { %2744 = vmatpush3.bf16.msra.mxu1 %v3028_v20  ;;  %v3089_v20 = vld [vmem:[%s3824_s1 + $0x5d0] sm:$0xff]  }
  0x82   :  { %1973 = vmatmul.mubr.bf16.vlgmr.msra.gmra.mxu0 %v2356_v18  ;;  %2773 = vmatprep.subr.bf16.mxu1 %v3033_v26  ;;  %v3087_v18 = vld [vmem:[%s3824_s1 + $0x550] sm:$0xff]   ;;  %v3095_v26 = vld [vmem:[%s3824_s1 + $0x540] sm:$0xff]  }
  0x83   :  { %2752 = vmatpush3.bf16.msra.mxu0 %v3032_v25  ;;  %2052 = vmatprep.mubr.bf16.mxu0 %v2361_v57  ;;  %v3094_v25 = vld [vmem:[%s3824_s1 + $0x588] sm:$0xff]  }
  0x84   :  { %2013 = vmatmul.mubr.bf16.vlgmr.msra.gmra.mxu1 %v2358_v23  ;;  %2753 = vmatprep.subr.bf16.mxu0 %v3035_v28  ;;  %v3092_v23 = vld [vmem:[%s3824_s1 + $0x508] sm:$0xff]   ;;  %v3097_v28 = vld [vmem:[%s3824_s1 + $0x5c0] sm:$0xff]  }
  0x85   :  { %2774 = vmatpush3.bf16.msra.mxu1 %v3034_v27  ;;  %2092 = vmatprep.mubr.bf16.mxu1 %v2363_v62  ;;  %v3096_v27 = vld [vmem:[%s3824_s1 + $0x500] sm:$0xff]  }
  0x86   :  { %2775 = vmatprep.subr.bf16.mxu1 %v3037_v30 }
  0x87   :  { %2754 = vmatpush3.bf16.msra.mxu0 %v3036_v29  ;;  %v31_v29 = vld [vmem:[%s3825_s0 + $0x50] sm:$0xff] }
  0x88   :  { %2755 = vmatprep.subr.bf16.mxu0 %v3039_v32  ;;  %v2364_v30 = vcombine.low %v31_v29, %v31_v29  ;;  %v3100_v32 = vld [vmem:[%s3824_s1 + $0x580] sm:$0xff]  }
  0x89   :  { %2776 = vmatpush3.bf16.msra.mxu1 %v3038_v31  ;;  %v2365_v31 = vcombine.high %v31_v29, %v31_v29 }
  0x8a   :  { %2777 = vmatprep.subr.bf16.mxu1 %v3041_v34  ;;  %v3118_v34 = vmov 0.0  }
  0x8b   :  { %2756 = vmatpush3.bf16.msra.mxu0 %v3040_v33  ;;  %v32_v33 = vld [vmem:[%s3825_s0 + $0x58] sm:$0xff] }
  0x8c   :  { %2757 = vmatprep.subr.bf16.mxu0 %v3043_v36  ;;  %v2367_v36 = vcombine.high %v32_v33, %v32_v33 }
  0x8d   :  { %2778 = vmatpush3.bf16.msra.mxu1 %v3042_v35  ;;  %v2366_v35 = vcombine.low %v32_v33, %v32_v33 }
  0x8e   :  { %2779 = vmatprep.subr.bf16.mxu1 %v3045_v38  ;;  %v3104_v38 = vld [vmem:[%s3824_s1 + $0x610] sm:$0xff]  }
  0x8f   :  { %2758 = vmatpush3.bf16.msra.mxu0 %v3044_v37  ;;  %v3103_v37 = vld [vmem:[%s3824_s1 + $0x618] sm:$0xff]  }
  0x90   :  { %2759 = vmatprep.subr.bf16.mxu0 %v3047_v40  ;;  %v3106_v40 = vld [vmem:[%s3824_s1 + $0x600] sm:$0xff]  }
  0x91   :  { %2780 = vmatpush3.bf16.msra.mxu1 %v3046_v39  ;;  %v3105_v39 = vld [vmem:[%s3824_s1 + $0x608] sm:$0xff]  }
  0x92   :  { %2781 = vmatprep.subr.bf16.mxu1 %v3049_v42 }
  0x93   :  { %2760 = vmatpush3.bf16.msra.mxu0 %v3048_v41  ;;  %v3107_v41 = vld [vmem:[%s3825_s0 + $0x60] ss:$0 sps:$4 sm:$0xff]  }
  0x94   :  { %2761 = vmatprep.subr.bf16.mxu0 %v3051_v44 }
  0x95   :  { %2782 = vmatpush3.bf16.msra.mxu1 %v3050_v43  ;;  %v2343_v43 = vld [vmem:[%s3826_s2] ss:$0 sm:$0xff] }
  0x96   :  { %2783 = vmatprep.subr.bf16.mxu1 %v3053_v46 }
  0x97   :  { %2762 = vmatpush3.bf16.msra.mxu0 %v3052_v45 }
  0x98   :  { %2763 = vmatprep.subr.bf16.mxu0 %v3055_v48 }
  0x99   :  { %2784 = vmatpush3.bf16.msra.mxu1 %v3054_v47 }
  0x9a   :  { %2785 = vmatprep.subr.bf16.mxu1 %v3057_v50 }
  0x9b   :  { %2764 = vmatpush3.bf16.msra.mxu0 %v3056_v49 }
  0x9c   :  { %2765 = vmatprep.subr.bf16.mxu0 %v3059_v52 }
  0x9d   :  { %2786 = vmatpush3.bf16.msra.mxu1 %v3058_v51 }
  0x9e   :  { %2787 = vmatprep.subr.bf16.mxu1 %v3061_v54 }
  0x9f   :  { %2766 = vmatpush3.bf16.msra.mxu0 %v3060_v53 }
  0xa0   :  { %2795 = vmatprep.subr.bf16.mxu0 %v3065_v59 }
  0xa1   :  { %2788 = vmatpush3.bf16.msra.mxu1 %v3064_v58 }
  0xa2   :  { %2053 = vmatmul.mubr.bf16.vlgmr.msra.gmra.mxu0 %v2360_v56  ;;  %2817 = vmatprep.subr.bf16.mxu1 %v3069_v0 }
  0xa3   :  { %2796 = vmatpush3.bf16.msra.mxu0 %v3068_v63  ;;  %2132 = vmatprep.mubr.bf16.mxu0 %v2365_v31 }
  0xa4   :  { %2093 = vmatmul.mubr.bf16.vlgmr.msra.gmra.mxu1 %v2362_v61  ;;  %2797 = vmatprep.subr.bf16.mxu0 %v3071_v2 }
  0xa5   :  { %2818 = vmatpush3.bf16.msra.mxu1 %v3070_v1  ;;  %2172 = vmatprep.mubr.bf16.mxu1 %v2367_v36 }
  0xa6   :  { %2819 = vmatprep.subr.bf16.mxu1 %v3073_v4  ;;  %v3109_v4 = vld [vmem:[%s3827_s3 + $0x30] sm:$0xff]  }
  0xa7   :  { %2798 = vmatpush3.bf16.msra.mxu0 %v3072_v3  ;;  %v3108_v3 = vld [vmem:[%s3827_s3 + $0x38] sm:$0xff]  }
  0xa8   :  { %2799 = vmatprep.subr.bf16.mxu0 %v3075_v6  ;;  %v3111_v6 = vld [vmem:[%s3827_s3 + $0x20] sm:$0xff]  }
  0xa9   :  { %2820 = vmatpush3.bf16.msra.mxu1 %v3074_v5  ;;  %v3110_v5 = vld [vmem:[%s3827_s3 + $0x28] sm:$0xff]  }
  0xaa   :  { %2821 = vmatprep.subr.bf16.mxu1 %v3077_v8 }
  0xab   :  { %2800 = vmatpush3.bf16.msra.mxu0 %v3076_v7  ;;  %v3112_v7 = vld [vmem:[%s3827_s3 + $0x18] sm:$0xff]  }
  0xac   :  { %2801 = vmatprep.subr.bf16.mxu0 %v3079_v10 }
  0xad   :  { %2822 = vmatpush3.bf16.msra.mxu1 %v3078_v9  ;;  %v3113_v9 = vld [vmem:[%s3827_s3 + $0x10] sm:$0xff]  }
  0xae   :  { %2823 = vmatprep.subr.bf16.mxu1 %v3081_v12 }
  0xaf   :  { %2802 = vmatpush3.bf16.msra.mxu0 %v3080_v11 }
  0xb0   :  { %2803 = vmatprep.subr.bf16.mxu0 %v3083_v14 }
  0xb1   :  { %2824 = vmatpush3.bf16.msra.mxu1 %v3082_v13 }
  0xb2   :  { %2825 = vmatprep.subr.bf16.mxu1 %v3085_v16 }
  0xb3   :  { %2804 = vmatpush3.bf16.msra.mxu0 %v3084_v15  ;;  %v3114_v15 = vld [vmem:[%s3827_s3 + $0x8] sm:$0xff]  }
  0xb4   :  { %2805 = vmatprep.subr.bf16.mxu0 %v3087_v18 }
  0xb5   :  { %2826 = vmatpush3.bf16.msra.mxu1 %v3086_v17 }
  0xb6   :  { %2827 = vmatprep.subr.bf16.mxu1 %v3089_v20 }
  0xb7   :  { %2806 = vmatpush3.bf16.msra.mxu0 %v3088_v19 }
  0xb8   :  { %2807 = vmatprep.subr.bf16.mxu0 %v3091_v22  ;;  %v3115_v22 = vld [vmem:[%s3827_s3] sm:$0xff]  }
  0xb9   :  { %2828 = vmatpush3.bf16.msra.mxu1 %v3090_v21 }
  0xba   :  { %2829 = vmatprep.subr.bf16.mxu1 %v3093_v24 }
  0xbb   :  { %2808 = vmatpush3.bf16.msra.mxu0 %v3092_v23 }
  0xbc   :  { %2809 = vmatprep.subr.bf16.mxu0 %v3095_v26 }
  0xbd   :  { %2830 = vmatpush3.bf16.msra.mxu1 %v3094_v25 }
  0xbe   :  { %2831 = vmatprep.subr.bf16.mxu1 %v3097_v28 }
  0xbf   :  { %2810 = vmatpush3.bf16.msra.mxu0 %v3096_v27 }
  0xc0   :  { %2853 = vmatprep.subr.bf16.mxu0 %v3118_v34 }
  0xc1   :  { %2832 = vmatpush3.bf16.msra.mxu1 %v3100_v32 }
  0xc2   :  { %2133 = vmatmul.mubr.bf16.vlgmr.msra.gmra.mxu0 %v2364_v30  ;;  %2865 = vmatprep.subr.bf16.mxu1 %v3118_v34 }
  0xc3   :  { %2854 = vmatpush3.bf16.msra.mxu0 %v3103_v37  ;;  %2861 = vmatprep.mubr.msk.bf16.mxu0 %vm3119_vm0, %v3118_v34 }
  0xc4   :  { %2173 = vmatmul.mubr.bf16.vlgmr.msra.gmra.mxu1 %v2366_v35  ;;  %2855 = vmatprep.subr.bf16.mxu0 %v3118_v34 }
  0xc5   :  { %2881 = vmatprep.mubr.msk.bf16.mxu1 %vm3119_vm0, %v3118_v34  ;;  %2866 = vmatpush3.bf16.msra.mxu1 %v3108_v3 }
  0xc6   :  { %2867 = vmatprep.subr.bf16.mxu1 %v3118_v34 }
  0xc7   :  { %2856 = vmatpush3.bf16.msra.mxu0 %v3104_v38 }
  0xc8   :  { %2857 = vmatprep.subr.bf16.mxu0 %v3118_v34 }
  0xc9   :  { %2868 = vmatpush3.bf16.msra.mxu1 %v3109_v4 }
  0xca   :  { %2869 = vmatprep.subr.bf16.mxu1 %v3118_v34 }
  0xcb   :  { %2858 = vmatpush3.bf16.msra.mxu0 %v3105_v39 }
  0xcc   :  { %2859 = vmatprep.subr.bf16.mxu0 %v3118_v34 }
  0xcd   :  { %2870 = vmatpush3.bf16.msra.mxu1 %v3110_v5 }
  0xce   :  { %2871 = vmatprep.subr.bf16.mxu1 %v3118_v34 }
  0xcf   :  { %2860 = vmatpush3.bf16.msra.mxu0 %v3106_v40 }
  0xd1   :  { %2872 = vmatpush3.bf16.msra.mxu1 %v3111_v6  ;;  %v2566_v6 = vld [vmem:[%s3828_s4] ss:$0 sm:$0xff] }
  0xd2   :  { %2862 = vmatmul.mubr.msk.bf16.vlgmr.msra.gmra.mxu0 %vm1696_vm1, %v3107_v41  ;;  %2873 = vmatprep.subr.bf16.mxu1 %v3118_v34 }
  0xd5   :  { %2874 = vmatpush3.bf16.msra.mxu1 %v3112_v7 }
  0xd6   :  { %2875 = vmatprep.subr.bf16.mxu1 %v3118_v34 }
  0xd9   :  { %2876 = vmatpush3.bf16.msra.mxu1 %v3113_v9 }
  0xda   :  { %2877 = vmatprep.subr.bf16.mxu1 %v3118_v34 }
  0xdd   :  { %2878 = vmatpush3.bf16.msra.mxu1 %v3114_v15 }
  0xde   :  { %2879 = vmatprep.subr.bf16.mxu1 %v3118_v34 }
  0xe1   :  { %2880 = vmatpush3.bf16.msra.mxu1 %v3115_v22 }
  0xe2   :  { %v2591_v42 = vpop.f32.mrf.mxu0 }
  0xe4   :  { %v2592_v44 = vpop.f32.mrf.mxu0  ;;  %v2613_v45 = vpop.f32.mrf.mxu1 }
  0xe5   :  { %v2593_v46 = vadd.f32 %v2592_v44, %v2591_v42 }
  0xe6   :  { %v2594_v47 = vpop.f32.mrf.mxu0  ;;  %v2614_v48 = vpop.f32.mrf.mxu1 }
  0xe7   :  { %v1735_v49 = vadd.f32 %v2593_v46, %v2343_v43  ;;  %v2615_v50 = vadd.f32 %v2614_v48, %v2613_v45 }
  0xe8   :  { %v2595_v51 = vpop.f32.mrf.mxu0  ;;  %v2616_v52 = vpop.f32.mrf.mxu1 }
  0xe9   :  { %v1775_v53 = vadd.f32 %v2615_v50, %v1735_v49 }
  0xea   :  { %v2617_v54 = vpop.f32.mrf.mxu1 }
 0x102   :  { %v2635_v55 = vpop.f32.mrf.mxu0 }
 0x104   :  { %v2636_v56 = vpop.f32.mrf.mxu0  ;;  %v2657_v58 = vpop.f32.mrf.mxu1 }
 0x105   :  { %v2637_v57 = vadd.f32 %v2636_v56, %v2635_v55 }
 0x106   :  { %v2638_v59 = vpop.f32.mrf.mxu0  ;;  %v2658_v61 = vpop.f32.mrf.mxu1 }
 0x107   :  { %v1815_v60 = vadd.f32 %v2637_v57, %v1775_v53  ;;  %v2659_v62 = vadd.f32 %v2658_v61, %v2657_v58 }
 0x108   :  { %v2639_v63 = vpop.f32.mrf.mxu0  ;;  %v2660_v0 = vpop.f32.mrf.mxu1 }
 0x109   :  { %v1855_v1 = vadd.f32 %v2659_v62, %v1815_v60 }
 0x10a   :  { %v2661_v2 = vpop.f32.mrf.mxu1 }
 0x122   :  { %v2679_v8 = vpop.f32.mrf.mxu0 }
 0x124   :  { %v2680_v10 = vpop.f32.mrf.mxu0  ;;  %v2701_v11 = vpop.f32.mrf.mxu1 }
 0x125   :  { %v2681_v12 = vadd.f32 %v2680_v10, %v2679_v8 }
 0x126   :  { %v2682_v13 = vpop.f32.mrf.mxu0  ;;  %v2702_v14 = vpop.f32.mrf.mxu1 }
 0x127   :  { %v1895_v16 = vadd.f32 %v2681_v12, %v1855_v1  ;;  %v2703_v17 = vadd.f32 %v2702_v14, %v2701_v11 }
 0x128   :  { %v2683_v18 = vpop.f32.mrf.mxu0  ;;  %v2704_v19 = vpop.f32.mrf.mxu1 }
 0x129   :  { %v1935_v20 = vadd.f32 %v2703_v17, %v1895_v16 }
 0x12a   :  { %v2705_v21 = vpop.f32.mrf.mxu1 }
 0x142   :  { %v2723_v23 = vpop.f32.mrf.mxu0 }
 0x144   :  { %v2724_v24 = vpop.f32.mrf.mxu0  ;;  %v2745_v25 = vpop.f32.mrf.mxu1 }
 0x145   :  { %v2725_v26 = vadd.f32 %v2724_v24, %v2723_v23 }
 0x146   :  { %v2726_v27 = vpop.f32.mrf.mxu0  ;;  %v2746_v28 = vpop.f32.mrf.mxu1 }
 0x147   :  { %v1975_v29 = vadd.f32 %v2725_v26, %v1935_v20  ;;  %v2747_v30 = vadd.f32 %v2746_v28, %v2745_v25 }
 0x148   :  { %v2727_v31 = vpop.f32.mrf.mxu0  ;;  %v2748_v32 = vpop.f32.mrf.mxu1 }
 0x149   :  { %v2015_v33 = vadd.f32 %v2747_v30, %v1975_v29 }
 0x14a   :  { %v2749_v35 = vpop.f32.mrf.mxu1 }
 0x162   :  { %v2767_v36 = vpop.f32.mrf.mxu0 }
 0x164   :  { %v2768_v34 = vpop.f32.mrf.mxu0  ;;  %v2789_v37 = vpop.f32.mrf.mxu1 }
 0x165   :  { %v2769_v44 = vadd.f32 %v2768_v34, %v2767_v36 }
 0x166   :  { %v2770_v38 = vpop.f32.mrf.mxu0  ;;  %v2790_v39 = vpop.f32.mrf.mxu1 }
 0x167   :  { %v2055_v49 = vadd.f32 %v2769_v44, %v2015_v33  ;;  %v2791_v50 = vadd.f32 %v2790_v39, %v2789_v37 }
 0x168   :  { %v2771_v40 = vpop.f32.mrf.mxu0  ;;  %v2792_v41 = vpop.f32.mrf.mxu1 }
 0x169   :  { %v2095_v55 = vadd.f32 %v2791_v50, %v2055_v49 }
 0x16a   :  { %v2793_v42 = vpop.f32.mrf.mxu1 }
 0x182   :  { %v2811_v43 = vpop.f32.mrf.mxu0 }
 0x184   :  { %v2812_v45 = vpop.f32.mrf.mxu0  ;;  %v2833_v46 = vpop.f32.mrf.mxu1 }
 0x185   :  { %v2813_v53 = vadd.f32 %v2812_v45, %v2811_v43 }
 0x186   :  { %v2814_v47 = vpop.f32.mrf.mxu0  ;;  %v2834_v48 = vpop.f32.mrf.mxu1 }
 0x187   :  { %v2135_v56 = vadd.f32 %v2813_v53, %v2095_v55  ;;  %v2835_v57 = vadd.f32 %v2834_v48, %v2833_v46 }
 0x188   :  { %v2815_v51 = vpop.f32.mrf.mxu0  ;;  %v2836_v52 = vpop.f32.mrf.mxu1 }
 0x189   :  { %v2175_v58 = vadd.f32 %v2835_v57, %v2135_v56 }
 0x18a   :  { %v2837_v54 = vpop.f32.mrf.mxu1 }
 0x192   :  { %v2214_v59 = vpop.f32.mrf.mxu0 }
 0x193   :  { %v2215_v60 = vadd.f32 %v2214_v59, %v2175_v58 }
 0x194   :  { %v2863_v61 = vpop.f32.mrf.mxu0 }
 0x195   :  { %v2220_v62 = vmul.f32 %v2215_v60, %v2215_v60 }
 0x196   :  { %v2217_v63 = vpop.f32.mrf.mxu0 }
 0x197   :  { %v2221_v0 = vsub.f32 %v2220_v62, %v2215_v60 }
 0x198   :  { %v2864_v1 = vpop.f32.mrf.mxu0 }
 0x199   :  { %v2222_v2 = vmul.f32 0.5, %v2221_v0 }
 0x19b   :  { %3116 = vtanh.f32 %v2222_v2 }
 0x1a8   :  { %v3117_v3 = vpop.eup %3116 }
 0x1a9   :  { %v2224_v4 = vmul.f32 0.5, %v3117_v3 }
 0x1ab   :  { %v2225_v5 = vpack.c.bf16 %v2224_v4, %v2224_v4 }
 0x1ad   :  { %2882 = vmatmul.mubr.bf16.vlgmr.msra.gmra.mxu1 %v2225_v5 }
 0x26d   :  { %v2331_v7 = vpop.f32.mrf.mxu1 }
 0x26e   :  { %v2332_v8 = vadd.f32 %v2566_v6, %v2331_v7 }
 0x26f   :  { %v2883_v9 = vpop.f32.mrf.mxu1 }
 0x270   :  { %2338 = vst.msk [vmem:[%s3829_s5] sm:$0xff] %vm2337_vm2, %v2332_v8 }
 0x271   :  { %v2334_v10 = vpop.f32.mrf.mxu1 }
 0x273   :  { %v2884_v11 = vpop.f32.mrf.mxu1 }

// kernel: mnist_forward.4
= control target key start
LH: loop header
LB: loop body
LE: loop exit
PB: predicated region body
PF: predicated region fallthrough
CT: control target
= control target key end

     0   :  { %vm423_vm0 = vcmask 523264   ;;  %s3440_s1 = inlined_call_operand.vmem [shape: bf16[576,128], index: 1, kind: input, shape index: {}]   ;;  %s3441_s0 = inlined_call_operand.vmem [shape: bf16[4,56,576], index: 0, kind: input, shape index: {}]   ;;  %s3442_s2 = inlined_call_operand.vmem [shape: f32[1,128], index: 2, kind: input, shape index: {}]   ;;  %s3443_s3 = inlined_call_operand.vmem [shape: bf16[56,128], index: 3, kind: output, shape index: {}]  }
   0x1   :  { %v2645_v0 = vld [vmem:[%s3440_s1 + $0x78] sm:$0xff]   ;;  %v2668_v4 = vld [vmem:[%s3440_s1 + $0x70] sm:$0xff]   ;;  %v2692_v8 = vld [vmem:[%s3440_s1 + $0x68] sm:$0xff]  }
   0x2   :  { %v2650_v1 = vld [vmem:[%s3440_s1 + $0x38] sm:$0xff]   ;;  %2010 = vmatprep.subr.bf16.mxu0 %v2645_v0  ;;  %v2674_v5 = vld [vmem:[%s3440_s1 + $0x30] sm:$0xff]   ;;  %v2698_v9 = vld [vmem:[%s3440_s1 + $0x28] sm:$0xff]  }
   0x3   :  { %v2656_v2 = vld [vmem:[%s3440_s1 + $0xf8] sm:$0xff]   ;;  %2011 = vmatpush3.bf16.msra.mxu0 %v2650_v1  ;;  %v2680_v6 = vld [vmem:[%s3440_s1 + $0xf0] sm:$0xff]   ;;  %v2704_v10 = vld [vmem:[%s3440_s1 + $0xe8] sm:$0xff]  }
   0x4   :  { %v2662_v3 = vld [vmem:[%s3440_s1 + $0xb8] sm:$0xff]   ;;  %2050 = vmatprep.subr.bf16.mxu1 %v2656_v2  ;;  %2012 = vmatprep.subr.bf16.mxu0 %v2668_v4  ;;  %v2686_v7 = vld [vmem:[%s3440_s1 + $0xb0] sm:$0xff]   ;;  %v2710_v11 = vld [vmem:[%s3440_s1 + $0xa8] sm:$0xff]  }
   0x5   :  { %2051 = vmatpush3.bf16.msra.mxu1 %v2662_v3  ;;  %v2716_v12 = vld [vmem:[%s3440_s1 + $0x60] sm:$0xff]   ;;  %v2740_v16 = vld [vmem:[%s3440_s1 + $0x58] sm:$0xff]   ;;  %v2764_v20 = vld [vmem:[%s3440_s1 + $0x50] sm:$0xff]  }
   0x6   :  { %2052 = vmatprep.subr.bf16.mxu1 %v2680_v6  ;;  %v2722_v13 = vld [vmem:[%s3440_s1 + $0x20] sm:$0xff]   ;;  %v2746_v17 = vld [vmem:[%s3440_s1 + $0x18] sm:$0xff]   ;;  %v2770_v21 = vld [vmem:[%s3440_s1 + $0x10] sm:$0xff]  }
   0x7   :  { %2013 = vmatpush3.bf16.msra.mxu0 %v2674_v5  ;;  %v2728_v14 = vld [vmem:[%s3440_s1 + $0xe0] sm:$0xff]   ;;  %v2752_v18 = vld [vmem:[%s3440_s1 + $0xd8] sm:$0xff]   ;;  %v2776_v22 = vld [vmem:[%s3440_s1 + $0xd0] sm:$0xff]  }
   0x8   :  { %2014 = vmatprep.subr.bf16.mxu0 %v2692_v8  ;;  %v2734_v15 = vld [vmem:[%s3440_s1 + $0xa0] sm:$0xff]   ;;  %v2758_v19 = vld [vmem:[%s3440_s1 + $0x98] sm:$0xff]   ;;  %v2782_v23 = vld [vmem:[%s3440_s1 + $0x90] sm:$0xff]  }
   0x9   :  { %2053 = vmatpush3.bf16.msra.mxu1 %v2686_v7  ;;  %v2788_v24 = vld [vmem:[%s3440_s1 + $0x48] sm:$0xff]   ;;  %v2812_v28 = vld [vmem:[%s3440_s1 + $0x40] sm:$0xff]   ;;  %v2842_v34 = vld [vmem:[%s3440_s1 + $0x118] sm:$0xff]  }
   0xa   :  { %2054 = vmatprep.subr.bf16.mxu1 %v2704_v10  ;;  %v2794_v25 = vld [vmem:[%s3440_s1 + $0x8] sm:$0xff]   ;;  %v2818_v29 = vld [vmem:[%s3440_s1] sm:$0xff]   ;;  %v2860_v38 = vld [vmem:[%s3440_s1 + $0x110] sm:$0xff]  }
   0xb   :  { %2015 = vmatpush3.bf16.msra.mxu0 %v2698_v9  ;;  %v2800_v26 = vld [vmem:[%s3440_s1 + $0xc8] sm:$0xff]   ;;  %v2824_v30 = vld [vmem:[%s3440_s1 + $0xc0] sm:$0xff]   ;;  %v2476_v44 = vld [vmem:[%s3441_s0 + $0x5c] ss:$20 sps:$4 sm:$0xff]  }
   0xc   :  { %2016 = vmatprep.subr.bf16.mxu0 %v2716_v12  ;;  %v2806_v27 = vld [vmem:[%s3440_s1 + $0x88] sm:$0xff]   ;;  %v2457_v31 = vld [vmem:[%s3441_s0] ss:$20 sps:$4 sm:$0xff]   ;;  %v2459_v32 = vld [vmem:[%s3441_s0 + $0x4] ss:$20 sps:$4 sm:$0xff]  }
   0xd   :  { %2055 = vmatpush3.bf16.msra.mxu1 %v2710_v11  ;;  %v2837_v33 = vld [vmem:[%s3440_s1 + $0x80] sm:$0xff]   ;;  %468 = vmatprep.mubr.bf16.mxu0 %v2459_v32  ;;  %v2462_v35 = vld [vmem:[%s3441_s0 + $0x8] ss:$20 sps:$4 sm:$0xff]   ;;  %v2478_v50 = vld [vmem:[%s3441_s0 + $0x58] ss:$20 sps:$4 sm:$0xff]  }
   0xe   :  { %2056 = vmatprep.subr.bf16.mxu1 %v2728_v14  ;;  %v2464_v36 = vld [vmem:[%s3441_s0 + $0xc] ss:$20 sps:$4 sm:$0xff]   ;;  %v2469_v39 = vld [vmem:[%s3441_s0 + $0x34] ss:$20 sps:$4 sm:$0xff]   ;;  %v2471_v43 = vld [vmem:[%s3441_s0 + $0x30] ss:$20 sps:$4 sm:$0xff]  }
   0xf   :  { %2017 = vmatpush3.bf16.msra.mxu0 %v2722_v13  ;;  %v2465_v37 = vld [vmem:[%s3441_s0 + $0x2c] ss:$20 sps:$4 sm:$0xff]   ;;  %532 = vmatprep.mubr.bf16.mxu1 %v2464_v36  ;;  %v2467_v40 = vld [vmem:[%s3441_s0 + $0x28] ss:$20 sps:$4 sm:$0xff]   ;;  %v2474_v47 = vld [vmem:[%s3441_s0 + $0x50] ss:$20 sps:$4 sm:$0xff]  }
  0x10   :  { %2018 = vmatprep.subr.bf16.mxu0 %v2740_v16  ;;  %v2472_v41 = vld [vmem:[%s3441_s0 + $0x54] ss:$20 sps:$4 sm:$0xff]   ;;  %v2891_v45 = vld [vmem:[%s3440_s1 + $0x100] sm:$0xff]   ;;  %v106_v46 = vld [vmem:[%s3441_s0 + $0x78] sm:$0xff] }
  0x11   :  { %2057 = vmatpush3.bf16.msra.mxu1 %v2734_v15  ;;  %v2878_v42 = vld [vmem:[%s3440_s1 + $0x108] sm:$0xff]   ;;  %v1800_v48 = vcombine.high %v106_v46, %v106_v46  ;;  %v107_v49 = vld [vmem:[%s3441_s0 + $0x80] sm:$0xff]  ;;  %v1799_v52 = vcombine.low %v106_v46, %v106_v46  ;;  %v2496_v32 = vld [vmem:[%s3441_s0 + $0xdc] ss:$20 sps:$4 sm:$0xff]  }
  0x12   :  { %2058 = vmatprep.subr.bf16.mxu1 %v2752_v18  ;;  %v1802_v51 = vcombine.high %v107_v49, %v107_v49  ;;  %v2484_v53 = vld [vmem:[%s3441_s0 + $0x10] ss:$20 sps:$4 sm:$0xff]   ;;  %v1801_v54 = vcombine.low %v107_v49, %v107_v49  ;;  %v2485_v56 = vld [vmem:[%s3441_s0 + $0x38] ss:$20 sps:$4 sm:$0xff]   ;;  %v2489_v57 = vld [vmem:[%s3441_s0 + $0x60] ss:$20 sps:$4 sm:$0xff]  }
  0x13   :  { %2019 = vmatpush3.bf16.msra.mxu0 %v2746_v17  ;;  %v2488_v55 = vld [vmem:[%s3441_s0 + $0x90] ss:$20 sps:$4 sm:$0xff]   ;;  %v2486_v58 = vld [vmem:[%s3441_s0 + $0x8c] ss:$20 sps:$4 sm:$0xff]   ;;  %v2490_v60 = vld [vmem:[%s3441_s0 + $0x88] ss:$0 sps:$4 sm:$0xff]  }
  0x14   :  { %2020 = vmatprep.subr.bf16.mxu0 %v2764_v20  ;;  %v2491_v59 = vld [vmem:[%s3441_s0 + $0xb8] ss:$20 sps:$4 sm:$0xff]   ;;  %v2493_v62 = vld [vmem:[%s3441_s0 + $0xb4] ss:$20 sps:$4 sm:$0xff]  }
  0x15   :  { %2059 = vmatpush3.bf16.msra.mxu1 %v2758_v19  ;;  %v2501_v61 = vld [vmem:[%s3441_s0 + $0x98] ss:$20 sps:$4 sm:$0xff]   ;;  %v2494_v63 = vld [vmem:[%s3441_s0 + $0xe0] ss:$20 sps:$4 sm:$0xff]   ;;  %v2507_v46 = vld [vmem:[%s3441_s0 + $0xe8] ss:$20 sps:$4 sm:$0xff]  }
  0x16   :  { %2060 = vmatprep.subr.bf16.mxu1 %v2776_v22  ;;  %v1863_v49 = vld [vmem:[%s3441_s0 + $0x10c] sm:$0xff] }
  0x17   :  { %2021 = vmatpush3.bf16.msra.mxu0 %v2770_v21 }
  0x18   :  { %2022 = vmatprep.subr.bf16.mxu0 %v2788_v24 }
  0x19   :  { %2061 = vmatpush3.bf16.msra.mxu1 %v2782_v23 }
  0x1a   :  { %2062 = vmatprep.subr.bf16.mxu1 %v2800_v26 }
  0x1b   :  { %2023 = vmatpush3.bf16.msra.mxu0 %v2794_v25 }
  0x1c   :  { %2024 = vmatprep.subr.bf16.mxu0 %v2812_v28 }
  0x1d   :  { %2063 = vmatpush3.bf16.msra.mxu1 %v2806_v27 }
  0x1e   :  { %2064 = vmatprep.subr.bf16.mxu1 %v2824_v30 }
  0x1f   :  { %2025 = vmatpush3.bf16.msra.mxu0 %v2818_v29 }
  0x20   :  { %2362 = vmatprep.subr.bf16.mxu0 %v2842_v34 }
  0x21   :  { %2065 = vmatpush3.bf16.msra.mxu1 %v2837_v33 }
  0x22   :  { %469 = vmatmul.mubr.bf16.vlgmr.msra.gmra.mxu0 %v2457_v31  ;;  %2098 = vmatprep.subr.bf16.mxu1 %v2645_v0  ;;  %v1862_v31 = vld [vmem:[%s3441_s0 + $0x104] sm:$0xff] }
  0x23   :  { %2363 = vmatpush3.bf16.msra.mxu0 %v2842_v34  ;;  %476 = vmatprep.mubr.bf16.mxu0 %v2465_v37  ;;  %v1880_v36 = vcombine.low %v1862_v31, %v1862_v31  ;;  %v2502_v37 = vld [vmem:[%s3441_s0 + $0x9c] ss:$20 sps:$4 sm:$0xff]  }
  0x24   :  { %533 = vmatmul.mubr.bf16.vlgmr.msra.gmra.mxu1 %v2462_v35  ;;  %2364 = vmatprep.subr.bf16.mxu0 %v2860_v38  ;;  %v1881_v35 = vcombine.high %v1862_v31, %v1862_v31 }
  0x25   :  { %2099 = vmatpush3.bf16.msra.mxu1 %v2650_v1  ;;  %540 = vmatprep.mubr.bf16.mxu1 %v2469_v39  ;;  %v2499_v39 = vld [vmem:[%s3441_s0 + $0x94] ss:$20 sps:$4 sm:$0xff]  }
  0x26   :  { %2100 = vmatprep.subr.bf16.mxu1 %v2668_v4 }
  0x27   :  { %2365 = vmatpush3.bf16.msra.mxu0 %v2860_v38 }
  0x28   :  { %2366 = vmatprep.subr.bf16.mxu0 %v2878_v42 }
  0x29   :  { %2101 = vmatpush3.bf16.msra.mxu1 %v2674_v5 }
  0x2a   :  { %477 = vmatmul.mubr.bf16.gmra.mxu0 %v2467_v40  ;;  %2102 = vmatprep.subr.bf16.mxu1 %v2692_v8  ;;  %v2504_v40 = vld [vmem:[%s3441_s0 + $0xc0] ss:$20 sps:$4 sm:$0xff]  }
  0x2b   :  { %484 = vmatprep.mubr.bf16.mxu0 %v2472_v41  ;;  %2367 = vmatpush3.bf16.msra.mxu0 %v2878_v42  ;;  %v2503_v41 = vld [vmem:[%s3441_s0 + $0xc4] ss:$20 sps:$4 sm:$0xff]  }
  0x2c   :  { %541 = vmatmul.mubr.bf16.gmra.mxu1 %v2471_v43  ;;  %2368 = vmatprep.subr.bf16.mxu0 %v2891_v45  ;;  %v2510_v43 = vld [vmem:[%s3441_s0 + $0xec] ss:$20 sps:$4 sm:$0xff]  }
  0x2d   :  { %2103 = vmatpush3.bf16.msra.mxu1 %v2698_v9  ;;  %548 = vmatprep.mubr.bf16.mxu1 %v2476_v44  ;;  %v2506_v44 = vld [vmem:[%s3441_s0 + $0xbc] ss:$20 sps:$4 sm:$0xff]  }
  0x2e   :  { %2104 = vmatprep.subr.bf16.mxu1 %v2716_v12 }
  0x2f   :  { %2369 = vmatpush3.bf16.msra.mxu0 %v2891_v45 }
  0x30   :  { %2138 = vmatprep.subr.bf16.mxu0 %v2656_v2 }
  0x31   :  { %2105 = vmatpush3.bf16.msra.mxu1 %v2722_v13 }
  0x32   :  { %485 = vmatmul.mubr.bf16.gmra.mxu0 %v2474_v47  ;;  %2106 = vmatprep.subr.bf16.mxu1 %v2740_v16  ;;  %v2511_v47 = vld [vmem:[%s3441_s0 + $0x114] ss:$0 sps:$4 sm:$0xff]  }
  0x33   :  { %492 = vmatprep.mubr.bf16.mxu0 %v1800_v48  ;;  %v2519_v48 = vld [vmem:[%s3441_s0 + $0x124] ss:$20 sps:$4 sm:$0xff]  }
  0x34   :  { %549 = vmatmul.mubr.bf16.gmra.mxu1 %v2478_v50  ;;  %v2509_v50 = vld [vmem:[%s3441_s0 + $0xe4] ss:$20 sps:$4 sm:$0xff]  }
  0x35   :  { %2107 = vmatpush3.bf16.msra.mxu1 %v2746_v17  ;;  %556 = vmatprep.mubr.bf16.mxu1 %v1802_v51  ;;  %v1883_v51 = vcombine.high %v1863_v49, %v1863_v49 }
  0x36   :  { %2108 = vmatprep.subr.bf16.mxu1 %v2764_v20 }
  0x39   :  { %2109 = vmatpush3.bf16.msra.mxu1 %v2770_v21 }
  0x3a   :  { %493 = vmatmul.mubr.bf16.gmra.mxu0 %v1799_v52  ;;  %2110 = vmatprep.subr.bf16.mxu1 %v2788_v24  ;;  %v1882_v52 = vcombine.low %v1863_v49, %v1863_v49 }
  0x3b   :  { %2370 = vmatprep.mubr.msk.bf16.mxu0 %vm423_vm0, %v2484_v53  ;;  %v2516_v53 = vld [vmem:[%s3441_s0 + $0x11c] ss:$20 sps:$4 sm:$0xff]  }
  0x3c   :  { %557 = vmatmul.mubr.bf16.gmra.mxu1 %v1801_v54  ;;  %v2514_v54 = vld [vmem:[%s3441_s0 + $0x118] ss:$20 sps:$4 sm:$0xff]  }
  0x3d   :  { %2111 = vmatpush3.bf16.msra.mxu1 %v2794_v25  ;;  %821 = vmatprep.mubr.bf16.mxu1 %v2488_v55  ;;  %v2520_v55 = vld [vmem:[%s3441_s0 + $0x144] ss:$20 sps:$4 sm:$0xff]  }
  0x3e   :  { %2112 = vmatprep.subr.bf16.mxu1 %v2812_v28 }
  0x41   :  { %2113 = vmatpush3.bf16.msra.mxu1 %v2818_v29 }
  0x42   :  { %2371 = vmatmul.mubr.msk.bf16.vlgmr.msra.gmra.mxu0 %vm423_vm0, %v2485_v56  ;;  %2378 = vmatprep.subr.bf16.mxu1 %v2842_v34  ;;  %v2517_v56 = vld [vmem:[%s3441_s0 + $0x120] ss:$20 sps:$4 sm:$0xff]  }
  0x43   :  { %2139 = vmatpush3.bf16.msra.mxu0 %v2662_v3  ;;  %2374 = vmatprep.mubr.msk.bf16.mxu0 %vm423_vm0, %v2489_v57  ;;  %v2523_v57 = vld [vmem:[%s3441_s0 + $0x14c] ss:$20 sps:$4 sm:$0xff]  }
  0x44   :  { %2140 = vmatprep.subr.bf16.mxu0 %v2680_v6  ;;  %822 = vmatmul.mubr.bf16.vlgmr.msra.gmra.mxu1 %v2486_v58  ;;  %v2522_v58 = vld [vmem:[%s3441_s0 + $0x140] ss:$20 sps:$4 sm:$0xff]  }
  0x45   :  { %829 = vmatprep.mubr.bf16.mxu1 %v2491_v59  ;;  %2379 = vmatpush3.bf16.msra.mxu1 %v2842_v34  ;;  %v2526_v59 = vld [vmem:[%s3441_s0 + $0x16c] ss:$20 sps:$4 sm:$0xff]  }
  0x46   :  { %2380 = vmatprep.subr.bf16.mxu1 %v2860_v38 }
  0x47   :  { %2141 = vmatpush3.bf16.msra.mxu0 %v2686_v7 }
  0x48   :  { %2142 = vmatprep.subr.bf16.mxu0 %v2704_v10 }
  0x49   :  { %2381 = vmatpush3.bf16.msra.mxu1 %v2860_v38 }
  0x4a   :  { %2375 = vmatmul.mubr.msk.bf16.gmra.mxu0 %vm423_vm0, %v2490_v60  ;;  %2382 = vmatprep.subr.bf16.mxu1 %v2878_v42  ;;  %v1908_v60 = vld [vmem:[%s3441_s0 + $0x198] sm:$0xff] }
  0x4b   :  { %2143 = vmatpush3.bf16.msra.mxu0 %v2710_v11  ;;  %885 = vmatprep.mubr.bf16.mxu0 %v2501_v61  ;;  %v2531_v61 = vld [vmem:[%s3441_s0 + $0x170] ss:$20 sps:$4 sm:$0xff]  }
  0x4c   :  { %2144 = vmatprep.subr.bf16.mxu0 %v2728_v14  ;;  %830 = vmatmul.mubr.bf16.gmra.mxu1 %v2493_v62  ;;  %v2536_v62 = vld [vmem:[%s3441_s0 + $0x128] ss:$20 sps:$4 sm:$0xff]  }
  0x4d   :  { %837 = vmatprep.mubr.bf16.mxu1 %v2494_v63  ;;  %2383 = vmatpush3.bf16.msra.mxu1 %v2878_v42  ;;  %v1927_v63 = vcombine.low %v1908_v60, %v1908_v60 }
  0x4e   :  { %2384 = vmatprep.subr.bf16.mxu1 %v2891_v45 }
  0x4f   :  { %2145 = vmatpush3.bf16.msra.mxu0 %v2734_v15 }
  0x50   :  { %2146 = vmatprep.subr.bf16.mxu0 %v2752_v18 }
  0x51   :  { %2385 = vmatpush3.bf16.msra.mxu1 %v2891_v45 }
  0x52   :  { %2226 = vmatprep.subr.bf16.mxu1 %v2656_v2 }
  0x53   :  { %2147 = vmatpush3.bf16.msra.mxu0 %v2758_v19 }
  0x54   :  { %2148 = vmatprep.subr.bf16.mxu0 %v2776_v22  ;;  %838 = vmatmul.mubr.bf16.gmra.mxu1 %v2496_v32 }
  0x55   :  { %845 = vmatprep.mubr.bf16.mxu1 %v1881_v35 }
  0x57   :  { %2149 = vmatpush3.bf16.msra.mxu0 %v2782_v23 }
  0x58   :  { %2150 = vmatprep.subr.bf16.mxu0 %v2800_v26 }
  0x5b   :  { %2151 = vmatpush3.bf16.msra.mxu0 %v2806_v27 }
  0x5c   :  { %2152 = vmatprep.subr.bf16.mxu0 %v2824_v30  ;;  %846 = vmatmul.mubr.bf16.gmra.mxu1 %v1880_v36 }
  0x5d   :  { %2386 = vmatprep.mubr.msk.bf16.mxu1 %vm423_vm0, %v2502_v37 }
  0x5f   :  { %2153 = vmatpush3.bf16.msra.mxu0 %v2837_v33 }
  0x60   :  { %2186 = vmatprep.subr.bf16.mxu0 %v2645_v0 }
  0x62   :  { %886 = vmatmul.mubr.bf16.vlgmr.msra.gmra.mxu0 %v2499_v39 }
  0x63   :  { %2187 = vmatpush3.bf16.msra.mxu0 %v2650_v1  ;;  %893 = vmatprep.mubr.bf16.mxu0 %v2504_v40 }
  0x64   :  { %2188 = vmatprep.subr.bf16.mxu0 %v2668_v4  ;;  %2387 = vmatmul.mubr.msk.bf16.vlgmr.msra.gmra.mxu1 %vm423_vm0, %v2503_v41 }
  0x65   :  { %2227 = vmatpush3.bf16.msra.mxu1 %v2662_v3  ;;  %2390 = vmatprep.mubr.msk.bf16.mxu1 %vm423_vm0, %v2510_v43 }
  0x66   :  { %2228 = vmatprep.subr.bf16.mxu1 %v2680_v6 }
  0x67   :  { %2189 = vmatpush3.bf16.msra.mxu0 %v2674_v5 }
  0x68   :  { %2190 = vmatprep.subr.bf16.mxu0 %v2692_v8 }
  0x69   :  { %2229 = vmatpush3.bf16.msra.mxu1 %v2686_v7 }
  0x6a   :  { %894 = vmatmul.mubr.bf16.gmra.mxu0 %v2506_v44  ;;  %2230 = vmatprep.subr.bf16.mxu1 %v2704_v10 }
  0x6b   :  { %2191 = vmatpush3.bf16.msra.mxu0 %v2698_v9  ;;  %901 = vmatprep.mubr.bf16.mxu0 %v2507_v46 }
  0x6c   :  { %2192 = vmatprep.subr.bf16.mxu0 %v2716_v12  ;;  %2391 = vmatmul.mubr.msk.bf16.gmra.mxu1 %vm423_vm0, %v2511_v47 }
  0x6d   :  { %2231 = vmatpush3.bf16.msra.mxu1 %v2710_v11  ;;  %1245 = vmatprep.mubr.bf16.mxu1 %v2519_v48 }
  0x6e   :  { %2232 = vmatprep.subr.bf16.mxu1 %v2728_v14 }
  0x6f   :  { %2193 = vmatpush3.bf16.msra.mxu0 %v2722_v13 }
  0x70   :  { %2194 = vmatprep.subr.bf16.mxu0 %v2740_v16 }
  0x71   :  { %2233 = vmatpush3.bf16.msra.mxu1 %v2734_v15 }
  0x72   :  { %902 = vmatmul.mubr.bf16.gmra.mxu0 %v2509_v50  ;;  %2234 = vmatprep.subr.bf16.mxu1 %v2752_v18 }
  0x73   :  { %2195 = vmatpush3.bf16.msra.mxu0 %v2746_v17  ;;  %909 = vmatprep.mubr.bf16.mxu0 %v1883_v51 }
  0x74   :  { %2196 = vmatprep.subr.bf16.mxu0 %v2764_v20 }
  0x75   :  { %2235 = vmatpush3.bf16.msra.mxu1 %v2758_v19 }
  0x76   :  { %2236 = vmatprep.subr.bf16.mxu1 %v2776_v22 }
  0x77   :  { %2197 = vmatpush3.bf16.msra.mxu0 %v2770_v21 }
  0x78   :  { %2198 = vmatprep.subr.bf16.mxu0 %v2788_v24 }
  0x79   :  { %2237 = vmatpush3.bf16.msra.mxu1 %v2782_v23 }
  0x7a   :  { %910 = vmatmul.mubr.bf16.gmra.mxu0 %v1882_v52  ;;  %2238 = vmatprep.subr.bf16.mxu1 %v2800_v26 }
  0x7b   :  { %2199 = vmatpush3.bf16.msra.mxu0 %v2794_v25  ;;  %1181 = vmatprep.mubr.bf16.mxu0 %v2516_v53 }
  0x7c   :  { %2200 = vmatprep.subr.bf16.mxu0 %v2812_v28 }
  0x7d   :  { %2239 = vmatpush3.bf16.msra.mxu1 %v2806_v27 }
  0x7e   :  { %2240 = vmatprep.subr.bf16.mxu1 %v2824_v30 }
  0x7f   :  { %2201 = vmatpush3.bf16.msra.mxu0 %v2818_v29 }
  0x80   :  { %2394 = vmatprep.subr.bf16.mxu0 %v2842_v34 }
  0x81   :  { %2241 = vmatpush3.bf16.msra.mxu1 %v2837_v33 }
  0x82   :  { %1182 = vmatmul.mubr.bf16.vlgmr.msra.gmra.mxu0 %v2514_v54  ;;  %2274 = vmatprep.subr.bf16.mxu1 %v2645_v0  ;;  %v2525_v0 = vld [vmem:[%s3441_s0 + $0x148] ss:$20 sps:$4 sm:$0xff]  }
  0x83   :  { %2395 = vmatpush3.bf16.msra.mxu0 %v2842_v34  ;;  %1189 = vmatprep.mubr.bf16.mxu0 %v2520_v55 }
  0x84   :  { %2396 = vmatprep.subr.bf16.mxu0 %v2860_v38  ;;  %1246 = vmatmul.mubr.bf16.vlgmr.msra.gmra.mxu1 %v2517_v56 }
  0x85   :  { %2275 = vmatpush3.bf16.msra.mxu1 %v2650_v1  ;;  %1253 = vmatprep.mubr.bf16.mxu1 %v2523_v57  ;;  %v2529_v1 = vld [vmem:[%s3441_s0 + $0x174] ss:$20 sps:$4 sm:$0xff]  }
  0x86   :  { %2276 = vmatprep.subr.bf16.mxu1 %v2668_v4  ;;  %v1907_v4 = vld [vmem:[%s3441_s0 + $0x190] sm:$0xff] }
  0x87   :  { %2397 = vmatpush3.bf16.msra.mxu0 %v2860_v38 }
  0x88   :  { %2398 = vmatprep.subr.bf16.mxu0 %v2878_v42 }
  0x89   :  { %2277 = vmatpush3.bf16.msra.mxu1 %v2674_v5  ;;  %v2528_v5 = vld [vmem:[%s3441_s0 + $0x168] ss:$20 sps:$4 sm:$0xff]  }
  0x8a   :  { %1190 = vmatmul.mubr.bf16.gmra.mxu0 %v2522_v58  ;;  %2278 = vmatprep.subr.bf16.mxu1 %v2692_v8  ;;  %v1926_v8 = vcombine.high %v1907_v4, %v1907_v4 }
  0x8b   :  { %1197 = vmatprep.mubr.bf16.mxu0 %v2526_v59  ;;  %2399 = vmatpush3.bf16.msra.mxu0 %v2878_v42 }
  0x8c   :  { %1254 = vmatmul.mubr.bf16.gmra.mxu1 %v2525_v0  ;;  %2400 = vmatprep.subr.bf16.mxu0 %v2891_v45 }
  0x8d   :  { %2279 = vmatpush3.bf16.msra.mxu1 %v2698_v9  ;;  %1261 = vmatprep.mubr.bf16.mxu1 %v2529_v1  ;;  %v1928_v9 = vcombine.high %v1908_v60, %v1908_v60 }
  0x8e   :  { %2280 = vmatprep.subr.bf16.mxu1 %v2716_v12  ;;  %v1925_v12 = vcombine.low %v1907_v4, %v1907_v4 }
  0x8f   :  { %2401 = vmatpush3.bf16.msra.mxu0 %v2891_v45 }
  0x90   :  { %2314 = vmatprep.subr.bf16.mxu0 %v2656_v2  ;;  %v2540_v2 = vld [vmem:[%s3441_s0 + $0x1a8] ss:$20 sps:$4 sm:$0xff]  }
  0x91   :  { %2281 = vmatpush3.bf16.msra.mxu1 %v2722_v13  ;;  %v2537_v13 = vld [vmem:[%s3441_s0 + $0x150] ss:$20 sps:$4 sm:$0xff]  }
  0x92   :  { %1198 = vmatmul.mubr.bf16.gmra.mxu0 %v2528_v5  ;;  %2282 = vmatprep.subr.bf16.mxu1 %v2740_v16  ;;  %v2541_v16 = vld [vmem:[%s3441_s0 + $0x178] ss:$20 sps:$4 sm:$0xff]  }
  0x93   :  { %1205 = vmatprep.mubr.bf16.mxu0 %v1926_v8 }
  0x94   :  { %1262 = vmatmul.mubr.bf16.gmra.mxu1 %v2531_v61 }
  0x95   :  { %2283 = vmatpush3.bf16.msra.mxu1 %v2746_v17  ;;  %1269 = vmatprep.mubr.bf16.mxu1 %v1928_v9  ;;  %v2538_v17 = vld [vmem:[%s3441_s0 + $0x1a4] ss:$20 sps:$4 sm:$0xff]  }
  0x96   :  { %2284 = vmatprep.subr.bf16.mxu1 %v2764_v20  ;;  %v2543_v20 = vld [vmem:[%s3441_s0 + $0x1d0] ss:$20 sps:$4 sm:$0xff]  }
  0x99   :  { %2285 = vmatpush3.bf16.msra.mxu1 %v2770_v21  ;;  %v2542_v21 = vld [vmem:[%s3441_s0 + $0x1a0] ss:$0 sps:$4 sm:$0xff]  }
  0x9a   :  { %1206 = vmatmul.mubr.bf16.gmra.mxu0 %v1925_v12  ;;  %2286 = vmatprep.subr.bf16.mxu1 %v2788_v24  ;;  %v2546_v24 = vld [vmem:[%s3441_s0 + $0x1f8] ss:$20 sps:$4 sm:$0xff]  }
  0x9b   :  { %2402 = vmatprep.mubr.msk.bf16.mxu0 %vm423_vm0, %v2536_v62 }
  0x9c   :  { %1270 = vmatmul.mubr.bf16.gmra.mxu1 %v1927_v63 }
  0x9d   :  { %2287 = vmatpush3.bf16.msra.mxu1 %v2794_v25  ;;  %1541 = vmatprep.mubr.bf16.mxu1 %v2540_v2  ;;  %v2558_v25 = vld [vmem:[%s3441_s0 + $0x1d4] ss:$20 sps:$4 sm:$0xff]  }
  0x9e   :  { %2288 = vmatprep.subr.bf16.mxu1 %v2812_v28  ;;  %v1953_v28 = vld [vmem:[%s3441_s0 + $0x224] sm:$0xff] }
  0xa1   :  { %2289 = vmatpush3.bf16.msra.mxu1 %v2818_v29  ;;  %v2561_v29 = vld [vmem:[%s3441_s0 + $0x1fc] ss:$20 sps:$4 sm:$0xff]  }
  0xa2   :  { %2403 = vmatmul.mubr.msk.bf16.vlgmr.msra.gmra.mxu0 %vm423_vm0, %v2537_v13  ;;  %2410 = vmatprep.subr.bf16.mxu1 %v2842_v34 }
  0xa3   :  { %2315 = vmatpush3.bf16.msra.mxu0 %v2662_v3  ;;  %2406 = vmatprep.mubr.msk.bf16.mxu0 %vm423_vm0, %v2541_v16  ;;  %v2553_v3 = vld [vmem:[%s3441_s0 + $0x1b0] ss:$20 sps:$4 sm:$0xff]  }
  0xa4   :  { %2316 = vmatprep.subr.bf16.mxu0 %v2680_v6  ;;  %1542 = vmatmul.mubr.bf16.vlgmr.msra.gmra.mxu1 %v2538_v17  ;;  %v2545_v6 = vld [vmem:[%s3441_s0 + $0x1cc] ss:$20 sps:$4 sm:$0xff]  }
  0xa5   :  { %1549 = vmatprep.mubr.bf16.mxu1 %v2543_v20  ;;  %2411 = vmatpush3.bf16.msra.mxu1 %v2842_v34 }
  0xa6   :  { %2412 = vmatprep.subr.bf16.mxu1 %v2860_v38 }
  0xa7   :  { %2317 = vmatpush3.bf16.msra.mxu0 %v2686_v7  ;;  %v1952_v7 = vld [vmem:[%s3441_s0 + $0x21c] sm:$0xff] }
  0xa8   :  { %2318 = vmatprep.subr.bf16.mxu0 %v2704_v10  ;;  %v2548_v10 = vld [vmem:[%s3441_s0 + $0x1f4] ss:$20 sps:$4 sm:$0xff]  }
  0xa9   :  { %2413 = vmatpush3.bf16.msra.mxu1 %v2860_v38  ;;  %v3217_v38 = vld [vmem:[%s3442_s2] ss:$0 sm:$0xff] }
  0xaa   :  { %2407 = vmatmul.mubr.msk.bf16.gmra.mxu0 %vm423_vm0, %v2542_v21  ;;  %2414 = vmatprep.subr.bf16.mxu1 %v2878_v42 }
  0xab   :  { %2319 = vmatpush3.bf16.msra.mxu0 %v2710_v11  ;;  %1605 = vmatprep.mubr.bf16.mxu0 %v2553_v3  ;;  %v1971_v11 = vcombine.high %v1952_v7, %v1952_v7 }
  0xac   :  { %2320 = vmatprep.subr.bf16.mxu0 %v2728_v14  ;;  %1550 = vmatmul.mubr.bf16.gmra.mxu1 %v2545_v6  ;;  %v1970_v14 = vcombine.low %v1952_v7, %v1952_v7 }
  0xad   :  { %1557 = vmatprep.mubr.bf16.mxu1 %v2546_v24  ;;  %2415 = vmatpush3.bf16.msra.mxu1 %v2878_v42 }
  0xae   :  { %2416 = vmatprep.subr.bf16.mxu1 %v2891_v45 }
  0xaf   :  { %2321 = vmatpush3.bf16.msra.mxu0 %v2734_v15  ;;  %v2554_v15 = vld [vmem:[%s3441_s0 + $0x1b4] ss:$20 sps:$4 sm:$0xff]  }
  0xb0   :  { %2322 = vmatprep.subr.bf16.mxu0 %v2752_v18  ;;  %v2551_v18 = vld [vmem:[%s3441_s0 + $0x1ac] ss:$20 sps:$4 sm:$0xff]  }
  0xb1   :  { %2417 = vmatpush3.bf16.msra.mxu1 %v2891_v45 }
  0xb3   :  { %2323 = vmatpush3.bf16.msra.mxu0 %v2758_v19  ;;  %v2556_v19 = vld [vmem:[%s3441_s0 + $0x1d8] ss:$20 sps:$4 sm:$0xff]  }
  0xb4   :  { %2324 = vmatprep.subr.bf16.mxu0 %v2776_v22  ;;  %1558 = vmatmul.mubr.bf16.gmra.mxu1 %v2548_v10  ;;  %v2555_v22 = vld [vmem:[%s3441_s0 + $0x1dc] ss:$20 sps:$4 sm:$0xff]  }
  0xb5   :  { %1565 = vmatprep.mubr.bf16.mxu1 %v1971_v11 }
  0xb7   :  { %2325 = vmatpush3.bf16.msra.mxu0 %v2782_v23  ;;  %v2562_v23 = vld [vmem:[%s3441_s0 + $0x204] ss:$20 sps:$4 sm:$0xff]  }
  0xb8   :  { %2326 = vmatprep.subr.bf16.mxu0 %v2800_v26  ;;  %v2559_v26 = vld [vmem:[%s3441_s0 + $0x200] ss:$20 sps:$4 sm:$0xff]  }
  0xbb   :  { %2327 = vmatpush3.bf16.msra.mxu0 %v2806_v27  ;;  %v2563_v27 = vld [vmem:[%s3441_s0 + $0x22c] ss:$0 sps:$4 sm:$0xff]  }
  0xbc   :  { %2328 = vmatprep.subr.bf16.mxu0 %v2824_v30  ;;  %1566 = vmatmul.mubr.bf16.gmra.mxu1 %v1970_v14  ;;  %v1973_v30 = vcombine.high %v1953_v28, %v1953_v28 }
  0xbd   :  { %2418 = vmatprep.mubr.msk.bf16.mxu1 %vm423_vm0, %v2554_v15 }
  0xbf   :  { %2329 = vmatpush3.bf16.msra.mxu0 %v2837_v33  ;;  %v1972_v33 = vcombine.low %v1953_v28, %v1953_v28 }
  0xc2   :  { %1606 = vmatmul.mubr.bf16.vlgmr.msra.gmra.mxu0 %v2551_v18 }
  0xc3   :  { %1613 = vmatprep.mubr.bf16.mxu0 %v2556_v19 }
  0xc4   :  { %2419 = vmatmul.mubr.msk.bf16.vlgmr.msra.gmra.mxu1 %vm423_vm0, %v2555_v22 }
  0xc5   :  { %2422 = vmatprep.mubr.msk.bf16.mxu1 %vm423_vm0, %v2562_v23 }
  0xca   :  { %1614 = vmatmul.mubr.bf16.gmra.mxu0 %v2558_v25 }
  0xcb   :  { %1621 = vmatprep.mubr.bf16.mxu0 %v2559_v26 }
  0xcc   :  { %2423 = vmatmul.mubr.msk.bf16.gmra.mxu1 %vm423_vm0, %v2563_v27 }
  0xd2   :  { %1622 = vmatmul.mubr.bf16.gmra.mxu0 %v2561_v29 }
  0xd3   :  { %1629 = vmatprep.mubr.bf16.mxu0 %v1973_v30 }
  0xda   :  { %1630 = vmatmul.mubr.bf16.gmra.mxu0 %v1972_v33 }
  0xe2   :  { %v2026_v34 = vpop.f32.mrf.mxu0 }
  0xe4   :  { %v2027_v42 = vpop.f32.mrf.mxu0  ;;  %v2066_v31 = vpop.f32.mrf.mxu1 }
  0xe5   :  { %v2028_v45 = vadd.f32 %v2027_v42, %v2026_v34 }
  0xe6   :  { %v2029_v32 = vpop.f32.mrf.mxu0  ;;  %v2067_v36 = vpop.f32.mrf.mxu1 }
  0xe7   :  { %v471_v35 = vadd.f32 %v2028_v45, %v3217_v38  ;;  %v2068_v37 = vadd.f32 %v2067_v36, %v2066_v31 }
  0xe8   :  { %v2030_v39 = vpop.f32.mrf.mxu0  ;;  %v2069_v41 = vpop.f32.mrf.mxu1 }
  0xe9   :  { %v2031_v40 = vadd.f32 %v2030_v39, %v2029_v32  ;;  %v535_v44 = vadd.f32 %v2068_v37, %v471_v35 }
  0xea   :  { %v2032_v43 = vpop.f32.mrf.mxu0  ;;  %v2070_v47 = vpop.f32.mrf.mxu1 }
  0xeb   :  { %v474_v46 = vadd.f32 %v2031_v40, %v3217_v38  ;;  %v2071_v48 = vadd.f32 %v2070_v47, %v2069_v41 }
  0xec   :  { %v2033_v49 = vpop.f32.mrf.mxu0  ;;  %v2072_v51 = vpop.f32.mrf.mxu1 }
  0xed   :  { %v2034_v50 = vadd.f32 %v2033_v49, %v2032_v43  ;;  %v538_v53 = vadd.f32 %v2071_v48, %v474_v46 }
  0xee   :  { %v2035_v52 = vpop.f32.mrf.mxu0  ;;  %v2073_v55 = vpop.f32.mrf.mxu1 }
  0xef   :  { %v479_v54 = vadd.f32 %v2034_v50, %v3217_v38  ;;  %v2074_v56 = vadd.f32 %v2073_v55, %v2072_v51 }
  0xf0   :  { %v2036_v57 = vpop.f32.mrf.mxu0  ;;  %v2075_v59 = vpop.f32.mrf.mxu1 }
  0xf1   :  { %v2037_v58 = vadd.f32 %v2036_v57, %v2035_v52  ;;  %v543_v1 = vadd.f32 %v2074_v56, %v479_v54 }
  0xf2   :  { %v2038_v0 = vpop.f32.mrf.mxu0  ;;  %v2076_v5 = vpop.f32.mrf.mxu1 }
  0xf3   :  { %v482_v4 = vadd.f32 %v2037_v58, %v3217_v38  ;;  %v2077_v8 = vadd.f32 %v2076_v5, %v2075_v59 }
  0xf4   :  { %v2039_v60 = vpop.f32.mrf.mxu0  ;;  %v2078_v9 = vpop.f32.mrf.mxu1 }
  0xf5   :  { %v2040_v61 = vadd.f32 %v2039_v60, %v2038_v0  ;;  %v546_v62 = vadd.f32 %v2077_v8, %v482_v4 }
  0xf6   :  { %v2041_v12 = vpop.f32.mrf.mxu0  ;;  %v2079_v2 = vpop.f32.mrf.mxu1 }
  0xf7   :  { %v487_v63 = vadd.f32 %v2040_v61, %v3217_v38  ;;  %v2080_v13 = vadd.f32 %v2079_v2, %v2078_v9 }
  0xf8   :  { %v2042_v16 = vpop.f32.mrf.mxu0  ;;  %v2081_v20 = vpop.f32.mrf.mxu1 }
  0xf9   :  { %v2043_v17 = vadd.f32 %v2042_v16, %v2041_v12  ;;  %v551_v3 = vadd.f32 %v2080_v13, %v487_v63 }
  0xfa   :  { %v2044_v21 = vpop.f32.mrf.mxu0  ;;  %v2082_v24 = vpop.f32.mrf.mxu1 }
  0xfb   :  { %v490_v6 = vadd.f32 %v2043_v17, %v3217_v38  ;;  %v2083_v7 = vadd.f32 %v2082_v24, %v2081_v20 }
  0xfc   :  { %v2045_v10 = vpop.f32.mrf.mxu0  ;;  %v2084_v14 = vpop.f32.mrf.mxu1 }
  0xfd   :  { %v2046_v11 = vadd.f32 %v2045_v10, %v2044_v21  ;;  %v554_v18 = vadd.f32 %v2083_v7, %v490_v6 }
  0xfe   :  { %v2047_v15 = vpop.f32.mrf.mxu0  ;;  %v2085_v22 = vpop.f32.mrf.mxu1 }
  0xff   :  { %v495_v19 = vadd.f32 %v2046_v11, %v3217_v38  ;;  %v2086_v23 = vadd.f32 %v2085_v22, %v2084_v14 }
 0x100   :  { %v2048_v25 = vpop.f32.mrf.mxu0  ;;  %v2087_v26 = vpop.f32.mrf.mxu1 }
 0x101   :  { %v559_v28 = vadd.f32 %v2086_v23, %v495_v19 }
 0x102   :  { %v2372_v27 = vpop.f32.mrf.mxu0  ;;  %v2088_v30 = vpop.f32.mrf.mxu1 }
 0x103   :  { %v3226_v29 = vadd.f32 %v2372_v27, %v543_v1 }
 0x104   :  { %v598_v33 = vpop.f32.mrf.mxu0  ;;  %v2114_v42 = vpop.f32.mrf.mxu1 }
 0x105   :  { %v599_v34 = vadd.f32 %v598_v33, %v535_v44  ;;  %v630_v15 = vmul.f32 %v3226_v29, %v3226_v29 }
 0x106   :  { %v2373_v45 = vpop.f32.mrf.mxu0  ;;  %v2115_v32 = vpop.f32.mrf.mxu1 }
 0x107   :  { %v3228_v31 = vadd.f32 %v2373_v45, %v546_v62  ;;  %v2116_v35 = vadd.f32 %v2115_v32, %v2114_v42  ;;  %v628_v9 = vmul.f32 %v599_v34, %v599_v34  ;;  %v637_v45 = vsub.f32 %v630_v15, %v3226_v29 }
 0x108   :  { %v601_v36 = vpop.f32.mrf.mxu0  ;;  %v2117_v39 = vpop.f32.mrf.mxu1 }
 0x109   :  { %v602_v37 = vadd.f32 %v601_v36, %v538_v53  ;;  %v824_v2 = vadd.f32 %v2116_v35, %v3217_v38  ;;  %v635_v17 = vsub.f32 %v628_v9, %v599_v34  ;;  %v631_v32 = vmul.f32 %v3228_v31, %v3228_v31 }
 0x10a   :  { %v2376_v40 = vpop.f32.mrf.mxu0  ;;  %v2118_v41 = vpop.f32.mrf.mxu1 }
 0x10b   :  { %v3230_v43 = vadd.f32 %v2376_v40, %v559_v28  ;;  %v2119_v46 = vadd.f32 %v2118_v41, %v2117_v39  ;;  %v629_v21 = vmul.f32 %v602_v37, %v602_v37  ;;  %v638_v29 = vsub.f32 %v631_v32, %v3228_v31 }
 0x10c   :  { %v614_v47 = vpop.f32.mrf.mxu0  ;;  %v2120_v49 = vpop.f32.mrf.mxu1 }
 0x10d   :  { %v3232_v48 = vadd.f32 %v614_v47, %v551_v3  ;;  %v827_v7 = vadd.f32 %v2119_v46, %v3217_v38  ;;  %v636_v22 = vsub.f32 %v629_v21, %v602_v37 }
 0x10e   :  { %v2377_v50 = vpop.f32.mrf.mxu0  ;;  %v2121_v44 = vpop.f32.mrf.mxu1 }
 0x10f   :  { %v2122_v51 = vadd.f32 %v2121_v44, %v2120_v49  ;;  %v643_v36 = vmul.f32 0.5, %v636_v22 }
 0x110   :  { %v617_v52 = vpop.f32.mrf.mxu0  ;;  %v2123_v55 = vpop.f32.mrf.mxu1 }
 0x111   :  { %v3234_v54 = vadd.f32 %v617_v52, %v554_v18  ;;  %v642_v18 = vmul.f32 0.5, %v635_v17  ;;  %v832_v28 = vadd.f32 %v2122_v51, %v3217_v38  ;;  %v644_v52 = vmul.f32 0.5, %v637_v45 }
 0x112   :  { %v2124_v56 = vpop.f32.mrf.mxu1 }
 0x113   :  { %v2125_v57 = vadd.f32 %v2124_v56, %v2123_v55  ;;  %2566 = vtanh.f32 %v642_v18  ;;  %v632_v55 = vmul.f32 %v3232_v48, %v3232_v48  ;;  %v633_v31 = vmul.f32 %v3234_v54, %v3234_v54 }
 0x114   :  { %v2126_v53 = vpop.f32.mrf.mxu1 }
 0x115   :  { %v835_v46 = vadd.f32 %v2125_v57, %v3217_v38  ;;  %v639_v9 = vsub.f32 %v632_v55, %v3232_v48 }
 0x116   :  { %v2127_v58 = vpop.f32.mrf.mxu1 }
 0x117   :  { %v2128_v59 = vadd.f32 %v2127_v58, %v2126_v53  ;;  %v646_v48 = vmul.f32 0.5, %v639_v9 }
 0x118   :  { %v2129_v0 = vpop.f32.mrf.mxu1 }
 0x11a   :  { %v2130_v1 = vpop.f32.mrf.mxu1 }
 0x11b   :  { %v3236_v4 = vadd.f32 %v2130_v1, %v2129_v0  ;;  %v840_v1 = vadd.f32 %v2128_v59, %v3217_v38 }
 0x11c   :  { %v2132_v5 = vpop.f32.mrf.mxu1 }
 0x11e   :  { %v2133_v8 = vpop.f32.mrf.mxu1 }
 0x11f   :  { %v3238_v60 = vadd.f32 %v2133_v8, %v2132_v5 }
 0x120   :  { %v2135_v61 = vpop.f32.mrf.mxu1 }
 0x122   :  { %v2154_v12 = vpop.f32.mrf.mxu0  ;;  %v2136_v62 = vpop.f32.mrf.mxu1 }
 0x123   :  { %v645_v62 = vmul.f32 0.5, %v638_v29 }
 0x124   :  { %v2155_v63 = vpop.f32.mrf.mxu0  ;;  %v2388_v16 = vpop.f32.mrf.mxu1 }
 0x125   :  { %v2156_v13 = vadd.f32 %v2155_v63, %v2154_v12 }
 0x126   :  { %v2157_v20 = vpop.f32.mrf.mxu0  ;;  %v951_v6 = vpop.f32.mrf.mxu1 }
 0x127   :  { %v888_v3 = vadd.f32 %v2156_v13, %v824_v2 }
 0x128   :  { %v2158_v24 = vpop.f32.mrf.mxu0  ;;  %v2389_v14 = vpop.f32.mrf.mxu1 }
 0x129   :  { %v2159_v10 = vadd.f32 %v2158_v24, %v2157_v20  ;;  %v952_v11 = vadd.f32 %v951_v6, %v888_v3  ;;  %v634_v3 = vmul.f32 %v3230_v43, %v3230_v43  ;;  %v640_v6 = vsub.f32 %v633_v31, %v3234_v54 }
 0x12a   :  { %v2160_v19 = vpop.f32.mrf.mxu0  ;;  %v954_v26 = vpop.f32.mrf.mxu1 }
 0x12b   :  { %v981_v23 = vmul.f32 %v952_v11, %v952_v11  ;;  %v891_v25 = vadd.f32 %v2159_v10, %v827_v7  ;;  %v2567_v10 = vpop.eup %2566  ;;  %v641_v54 = vsub.f32 %v634_v3, %v3230_v43 }
 0x12c   :  { %v2161_v27 = vpop.f32.mrf.mxu0  ;;  %v3245_v42 = vpop.f32.mrf.mxu1 }
 0x12d   :  { %v988_v30 = vsub.f32 %v981_v23, %v952_v11  ;;  %v2162_v33 = vadd.f32 %v2161_v27, %v2160_v19  ;;  %v955_v34 = vadd.f32 %v954_v26, %v891_v25  ;;  %v3265_v26 = vmul.f32 0.5, %v2567_v10 }
 0x12e   :  { %v2163_v35 = vpop.f32.mrf.mxu0  ;;  %v967_v41 = vpop.f32.mrf.mxu1  ;;  %v647_v27 = vmul.f32 0.5, %v640_v6 }
 0x12f   :  { %v995_v37 = vmul.f32 0.5, %v988_v30  ;;  %v896_v39 = vadd.f32 %v2162_v33, %v832_v28  ;;  %v982_v40 = vmul.f32 %v955_v34, %v955_v34 }
 0x130   :  { %v2164_v47 = vpop.f32.mrf.mxu0  ;;  %v2393_v51 = vpop.f32.mrf.mxu1 }
 0x131   :  { %2568 = vtanh.f32 %v995_v37  ;;  %v960_v49 = vadd.f32 %v2388_v16, %v896_v39  ;;  %v989_v50 = vsub.f32 %v982_v40, %v955_v34  ;;  %v2165_v44 = vadd.f32 %v2164_v47, %v2163_v35 }
 0x132   :  { %v2166_v56 = vpop.f32.mrf.mxu0  ;;  %2570 = vtanh.f32 %v643_v36  ;;  %v843_v16 = vadd.f32 %v3236_v4, %v3217_v38  ;;  %v970_v7 = vpop.f32.mrf.mxu1  ;;  %v848_v4 = vadd.f32 %v3238_v60, %v3217_v38  ;;  %v648_v40 = vmul.f32 0.5, %v641_v54 }
 0x133   :  { %v983_v53 = vmul.f32 %v960_v49, %v960_v49  ;;  %v996_v58 = vmul.f32 0.5, %v989_v50  ;;  %v899_v0 = vadd.f32 %v2165_v44, %v835_v46 }
 0x134   :  { %v2167_v57 = vpop.f32.mrf.mxu0 }
 0x135   :  { %v990_v5 = vsub.f32 %v983_v53, %v960_v49  ;;  %2572 = vtanh.f32 %v996_v58  ;;  %v963_v8 = vadd.f32 %v2389_v14, %v899_v0  ;;  %v2168_v61 = vadd.f32 %v2167_v57, %v2166_v56 }
 0x136   :  { %2574 = vtanh.f32 %v644_v52  ;;  %v2169_v12 = vpop.f32.mrf.mxu0 }
 0x137   :  { %v997_v63 = vmul.f32 0.5, %v990_v5  ;;  %v984_v2 = vmul.f32 %v963_v8, %v963_v8  ;;  %v904_v13 = vadd.f32 %v2168_v61, %v840_v1 }
 0x138   :  { %v2170_v59 = vpop.f32.mrf.mxu0 }
 0x139   :  { %2576 = vtanh.f32 %v997_v63  ;;  %v991_v17 = vsub.f32 %v984_v2, %v963_v8  ;;  %v2171_v20 = vadd.f32 %v2170_v59, %v2169_v12  ;;  %v968_v21 = vadd.f32 %v967_v41, %v904_v13 }
 0x13a   :  { %v2172_v24 = vpop.f32.mrf.mxu0  ;;  %2578 = vtanh.f32 %v645_v62 }
 0x13b   :  { %v998_v11 = vmul.f32 0.5, %v991_v17  ;;  %v985_v14 = vmul.f32 %v968_v21, %v968_v21  ;;  %v907_v15 = vadd.f32 %v2171_v20, %v843_v16 }
 0x13c   :  { %v2173_v18 = vpop.f32.mrf.mxu0 }
 0x13d   :  { %2580 = vtanh.f32 %v998_v11  ;;  %v992_v19 = vsub.f32 %v985_v14, %v968_v21  ;;  %v2174_v22 = vadd.f32 %v2173_v18, %v2172_v24  ;;  %v971_v23 = vadd.f32 %v970_v7, %v907_v15 }
 0x13e   :  { %v2569_v25 = vpop.eup %2568  ;;  %2582 = vtanh.f32 %v646_v48  ;;  %v2175_v28 = vpop.f32.mrf.mxu0 }
 0x13f   :  { %v3268_v30 = vmul.f32 0.5, %v2569_v25  ;;  %v999_v33 = vmul.f32 0.5, %v992_v19  ;;  %v912_v34 = vadd.f32 %v2174_v22, %v848_v4  ;;  %v986_v45 = vmul.f32 %v971_v23, %v971_v23  ;;  %v2571_v32 = vpop.eup %2570 }
 0x140   :  { %v2176_v60 = vpop.f32.mrf.mxu0  ;;  %v3273_v46 = vmul.f32 0.5, %v2571_v32 }
 0x141   :  { %v1016_v35 = vmax.f32 %v3265_v26, %v3268_v30  ;;  %2584 = vtanh.f32 %v999_v33  ;;  %v976_v36 = vadd.f32 %v3245_v42, %v912_v34  ;;  %v993_v37 = vsub.f32 %v986_v45, %v971_v23 }
 0x142   :  { %v2573_v39 = vpop.eup %2572  ;;  %2586 = vtanh.f32 %v647_v27  ;;  %v2202_v43 = vpop.f32.mrf.mxu0 }
 0x143   :  { %v2575_v41 = vpop.eup %2574  ;;  %v3275_v47 = vmul.f32 0.5, %v2573_v39  ;;  %v987_v49 = vmul.f32 %v976_v36, %v976_v36  ;;  %v1000_v50 = vmul.f32 0.5, %v993_v37 }
 0x144   :  { %v2203_v44 = vpop.f32.mrf.mxu0  ;;  %v2242_v42 = vpop.f32.mrf.mxu1  ;;  %v3281_v53 = vmul.f32 0.5, %v2575_v41 }
 0x145   :  { %v1017_v51 = vmax.f32 %v3273_v46, %v3275_v47  ;;  %v994_v52 = vsub.f32 %v987_v49, %v976_v36  ;;  %2588 = vtanh.f32 %v1000_v50  ;;  %v2204_v29 = vadd.f32 %v2203_v44, %v2202_v43 }
 0x146   :  { %v2577_v55 = vpop.eup %2576  ;;  %2590 = vtanh.f32 %v648_v40  ;;  %v3279_v56 = vpop.f32.mrf.mxu0 }
 0x147   :  { %v3283_v58 = vmul.f32 0.5, %v2577_v55  ;;  %v1001_v0 = vmul.f32 0.5, %v994_v52  ;;  %v1184_v1 = vadd.f32 %v2204_v29, %v3217_v38  ;;  %v2243_v57 = vpop.f32.mrf.mxu1  ;;  %v2579_v5 = vpop.eup %2578 }
 0x148   :  { %v2244_v8 = vadd.f32 %v2243_v57, %v2242_v42  ;;  %v3286_v61 = vpop.f32.mrf.mxu0  ;;  %v3292_v13 = vmul.f32 0.5, %v2579_v5 }
 0x149   :  { %2592 = vtanh.f32 %v1001_v0  ;;  %v3288_v9 = vpop.f32.mrf.mxu1  ;;  %v1018_v31 = vmax.f32 %v3281_v53, %v3283_v58 }
 0x14a   :  { %v2581_v12 = vpop.eup %2580  ;;  %v2208_v62 = vpop.f32.mrf.mxu0  ;;  %v1248_v63 = vadd.f32 %v2244_v8, %v1184_v1 }
 0x14b   :  { %v2583_v2 = vpop.eup %2582  ;;  %v3294_v16 = vmul.f32 0.5, %v2581_v12  ;;  %v3296_v59 = vpop.f32.mrf.mxu1 }
 0x14c   :  { %v2209_v17 = vpop.f32.mrf.mxu0  ;;  %v3302_v7 = vmul.f32 0.5, %v2583_v2 }
 0x14d   :  { %v2210_v20 = vadd.f32 %v2209_v17, %v2208_v62  ;;  %v2248_v21 = vpop.f32.mrf.mxu1  ;;  %v1019_v3 = vmax.f32 %v3292_v13, %v3294_v16 }
 0x14e   :  { %v2585_v48 = vpop.eup %2584  ;;  %v3300_v6 = vpop.f32.mrf.mxu0 }
 0x14f   :  { %v2587_v24 = vpop.eup %2586  ;;  %v3304_v10 = vmul.f32 0.5, %v2585_v48  ;;  %v1192_v11 = vadd.f32 %v2210_v20, %v3217_v38  ;;  %v2249_v14 = vpop.f32.mrf.mxu1 }
 0x150   :  { %v2250_v15 = vadd.f32 %v2249_v14, %v2248_v21  ;;  %v3307_v4 = vpop.f32.mrf.mxu0  ;;  %v3313_v27 = vmul.f32 0.5, %v2587_v24 }
 0x151   :  { %v1020_v18 = vmax.f32 %v3302_v7, %v3304_v10  ;;  %v3311_v19 = vpop.f32.mrf.mxu1 }
 0x152   :  { %v2589_v22 = vpop.eup %2588  ;;  %v2214_v23 = vpop.f32.mrf.mxu0  ;;  %v1256_v25 = vadd.f32 %v2250_v15, %v1192_v11 }
 0x153   :  { %v2591_v54 = vpop.eup %2590  ;;  %v3315_v28 = vmul.f32 0.5, %v2589_v22  ;;  %v3317_v33 = vpop.f32.mrf.mxu1 }
 0x154   :  { %v2215_v34 = vpop.f32.mrf.mxu0  ;;  %v3323_v39 = vmul.f32 0.5, %v2591_v54  ;;  %v2253_v58 = vadd.f32 %v3317_v33, %v3311_v19 }
 0x155   :  { %v1021_v45 = vmax.f32 %v3313_v27, %v3315_v28  ;;  %v2216_v32 = vadd.f32 %v2215_v34, %v2214_v23  ;;  %v2254_v60 = vpop.f32.mrf.mxu1 }
 0x156   :  { %v2593_v36 = vpop.eup %2592  ;;  %v3321_v37 = vpop.f32.mrf.mxu0 }
 0x157   :  { %v3325_v40 = vmul.f32 0.5, %v2593_v36  ;;  %v1200_v43 = vadd.f32 %v2216_v32, %v3217_v38  ;;  %v2255_v41 = vpop.f32.mrf.mxu1 }
 0x158   :  { %v2256_v49 = vadd.f32 %v2255_v41, %v2254_v60  ;;  %v3328_v50 = vpop.f32.mrf.mxu0 }
 0x159   :  { %v3330_v44 = vpop.f32.mrf.mxu1  ;;  %v1022_v52 = vmax.f32 %v3323_v39, %v3325_v40 }
 0x15a   :  { %v3334_v29 = vpop.f32.mrf.mxu0  ;;  %v1264_v42 = vadd.f32 %v2256_v49, %v1200_v43 }
 0x15b   :  { %v3336_v55 = vpop.f32.mrf.mxu1 }
 0x15c   :  { %v3338_v0 = vpop.f32.mrf.mxu0 }
 0x15d   :  { %v3340_v1 = vpop.f32.mrf.mxu1 }
 0x15e   :  { %v2223_v57 = vpop.f32.mrf.mxu0 }
 0x15f   :  { %v3342_v5 = vpop.f32.mrf.mxu1 }
 0x160   :  { %v2224_v8 = vpop.f32.mrf.mxu0 }
 0x161   :  { %v2263_v12 = vpop.f32.mrf.mxu1 }
 0x162   :  { %v2404_v62 = vpop.f32.mrf.mxu0 }
 0x163   :  { %v1320_v2 = vadd.f32 %v2404_v62, %v1256_v25  ;;  %v2264_v17 = vpop.f32.mrf.mxu1 }
 0x164   :  { %v1311_v20 = vpop.f32.mrf.mxu0 }
 0x165   :  { %v1343_v21 = vmul.f32 %v1320_v2, %v1320_v2  ;;  %v1312_v48 = vadd.f32 %v1311_v20, %v1248_v63  ;;  %v2290_v24 = vpop.f32.mrf.mxu1  ;;  %v2207_v20 = vadd.f32 %v3286_v61, %v3279_v56 }
 0x166   :  { %v2405_v11 = vpop.f32.mrf.mxu0 }
 0x167   :  { %v1350_v14 = vsub.f32 %v1343_v21, %v1320_v2  ;;  %v1341_v15 = vmul.f32 %v1312_v48, %v1312_v48  ;;  %v2291_v22 = vpop.f32.mrf.mxu1 }
 0x168   :  { %v1314_v23 = vpop.f32.mrf.mxu0 }
 0x169   :  { %v1357_v54 = vmul.f32 0.5, %v1350_v14  ;;  %v1348_v34 = vsub.f32 %v1341_v15, %v1312_v48  ;;  %v2293_v32 = vpop.f32.mrf.mxu1  ;;  %v2247_v15 = vadd.f32 %v3296_v59, %v3288_v9 }
 0x16a   :  { %v3344_v60 = vpop.f32.mrf.mxu0 }
 0x16b   :  { %2594 = vtanh.f32 %v1357_v54  ;;  %v1355_v36 = vmul.f32 0.5, %v1348_v34  ;;  %v2294_v43 = vpop.f32.mrf.mxu1 }
 0x16c   :  { %v1327_v41 = vpop.f32.mrf.mxu0 }
 0x16d   :  { %2596 = vtanh.f32 %v1355_v36  ;;  %v1328_v25 = vadd.f32 %v1327_v41, %v1264_v42  ;;  %v2296_v49 = vpop.f32.mrf.mxu1  ;;  %v1187_v42 = vadd.f32 %v2207_v20, %v3217_v38 }
 0x16e   :  { %v2409_v57 = vpop.f32.mrf.mxu0 }
 0x16f   :  { %v1345_v63 = vmul.f32 %v1328_v25, %v1328_v25  ;;  %v2297_v8 = vpop.f32.mrf.mxu1  ;;  %v1251_v9 = vadd.f32 %v2247_v15, %v1187_v42 }
 0x170   :  { %v2298_v10 = vadd.f32 %v2297_v8, %v2296_v49 }
 0x171   :  { %v1352_v12 = vsub.f32 %v1345_v63, %v1328_v25  ;;  %v3346_v62 = vpop.f32.mrf.mxu1  ;;  %v2213_v25 = vadd.f32 %v3307_v4, %v3300_v6  ;;  %v1315_v63 = vadd.f32 %v1314_v23, %v1251_v9 }
 0x172   :  { %v1552_v49 = vadd.f32 %v2298_v10, %v3217_v38 }
 0x173   :  { %v1359_v2 = vmul.f32 0.5, %v1352_v12  ;;  %v2300_v17 = vpop.f32.mrf.mxu1  ;;  %v1195_v53 = vadd.f32 %v2213_v25, %v3217_v38 }
 0x175   :  { %2598 = vtanh.f32 %v1359_v2  ;;  %v3350_v21 = vpop.f32.mrf.mxu1  ;;  %v2292_v2 = vadd.f32 %v2291_v22, %v2290_v24  ;;  %v1259_v42 = vadd.f32 %v2253_v58, %v1195_v53 }
 0x177   :  { %v3352_v48 = vpop.f32.mrf.mxu1  ;;  %v1544_v15 = vadd.f32 %v2292_v2, %v3217_v38  ;;  %v1323_v22 = vadd.f32 %v2405_v11, %v1259_v42 }
 0x178   :  { %v2595_v14 = vpop.eup %2594 }
 0x179   :  { %v1371_v54 = vmul.f32 0.5, %v2595_v14  ;;  %v3357_v34 = vpop.f32.mrf.mxu1  ;;  %v1342_v14 = vmul.f32 %v1315_v63, %v1315_v63  ;;  %v1344_v11 = vmul.f32 %v1323_v22, %v1323_v22 }
 0x17a   :  { %v2597_v36 = vpop.eup %2596 }
 0x17b   :  { %v3362_v41 = vmax.f32 %v1018_v31, %v1371_v54  ;;  %v1369_v56 = vmul.f32 0.5, %v2597_v36  ;;  %v3364_v61 = vpop.f32.mrf.mxu1  ;;  %v1330_v31 = vpop.f32.mrf.mxu0  ;;  %v2295_v54 = vadd.f32 %v2294_v43, %v2293_v32  ;;  %v1351_v42 = vsub.f32 %v1344_v11, %v1323_v22 }
 0x17c   :  { %v2307_v11 = vadd.f32 %v3364_v61, %v3357_v34 }
 0x17d   :  { %v3371_v57 = vmax.f32 %v1016_v35, %v1369_v56  ;;  %v3373_v59 = vpop.f32.mrf.mxu1  ;;  %v2219_v35 = vadd.f32 %v3328_v50, %v3321_v37  ;;  %v1349_v56 = vsub.f32 %v1342_v14, %v1315_v63  ;;  %v2259_v37 = vadd.f32 %v3336_v55, %v3330_v44 }
 0x17e   :  { %v2222_v50 = vadd.f32 %v3338_v0, %v3334_v29  ;;  %v1547_v7 = vadd.f32 %v2295_v54, %v3217_v38  ;;  %v2262_v44 = vadd.f32 %v3342_v5, %v3340_v1  ;;  %v2301_v29 = vadd.f32 %v2300_v17, %v3346_v62 }
 0x17f   :  { %v3375_v12 = vpop.f32.mrf.mxu1  ;;  %v1356_v63 = vmul.f32 0.5, %v1349_v56  ;;  %v2304_v62 = vadd.f32 %v3352_v48, %v3350_v21 }
 0x180   :  { %v1208_v14 = vadd.f32 %v2222_v50, %v3217_v38  ;;  %v1555_v5 = vadd.f32 %v2301_v29, %v3217_v38 }
 0x181   :  { %v2311_v20 = vpop.f32.mrf.mxu1  ;;  %2600 = vtanh.f32 %v1356_v63 }
 0x182   :  { %v2599_v6 = vpop.eup %2598  ;;  %v2330_v4 = vpop.f32.mrf.mxu0  ;;  %v1203_v20 = vadd.f32 %v2219_v35, %v3217_v38  ;;  %v1272_v1 = vadd.f32 %v2262_v44, %v1208_v14  ;;  %v1563_v44 = vadd.f32 %v2307_v11, %v3217_v38 }
 0x183   :  { %v1373_v26 = vmul.f32 0.5, %v2599_v6  ;;  %v2312_v30 = vpop.f32.mrf.mxu1 }
 0x184   :  { %v2331_v23 = vpop.f32.mrf.mxu0  ;;  %v1267_v55 = vadd.f32 %v2259_v37, %v1203_v20 }
 0x185   :  { %v3386_v19 = vmax.f32 %v1020_v18, %v1373_v26  ;;  %v2332_v33 = vadd.f32 %v2331_v23, %v2330_v4  ;;  %v2420_v24 = vpop.f32.mrf.mxu1 }
 0x186   :  { %v2333_v36 = vpop.f32.mrf.mxu0  ;;  %v1331_v23 = vadd.f32 %v1330_v31, %v1267_v55  ;;  %v1336_v31 = vadd.f32 %v3344_v60, %v1272_v1  ;;  %v2310_v55 = vadd.f32 %v3375_v12, %v3373_v59 }
 0x187   :  { %v1608_v25 = vadd.f32 %v2332_v33, %v1544_v15  ;;  %v1671_v9 = vpop.f32.mrf.mxu1 }
 0x188   :  { %v2334_v32 = vpop.f32.mrf.mxu0  ;;  %v1346_v22 = vmul.f32 %v1331_v23, %v1331_v23  ;;  %v1347_v63 = vmul.f32 %v1336_v31, %v1336_v31 }
 0x189   :  { %v2335_v18 = vadd.f32 %v2334_v32, %v2333_v36  ;;  %v1672_v43 = vadd.f32 %v1671_v9, %v1608_v25  ;;  %v2421_v53 = vpop.f32.mrf.mxu1  ;;  %v1358_v32 = vmul.f32 0.5, %v1351_v42 }
 0x18a   :  { %v2336_v58 = vpop.f32.mrf.mxu0 }
 0x18b   :  { %v1701_v2 = vmul.f32 %v1672_v43, %v1672_v43  ;;  %v1611_v6 = vadd.f32 %v2335_v18, %v1547_v7  ;;  %v1674_v4 = vpop.f32.mrf.mxu1 }
 0x18c   :  { %v2337_v0 = vpop.f32.mrf.mxu0 }
 0x18d   :  { %v1708_v8 = vsub.f32 %v1701_v2, %v1672_v43  ;;  %v2338_v26 = vadd.f32 %v2337_v0, %v2336_v58  ;;  %v1675_v30 = vadd.f32 %v1674_v4, %v1611_v6  ;;  %v3399_v35 = vpop.f32.mrf.mxu1  ;;  %v1560_v43 = vadd.f32 %v2304_v62, %v3217_v38 }
 0x18e   :  { %v2339_v15 = vpop.f32.mrf.mxu0  ;;  %v1353_v2 = vsub.f32 %v1346_v22, %v1331_v23  ;;  %v2601_v23 = vpop.eup %2600 }
 0x18f   :  { %v1715_v54 = vmul.f32 0.5, %v1708_v8  ;;  %v1616_v33 = vadd.f32 %v2338_v26, %v1552_v49  ;;  %v1702_v36 = vmul.f32 %v1675_v30, %v1675_v30  ;;  %v1687_v56 = vpop.f32.mrf.mxu1  ;;  %v1354_v49 = vsub.f32 %v1347_v63, %v1336_v31 }
 0x190   :  { %v2340_v17 = vpop.f32.mrf.mxu0  ;;  %v1370_v62 = vmul.f32 0.5, %v2601_v23 }
 0x191   :  { %2602 = vtanh.f32 %v1715_v54  ;;  %v1680_v25 = vadd.f32 %v2420_v24, %v1616_v33  ;;  %v1709_v9 = vsub.f32 %v1702_v36, %v1675_v30  ;;  %v2341_v20 = vadd.f32 %v2340_v17, %v2339_v15  ;;  %v2425_v37 = vpop.f32.mrf.mxu1 }
 0x192   :  { %v2342_v50 = vpop.f32.mrf.mxu0  ;;  %v1568_v15 = vadd.f32 %v2310_v55, %v3217_v38 }
 0x193   :  { %v1703_v7 = vmul.f32 %v1680_v25, %v1680_v25  ;;  %v1716_v10 = vmul.f32 0.5, %v1709_v9  ;;  %v1619_v18 = vadd.f32 %v2341_v20, %v1555_v5  ;;  %v1690_v54 = vpop.f32.mrf.mxu1  ;;  %v1361_v5 = vmul.f32 0.5, %v1354_v49 }
 0x194   :  { %v2343_v21 = vpop.f32.mrf.mxu0 }
 0x195   :  { %v1710_v48 = vsub.f32 %v1703_v7, %v1680_v25  ;;  %2604 = vtanh.f32 %v1716_v10  ;;  %v1683_v24 = vadd.f32 %v2421_v53, %v1619_v18  ;;  %v2344_v58 = vadd.f32 %v2343_v21, %v2342_v50 }
 0x196   :  { %v2345_v6 = vpop.f32.mrf.mxu0  ;;  %2606 = vtanh.f32 %v1358_v32  ;;  %v1360_v53 = vmul.f32 0.5, %v1353_v2  ;;  %v1377_v50 = vmax.f32 %v1017_v51, %v1370_v62 }
 0x197   :  { %v1717_v60 = vmul.f32 0.5, %v1710_v48  ;;  %v1704_v4 = vmul.f32 %v1683_v24, %v1683_v24  ;;  %v1624_v14 = vadd.f32 %v2344_v58, %v1560_v43 }
 0x198   :  { %v2346_v29 = vpop.f32.mrf.mxu0 }
 0x199   :  { %2608 = vtanh.f32 %v1717_v60  ;;  %v1711_v34 = vsub.f32 %v1704_v4, %v1683_v24  ;;  %v1688_v61 = vadd.f32 %v1687_v56, %v1624_v14  ;;  %v2347_v0 = vadd.f32 %v2346_v29, %v2345_v6 }
 0x19a   :  { %v2348_v8 = vpop.f32.mrf.mxu0 }
 0x19b   :  { %v1718_v26 = vmul.f32 0.5, %v1711_v34  ;;  %v1705_v30 = vmul.f32 %v1688_v61, %v1688_v61  ;;  %v1627_v42 = vadd.f32 %v2347_v0, %v1563_v44 }
 0x19c   :  { %v2349_v33 = vpop.f32.mrf.mxu0 }
 0x19d   :  { %2610 = vtanh.f32 %v1718_v26  ;;  %v1712_v36 = vsub.f32 %v1705_v30, %v1688_v61  ;;  %v1691_v1 = vadd.f32 %v1690_v54, %v1627_v42  ;;  %v2350_v59 = vadd.f32 %v2349_v33, %v2348_v8 }
 0x19e   :  { %v2603_v12 = vpop.eup %2602  ;;  %2612 = vtanh.f32 %v1360_v53  ;;  %v2351_v56 = vpop.f32.mrf.mxu0 }
 0x19f   :  { %v1719_v17 = vmul.f32 0.5, %v1712_v36  ;;  %v1706_v25 = vmul.f32 %v1691_v1, %v1691_v1  ;;  %v1632_v9 = vadd.f32 %v2350_v59, %v1568_v15  ;;  %v1729_v37 = vmul.f32 0.5, %v2603_v12 }
 0x1a0   :  { %v2352_v20 = vpop.f32.mrf.mxu0 }
 0x1a1   :  { %2614 = vtanh.f32 %v1719_v17  ;;  %v1713_v31 = vsub.f32 %v1706_v25, %v1691_v1  ;;  %v1696_v38 = vadd.f32 %v3399_v35, %v1632_v9  ;;  %v1736_v43 = vmax.f32 %v3371_v57, %v1729_v37 }
 0x1a2   :  { %v2605_v22 = vpop.eup %2604  ;;  %2616 = vtanh.f32 %v1361_v5 }
 0x1a3   :  { %v1730_v32 = vmul.f32 0.5, %v2605_v22  ;;  %v1720_v7 = vmul.f32 0.5, %v1713_v31  ;;  %v1707_v10 = vmul.f32 %v1696_v38, %v1696_v38  ;;  %v2607_v18 = vpop.eup %2606 }
 0x1a4   :  { %v1372_v24 = vmul.f32 0.5, %v2607_v18 }
 0x1a5   :  { %v1737_v11 = vmax.f32 %v1377_v50, %v1730_v32  ;;  %2618 = vtanh.f32 %v1720_v7  ;;  %v1714_v21 = vsub.f32 %v1707_v10, %v1696_v38 }
 0x1a6   :  { %v2609_v48 = vpop.eup %2608  ;;  %v1379_v51 = vmax.f32 %v1019_v3, %v1372_v24 }
 0x1a7   :  { %v1996_v58 = vpack.c.bf16 %v1737_v11, %v1736_v43  ;;  %v1721_v63 = vmul.f32 0.5, %v1714_v21  ;;  %v1731_v35 = vmul.f32 0.5, %v2609_v48 }
 0x1a9   :  { %1997 = vst [vmem:[%s3443_s3] sm:$0xff] %v1996_v58   ;;  %2620 = vtanh.f32 %v1721_v63  ;;  %v1738_v2 = vmax.f32 %v3362_v41, %v1731_v35 }
 0x1aa   :  { %v2611_v46 = vpop.eup %2610 }
 0x1ab   :  { %v2613_v47 = vpop.eup %2612  ;;  %v1732_v57 = vmul.f32 0.5, %v2611_v46 }
 0x1ac   :  { %v1374_v14 = vmul.f32 0.5, %v2613_v47 }
 0x1ad   :  { %v1739_v6 = vmax.f32 %v1379_v51, %v1732_v57 }
 0x1ae   :  { %v2615_v60 = vpop.eup %2614  ;;  %v1381_v13 = vmax.f32 %v1021_v45, %v1374_v14 }
 0x1af   :  { %v2617_v4 = vpop.eup %2616  ;;  %v2001_v44 = vpack.c.bf16 %v1739_v6, %v1738_v2  ;;  %v1733_v55 = vmul.f32 0.5, %v2615_v60 }
 0x1b0   :  { %v1375_v34 = vmul.f32 0.5, %v2617_v4 }
 0x1b1   :  { %2008 = vst [vmem:[%s3443_s3 + $0x8] sm:$0xff] %v2001_v44   ;;  %v1740_v3 = vmax.f32 %v3386_v19, %v1733_v55 }
 0x1b2   :  { %v2619_v29 = vpop.eup %2618  ;;  %v1382_v0 = vmax.f32 %v1022_v52, %v1375_v34 }
 0x1b3   :  { %v1734_v16 = vmul.f32 0.5, %v2619_v29 }
 0x1b5   :  { %v1741_v41 = vmax.f32 %v1381_v13, %v1734_v16 }
 0x1b6   :  { %v2621_v61 = vpop.eup %2620 }
 0x1b7   :  { %v2006_v49 = vpack.c.bf16 %v1741_v41, %v1740_v3  ;;  %v1735_v53 = vmul.f32 0.5, %v2621_v61 }
 0x1b9   :  { %2009 = vst [vmem:[%s3443_s3 + $0x10] sm:$0xff] %v2006_v49   ;;  %v1742_v8 = vmax.f32 %v1382_v0, %v1735_v53 }
 0x1bb   :  { %v1992_v26 = vpack.c.bf16 %v1742_v8, %v1742_v8 }
 0x1bd   :  { %1778 = vst [vmem:[%s3443_s3 + $0x18] sm:$0xf] %v1992_v26 }

</bundles_post_ra>
